<compile_context>
chip_gen: v7x
topology: tpu7x:2x2x1
jax: 0.10.0
libtpu: 0.0.40
codegen_flags: <defaults>
</compile_context>

<pallas_src>
import functools
import math

import jax
import jax.numpy as jnp
from jax.experimental import pallas as pl
from jax.experimental.pallas import tpu as pltpu

_LANES = 128            # TPU vreg lane width
_SUBLANES = 8           # TPU vreg sublane count (32-bit)
_MAX_TB = 32            # cap on batches per block (bounds in-kernel unroll)
_BLOCKS_PER_STEP = 8    # in+out double-buffered (~4) + interleave temps (~2), rounded up
_TARGET_BLOCK_BYTES = 1 << 20   # aim for ~2 MiB of in+out HBM traffic per grid step


def _cdiv(a: int, b: int) -> int:
    return -(-a // b)


def _pixel_shuffle_1d_ref(x: jax.Array, r: int) -> jax.Array:
    """Pure-JAX reference mirroring the PyTorch forward exactly."""
    B, C, W = x.shape
    c_long = C // r
    y = x.reshape(B, r, c_long, W)
    y = jnp.transpose(y, (0, 2, 3, 1))
    return y.reshape(B, c_long, W * r)


def _gen_vmem_limit() -> int:
    """Generation-aware scoped-VMEM limit (half of physical, 16..64 MiB)."""
    cap = 64 << 20                      # conservative fallback (v7x per-core VMEM)
    try:
        info = pltpu.get_tpu_info()
        cap = int(getattr(info, "vmem_capacity_bytes", cap)) or cap
    except Exception:
        pass
    return int(min(max(cap // 2, 16 << 20), 64 << 20))


def _plan_tiles(B, C, W, r, itemsize, vmem_limit, req_tb=None, req_tw=None):
    """Pick (batches_per_block, w_tile) under a bytes-based VMEM budget."""
    c_long = C // r
    budget = max(vmem_limit // _BLOCKS_PER_STEP, 64 << 10)   # bytes per block buffer

    # Sublane granule for this dtype (8 for 32-bit, 16 for 16-bit, 32 for 8-bit).
    sub = max(_SUBLANES, 32 // max(itemsize, 1))
    # Smallest TB that keeps both (TB*C) and (TB*c_long) row-block dims aligned.
    tb_unit = sub // math.gcd(c_long, sub)
    tb_unit = min(tb_unit, B)            # TB == B (full-extent rows) is always legal

    def blk_bytes(tb, tw):
        return tb * C * tw * itemsize

    # ---- W tile (lane aligned when < W) ----
    if req_tw is not None:
        tw = min(max(int(req_tw), _LANES), W)
        if tw < W:
            tw = (tw // _LANES) * _LANES
    else:
        tw = W
    if blk_bytes(tb_unit, tw) > budget and tw > _LANES:
        fit = budget // max(blk_bytes(tb_unit, 1), 1)
        tw = min(tw, max(_LANES, (fit // _LANES) * _LANES))

    # ---- batch tile ----
    if req_tb is not None:
        tb = min(max(int(req_tb), 1), B)
    else:
        per_unit = max(blk_bytes(tb_unit, tw), 1)
        k = max(1, min(budget // per_unit, _cdiv(_TARGET_BLOCK_BYTES, per_unit)))
        tb = min(tb_unit * k, B)
    tb = min(tb, _MAX_TB)
    if tb < B:
        tb = max(tb_unit, (tb // tb_unit) * tb_unit)

    # ---- guarantee pipeline overlap / multi-core work (>= 4 steps if possible) ----
    def steps(tb_, tw_):
        return _cdiv(B, tb_) * _cdiv(W, tw_)

    min_steps = 1 if (req_tb is not None or req_tw is not None) else 4
    while steps(tb, tw) < min_steps:
        if tb > tb_unit:
            tb = max(tb_unit, ((tb // 2) // tb_unit) * tb_unit)
            continue
        if tw > _LANES:
            new_tw = max(_LANES, _cdiv(tw // 2, _LANES) * _LANES)
            if new_tw < tw:
                tw = new_tw
                continue
        break

    return tb, tw


def _pixel_shuffle_kernel(x_ref, o_ref, *, r: int, c_long: int, tb: int):
    # x_ref block: (tb*C, tw)   o_ref block: (tb*c_long, tw*r)
    C = r * c_long
    tw = x_ref.shape[-1]
    # tb is a small static int (<= _MAX_TB) -> this loop fully unrolls.  Each
    # iteration interleaves the r channel groups of one batch along lanes.
    for t in range(tb):
        xb = x_ref[pl.ds(t * C, C), :]                          # (C, tw)
        y = jnp.transpose(xb.reshape(r, c_long, tw), (1, 2, 0))  # (c_long, tw, r)
        o_ref[pl.ds(t * c_long, c_long), :] = y.reshape(c_long, tw * r)


def pixel_shuffle_1d(x: jax.Array, upscale_factor: int, *, tile_b=None, tile_w=None) -> jax.Array:
    """1D pixel shuffle: (B, C, W) -> (B, C // r, W * r)."""
    r = int(upscale_factor)
    B, C, W = x.shape
    if C % r != 0:
        raise ValueError("channels must be divisible by upscale_factor")
    c_long = C // r
    w_long = W * r
    if r == 1:
        return x
    itemsize = jnp.dtype(x.dtype).itemsize

    # Lane-sparse outputs (< one vreg of lanes) cannot be made DMA-efficient in
    # Pallas; plain XLA is already at the roofline for this zero-FLOP relayout.
    if w_long < _LANES:
        return _pixel_shuffle_1d_ref(x, r)

    gen_limit = _gen_vmem_limit()
    tb, tw = _plan_tiles(B, C, W, r, itemsize, gen_limit, req_tb=tile_b, req_tw=tile_w)

    block_bytes = tb * C * tw * itemsize          # one in buffer (out buffer is same size)
    vmem_limit = int(min(gen_limit, max(16 << 20, _BLOCKS_PER_STEP * block_bytes)))

    # Fold batch into the row axis (free, contiguous merges) so row blocks span
    # TB whole batches and stay sublane-dense even when c_long < 8.
    x2 = x.reshape(B * C, W)

    kernel = functools.partial(_pixel_shuffle_kernel, r=r, c_long=c_long, tb=tb)
    y2 = pl.pallas_call(
        kernel,
        out_shape=jax.ShapeDtypeStruct((B * c_long, w_long), x.dtype),
        grid=(pl.cdiv(B, tb), pl.cdiv(W, tw)),
        in_specs=[pl.BlockSpec((tb * C, tw), lambda b, w: (b, w))],
        out_specs=pl.BlockSpec((tb * c_long, tw * r), lambda b, w: (b, w)),
        compiler_params=pltpu.CompilerParams(
            dimension_semantics=("parallel", "parallel"),
            vmem_limit_bytes=vmem_limit,
        ),
        cost_estimate=pl.CostEstimate(
            flops=0,
            transcendentals=0,
            bytes_accessed=2 * B * C * W * itemsize,
        ),
    )(x2)
    return y2.reshape(B, c_long, w_long)


if __name__ == "__main__":
    key = jax.random.PRNGKey(0)
    r = 2  # FRN-BWE uses PixelShuffle1D for 2x upsampling; the module has no weights

    tests = [
        # (shape, tile_b, tile_w)
        ((2, 8, 16), None, None),    # tiny, lane-sparse output -> pure-XLA fallback path
        ((2, 8, 256), None, None),   # Pallas path, auto tiling (multi-batch row blocks)
        ((3, 8, 384), None, None),   # Pallas path with partial batch and W blocks
        ((2, 8, 256), 1, 128),       # Pallas path, user tile overrides (clamped for legality)
    ]

    for i, (shape, tb_req, tw_req) in enumerate(tests):
        key, sub = jax.random.split(key)
        x = jax.random.normal(sub, shape, dtype=jnp.float32)

        out = jax.block_until_ready(pixel_shuffle_1d(x, r, tile_b=tb_req, tile_w=tw_req))
        ref = _pixel_shuffle_1d_ref(x, r)

        B, C, W = shape
        assert out.shape == (B, C // r, W * r), (i, out.shape)
        assert out.dtype == x.dtype, (i, out.dtype)
        assert jnp.array_equal(out, ref), f"Pallas PixelShuffle1D mismatch vs reference (test {i})"

    print("KERNEL_OK")
</pallas_src>

<mosaic_0001>
module attributes {stable_mosaic.version = 11 : i64} {
  func.func @_pixel_shuffle_kernel(%arg0: i32, %arg1: i32, %arg2: memref<16x128xf32, #tpu.memory_space<vmem>>, %arg3: memref<8x256xf32, #tpu.memory_space<vmem>>) attributes {dimension_semantics = [#tpu.dimension_semantics<parallel>, #tpu.dimension_semantics<parallel>], iteration_bounds = array<i64: 1, 2>, scalar_prefetch = 0 : i64, scratch_operands = 0 : i64, tpu.core_type = #tpu.core_type<tc>, window_params = [{transform_indices = @transform_0, window_bounds = array<i64: 16, 128>}, {transform_indices = @transform_1, window_bounds = array<i64: 8, 256>}]} {
    %c0 = arith.constant 0 : index
    %c0_0 = arith.constant 0 : index
    %0 = vector.load %arg2[%c0, %c0_0] : memref<16x128xf32, #tpu.memory_space<vmem>>, vector<8x128xf32>
    %1 = vector.shape_cast %0 : vector<8x128xf32> to vector<2x4x128xf32>
    %2 = tpu.transpose %1, [1, 2, 0] : vector<2x4x128xf32> -> vector<4x128x2xf32>
    %3 = vector.shape_cast %2 : vector<4x128x2xf32> to vector<4x256xf32>
    %c0_1 = arith.constant 0 : index
    %c0_2 = arith.constant 0 : index
    %4 = vector.load %arg3[%c0_1, %c0_2] : memref<8x256xf32, #tpu.memory_space<vmem>>, vector<4x256xf32>
    tpu.vector_store %arg3[%c0_1, %c0_2], %3 {strides = array<i32>} : memref<8x256xf32, #tpu.memory_space<vmem>>, vector<4x256xf32>,
    %c8 = arith.constant 8 : index
    %c0_3 = arith.constant 0 : index
    %5 = vector.load %arg2[%c8, %c0_3] : memref<16x128xf32, #tpu.memory_space<vmem>>, vector<8x128xf32>
    %6 = vector.shape_cast %5 : vector<8x128xf32> to vector<2x4x128xf32>
    %7 = tpu.transpose %6, [1, 2, 0] : vector<2x4x128xf32> -> vector<4x128x2xf32>
    %8 = vector.shape_cast %7 : vector<4x128x2xf32> to vector<4x256xf32>
    %c4 = arith.constant 4 : index
    %c0_4 = arith.constant 0 : index
    %9 = vector.load %arg3[%c4, %c0_4] : memref<8x256xf32, #tpu.memory_space<vmem>>, vector<4x256xf32>
    tpu.vector_store %arg3[%c4, %c0_4], %8 {strides = array<i32>} : memref<8x256xf32, #tpu.memory_space<vmem>>, vector<4x256xf32>,
    return
  }
  func.func @transform_0(%arg0: i32, %arg1: i32) -> (i32, i32) {
    %c0_i32 = arith.constant 0 : i32
    return %arg0, %arg1 : i32, i32
  }
  func.func @transform_1(%arg0: i32, %arg1: i32) -> (i32, i32) {
    %c0_i32 = arith.constant 0 : i32
    return %arg0, %arg1 : i32, i32
  }
}

</mosaic_0001>

<bundles_post_ra>
// kernel: tpu_custom_call.1
= control target key start
LH: loop header
LB: loop body
LE: loop exit
PB: predicated region body
PF: predicated region fallthrough
CT: control target
= control target key end

     0   :  { %s19999_s0 = inlined_call_operand.hbm [shape: f32[16,256], index: 0, kind: input, shape index: {}]   ;;  %s20000_s1 = inlined_call_operand.hbm [shape: f32[8,512], index: 1, kind: output, shape index: {}]  }
   0x1   :  { %20229 = sst [smem:[#allocation163_spill]] %s19999_s0 }
   0x2   :  { %20230 = sst [smem:[#allocation164_spill]] %s20000_s1 }
   0x3   :  { %6 = vsyncpa [#allocation3], 0 }
   0x4   :  { %8 = vsyncpa [#allocation3 + $0x1], 0 }
   0x5   :  { %9 = vsyncpa [#allocation4], 0 }
   0x6   :  { %11 = vsyncpa [#allocation4 + $0x1], 0  ;;  %s16851_s6 = smov 0   ;;  %s16853_s7 = smov 0  }
   0x7   :  { %s16855_s8 = smov 0   ;;  %s16857_s9 = smov 0  }
   0x8   :  { %s16859_s10 = smov 0   ;;  %s16861_s11 = smov 0  }
   0x9 LB: > { %20231 = sst [smem:[#allocation8_spill]] %s16748_s6  ;;  %s16380_s12 = sadd.s32 4294967295, %s16768_s11   ;;  %s16768_s11 = sphi %s16861_s11, %s17_s11   ;;  %s16764_s10 = sphi %s16859_s10, %s20902_s10   ;;  %s16760_s9 = sphi %s16857_s9, %s20901_s9   ;;  %s16756_s8 = sphi %s16855_s8, %s20900_s8   ;;  %s16752_s7 = sphi %s16853_s7, %s20899_s7   ;;  %s16748_s6 = sphi %s16851_s6, %s20898_s6  }
   0xa   : > { %20232 = sst [smem:[#allocation9_spill]] %s16752_s7  ;;  %s16381_s13 = sadd.s32 4294967294, %s16768_s11  }
   0xb   : > { %20233 = sst [smem:[#allocation10_spill]] %s16756_s8  ;;  %s26_s14 = sadd.s32 1, %s16764_s10 }
   0xc   : > { %20234 = sst [smem:[#allocation11_spill]] %s16760_s9  ;;  %s38_s15 = sadd.s32 1, %s16756_s8 }
   0xd   : > { %20235 = sst [smem:[#allocation12_spill]] %s16764_s10  ;;  %p27_p0 = scmp.ge.s32.totalorder %s26_s14, 2 }
   0xe   : > { %20236 = sst [smem:[#allocation13_spill]] %s16768_s11  ;;  %p45_p1 = scmp.ne.s32.totalorder %s16756_s8, %s16752_s7 }
   0xf   : > { %p46_p2 = scmp.eq.s32.totalorder %s16768_s11, 0  ;;  %p51_p3 = scmp.ne.s32.totalorder %s16752_s7, %s16748_s6 }
  0x10   : > { %s20904_s14 = smov (%p27_p0, %s26_s14), 0  ;;  %p52_p5 = scmp.eq.s32.totalorder %s16380_s12, 0 }
  0x11   : > { %20237 = sst [smem:[#allocation14_spill]] %s20904_s14  ;;  %p16892_p4 = por %p46_p2, %p45_p1 }
  0x12   : > { %s34_s17 = ssub.s32 %s16764_s10, %s20904_s14  ;;  %p77_p6 = scmp.eq.s32.totalorder %s16380_s12, 1 }
  0x13   : > { %p36_p7 = scmp.eq.s32.totalorder %s34_s17, 0  ;;  %p16898_p8 = por %p52_p5, %p51_p3 }
  0x14   : > { %p16902_p9 = por %p77_p6, %p45_p1  ;;  %p83_p10 = scmp.eq.s32.totalorder %s16381_s13, 1 }
  0x15   : > { %s16907_s20 = scalar_select %p36_p7, %s16756_s8, %s38_s15  }
  0x16   : > { %s20240_s19 = scalar_select %p16902_p9, 1, 0 }
  0x17   : > { %20242 = sst [smem:[#allocation16_spill]] %s16907_s20  ;;  %p16909_p11 = por %p83_p10, %p51_p3 }
  0x18   : > { %20241 = sst [smem:[#allocation15_spill]] %s20240_s19  ;;  %p16535_p13 = scmp.lt.s32.totalorder %s16768_s11, 2 }
  0x19   : > { %s20243_s21 = scalar_select %p16909_p11, 1, 0 }
  0x1a   : > { %s103_s22 = sand.u32 1, %s16756_s8   ;;  %s16385_s24 = sshll.u32 %s16764_s10, 7 }
  0x1b   : > { %20244 = sst [smem:[#allocation17_spill]] %s20243_s21  ;;  %s16384_s23 = sshll.u32 %s103_s22, 4 }
  0x1c   : > { %s20245_s0 = sld [smem:[#allocation163_spill]]  ;;  %s107_s28 = scalar_lea.vmem [#allocation2], %s16384_s23 }
  0x1d   : > { %s116_s29 = sshll.u32 %s107_s28, 4  ;;  %p16926_p0 = pnand %p16535_p13, %p16892_p4  ;;  %s16922_s29 = int_to_ptr.vmem [resolvable:$true] %s116_s29 }
  0x1e   : > { %s16930_s2 = scalar_lea.sflag [#allocation3], %s103_s22 }
  0x1f   : > { %p16658_p2 = pneg %p16926_p0 }
  0x22   : > { %s16920_s27 = scalar_lea.hbm %s20245_s0, %s16385_s24  ;;  %s16661_s12 = scalar_lea.hbm %s20245_s0, 512 }
  0x23   : > { %s16656_s3 = scalar_lea.hbm %s16920_s27, 256  ;;  %p16662_p4 = scmp.lt.u32.totalorder %s16920_s27, %s20245_s0 }
  0x24   : > { %p16657_p1 = scmp.ne.s32.totalorder %s16920_s27, %s16656_s3  ;;  %p16663_p6 = scmp.lt.u32.totalorder %s16661_s12, %s16656_s3 }
  0x25   : > { %p16665_p10 = scmp.lt.u32.totalorder %s16656_s3, %s16920_s27 }
  0x26   : > { %p16659_p3 = pnand %p16658_p2, %p16657_p1  ;;  %p16664_p7 = por %p16663_p6, %p16662_p4 }
  0x28   : > { %p16660_p5 = pneg %p16659_p3  ;;  %p16666_p13 = por %p16665_p10, %p16664_p7 }
  0x2a   : > { %p16667_p12 = pnand %p16666_p13, %p16660_p5 }
  0x2c   : > { %16670 = shalt.err (!%p16667_p12)
}
  0x2d   : > { %s16671_s16 = scalar_lea.vmem %s16922_s29, 256  ;;  %s16770_s17 = smov [#allocation2]  }
  0x2e   : > { %p16672_p1 = scmp.ne.s32.totalorder %s16922_s29, %s16671_s16  ;;  %s16676_s22 = sshll.u32 %s16770_s17, 4  ;;  %s16677_s22 = int_to_ptr.vmem [resolvable:$false] %s16676_s22 }
  0x2f   : > { %s16678_s23 = scalar_lea.vmem %s16677_s22, 512  ;;  %p16679_p9 = scmp.lt.s32.totalorder %s16922_s29, %s16677_s22 }
  0x30   : > { %p16674_p3 = pnand %p16672_p1, %p16658_p2  ;;  %p16680_p4 = scmp.lt.s32.totalorder %s16678_s23, %s16671_s16 }
  0x32   : > { %p16675_p11 = pneg %p16674_p3  ;;  %p16681_p6 = por %p16680_p4, %p16679_p9 }
  0x34   : > { %p16682_p7 = pnand %p16681_p6, %p16675_p11 }
  0x36   : > { %16685 = shalt.err (!%p16682_p7)
}
  0x37   : > { %s16771_s24 = smov 256   ;;  %s16772_s25 = smov 128  }
  0x38   : > { %s16773_s26 = smov 8   ;;  %p16386_p12 = scmp.ge.s32.totalorder %s16768_s11, 1 }
  0x39   : > { %16530 = dma.hbm_to_vmem [thread:$0]  (!%p16926_p0), %s16920_s27, 256, %s16922_s29, %s16930_s2, %s16771_s24, %s16772_s25, %s16773_s26  }
  0x3a   : > { %p124_p2 = scmp.lt.s32.totalorder %s16768_s11, 3 }
  0x3c   : > { %p125_p5 = pnand %p16386_p12, %p124_p2 }
  0x3e   : > { %128 = sbr.rel (%p125_p5) target bundleno = 1648 (0x670), region = 24 }
  0x45   : > { %s16961_s28 = sand.u32 1, %s16752_s7  }
  0x46   : > { %20247 = sst [smem:[#allocation18_spill]] %s16961_s28  ;;  %s20038_s3 = sshll.u32 %s16961_s28, 4 }
  0x47   : > { %s131_s4 = scalar_lea.sflag [#allocation3], %s16961_s28  ;;  %s16967_s5 = scalar_lea.vmem [#allocation2], %s20038_s3 }
  0x48   : > { %16739 = dma.done.wait (%p16898_p8), %s131_s4, 256  }
  0x49   : > { %16741 = vsyncadd (%p16898_p8), %s131_s4, 4294967040  ;;  %v155_v0 = vld [vmem:[%s16967_s5] sm:$0xff]  ;;  %v16774_v16 = vmov 1983009808   ;;  %v227_v18 = vlaneseq  ;;  %v16775_v22 = vmov 1934713408  }
  0x4a   : > { %159 = vxpose.xlu0.b32.start.end [1/1] (short) %v155_v0, 128  ;;  %v157_v1 = vcombine.high %v155_v0, %v155_v0  ;;  %v225_v17 = vunpack.c.l.s4 %v16774_v16  ;;  %v256_v23 = vunpack.c.l.s4 %v16775_v22  ;;  %v20010_v37 = vmov 0.0   ;;  %s20125_s18 = smov 2   ;;  %s20127_s27 = smov 6  }
  0x4b   : > { %v228_v21 = vshrl.u32 %v227_v18, 7  ;;  %s20164_s29 = smov 8   ;;  %s20158_s30 = smov 10   ;;  %vm8055_vm0 = vcmask 15360   ;;  %vm8057_vm1 = vcmask 31744   ;;  %vm8059_vm2 = vcmask 48128  }
  0x4c   : > { %v226_v20 = vunpack.c.0.s8 %v225_v17  ;;  %v257_v26 = vunpack.c.0.s8 %v256_v23  ;;  %s20152_s2 = smov 12   ;;  %s20146_s12 = smov 16   ;;  %vm8061_vm3 = vcmask 64512   ;;  %vm8063_vm4 = vcmask 80896  }
  0x4d   : > { %s20140_s13 = smov 20   ;;  %s20161_s15 = smov 4   ;;  %vm8065_vm5 = vcmask 97280   ;;  %vm8067_vm6 = vcmask 113664   ;;  %vm8069_vm7 = vcmask 130048   ;;  %vm8071_vm8 = vcmask 146432  }
  0x4e   : > { %v17002_v25 = vsub.s32 %v226_v20, %v228_v21  ;;  %v17006_v30 = vsub.s32 %v257_v26, %v228_v21  ;;  %s20065_s16 = smov 24   ;;  %s20155_s17 = smov 14   ;;  %vm20224_vm9 = vcmask 162816   ;;  %vm20225_vm10 = vcmask 179200  }
  0x4f   : > { %s20047_s22 = smov 28   ;;  %s20149_s23 = smov 18   ;;  %vm20226_vm11 = vcmask 195584   ;;  %vm20129_vm12 = vcmask 211968   ;;  %vm20133_vm13 = vcmask 228352   ;;  %vm20130_vm14 = vcmask 244736  }
  0x50   : > { %s20043_s24 = smov 32   ;;  %s20143_s25 = smov 22   ;;  %vm20139_vm15 = vcmask 261120  }
  0x51   : > { %s20039_s26 = smov 36   ;;  %s20137_s4 = smov 26  }
  0x52   : > { %s20131_s3 = smov 30   ;;  %s20526_s0 = smov 60  }
  0x53   : > { %s20529_s14 = smov 74   ;;  %s20530_s10 = smov 64  }
  0x54   : > { %s20531_s20 = smov 78   ;;  %s20532_s8 = smov 68  }
  0x55   : > { %s20537_s7 = smov 82   ;;  %s20538_s11 = smov 72  }
  0x56   : > { %s20539_s21 = smov 86   ;;  %s20540_s6 = smov 76  }
  0x57   : > { %s20545_s1 = smov 90   ;;  %s20546_s19 = smov 80  }
  0x58   : > { %s20547_s9 = smov 94  }
  0x87   : > { %191 = vxpose.xlu0.b32.start.end [1/1] (short) %v157_v1, 128 }
  0xca   : > { %v175_v2 = vpop.trf.xlu0 }
  0xcb   : > { %v230_v28 = vrot.slane %v175_v2, %v17002_v25  ;;  %v223_v41 = vcombine.high %v175_v2, %v20010_v37 }
  0xcd   : > { %v237_v48 = vrot.slane %v223_v41, %v17002_v25 }
  0xce   : > { %v16974_v3 = vpop.trf.xlu0 }
  0xcf   : > { %v296_v26 = vrot.slane %v16974_v3, %v17002_v25 }
  0xd2   : > { %v16976_v4 = vpop.trf.xlu0 }
  0xd3   : > { %v17015_v36 = vrot.slane %v16976_v4, %v17002_v25 }
  0xd6   : > { %v16978_v5 = vpop.trf.xlu0 }
  0xda   : > { %v179_v6 = vpop.trf.xlu0 }
  0xdb   : > { %v487_v49 = vcombine.high %v179_v6, %v20010_v37  ;;  %v494_v50 = vrot.slane %v179_v6, %v17002_v25 }
  0xdd   : > { %v501_v59 = vrot.slane %v487_v49, %v17002_v25 }
  0xde   : > { %v16980_v7 = vpop.trf.xlu0 }
  0xdf   : > { %v560_v21 = vrot.slane %v16980_v7, %v17002_v25 }
  0xe2   : > { %v16982_v8 = vpop.trf.xlu0 }
  0xe6   : > { %v16984_v9 = vpop.trf.xlu0 }
  0xea   : > { %v16986_v10 = vpop.trf.xlu0 }
  0xee   : > { %v16988_v11 = vpop.trf.xlu0 }
  0xf2   : > { %v16990_v12 = vpop.trf.xlu0 }
  0xf6   : > { %v16992_v13 = vpop.trf.xlu0 }
  0xfa   : > { %v16994_v14 = vpop.trf.xlu0 }
  0xfe   : > { %v16996_v15 = vpop.trf.xlu0 }
 0x102   : > { %v16998_v19 = vpop.trf.xlu0 }
 0x106   : > { %v17000_v24 = vpop.trf.xlu0 }
 0x10a   : > { %v207_v27 = vpop.trf.xlu0 }
 0x10b   : > { %v245_v29 = vrot.slane %v207_v27, %v17002_v25  ;;  %v238_v38 = vcombine.high %v207_v27, %v20010_v37 }
 0x10d   : > { %v253_v31 = vcombine.low %v230_v28, %v245_v29  ;;  %v254_v34 = vcombine.high %v230_v28, %v245_v29  ;;  %v252_v46 = vrot.slane %v238_v38, %v17002_v25 }
 0x10e   : > { %v17008_v32 = vpop.trf.xlu0 }
 0x10f   : > { %v261_v33 = vrot.slane %v253_v31, %v17006_v30  ;;  %v268_v40 = vrot.slane %v254_v34, %v17006_v30  ;;  %v269_v55 = vcombine.low %v237_v48, %v252_v46  ;;  %v270_v62 = vcombine.high %v237_v48, %v252_v46 }
 0x110   : > { %v311_v22 = vrot.slane %v17008_v32, %v17002_v25 }
 0x111   : > { %1279 = vxpose.xlu1.b32.start.end [1/1] (short) (narrow) %v261_v33, 8  ;;  %v285_v44 = vcombine.high %v261_v33, %v20010_v37  ;;  %v286_v54 = vcombine.high %v268_v40, %v20010_v37  ;;  %v277_v60 = vrot.slane %v269_v55, %v17006_v30  ;;  %v284_v6 = vrot.slane %v270_v62, %v17006_v30 }
 0x112   : > { %v17011_v35 = vpop.trf.xlu0  ;;  %v553_v33 = vcombine.high %v16980_v7, %v20010_v37  ;;  %v319_v38 = vcombine.low %v296_v26, %v311_v22  ;;  %v320_v7 = vcombine.high %v296_v26, %v311_v22 }
 0x113   : > { %v17020_v39 = vrot.slane %v17011_v35, %v17002_v25  ;;  %v287_v23 = vcombine.high %v277_v60, %v20010_v37  ;;  %v288_v34 = vcombine.high %v284_v6, %v20010_v37 }
 0x114   : > { %v567_v46 = vrot.slane %v553_v33, %v17002_v25 }
 0x115   : > { %1343 = vxpose.xlu1.b32.start.end [1/1] (short) (narrow) %v268_v40, 8  ;;  %v385_v42 = vcombine.low %v17015_v36, %v17020_v39 }
 0x116   : > { %v17026_v43 = vpop.trf.xlu0 }
 0x117   : > { %v17030_v45 = vrot.slane %v385_v42, %v17006_v30 }
 0x119   : > { %1311 = vxpose.xlu1.b32.start.end [1/1] (short) (narrow) %v285_v44, 8  ;;  %v417_v47 = vcombine.high %v17030_v45, %v20010_v37 }
 0x11a   : > { %v211_v51 = vpop.trf.xlu0 }
 0x11b   : > { %v502_v52 = vcombine.high %v211_v51, %v20010_v37  ;;  %v509_v53 = vrot.slane %v211_v51, %v17002_v25  ;;  %1823 = vxpose.xlu0.b32.start.end [1/1] (short) (narrow) %v417_v47, 8  ;;  %v327_v47 = vrot.slane %v319_v38, %v17006_v30 }
 0x11d   : > { %v516_v56 = vrot.slane %v502_v52, %v17002_v25  ;;  %1375 = vxpose.xlu1.b32.start.end [1/1] (short) (narrow) %v286_v54, 8  ;;  %v517_v57 = vcombine.low %v494_v50, %v509_v53  ;;  %v518_v58 = vcombine.high %v494_v50, %v509_v53  ;;  %v304_v52 = vcombine.high %v17008_v32, %v20010_v37 }
 0x11e   : > { %v212_v2 = vpop.trf.xlu0  ;;  %v334_v53 = vrot.slane %v320_v7, %v17006_v30  ;;  %v289_v54 = vcombine.high %v16974_v3, %v20010_v37  ;;  %v351_v32 = vcombine.high %v327_v47, %v20010_v37 }
 0x11f   : > { %v17045_v61 = vrot.slane %v517_v57, %v17006_v30  ;;  %v17050_v0 = vrot.slane %v518_v58, %v17006_v30  ;;  %v533_v1 = vcombine.low %v501_v59, %v516_v56  ;;  %v575_v16 = vrot.slane %v212_v2, %v17002_v25 }
 0x120   : > { %v534_v20 = vcombine.high %v501_v59, %v516_v56  ;;  %v568_v27 = vcombine.high %v212_v2, %v20010_v37  ;;  %v626_v59 = vrot.slane %v16982_v8, %v17002_v25  ;;  %v303_v3 = vrot.slane %v289_v54, %v17002_v25 }
 0x121   : > { %1407 = vxpose.xlu1.b32.start.end [1/1] (short) (narrow) %v277_v60, 8  ;;  %v549_v63 = vcombine.high %v17045_v61, %v20010_v37  ;;  %v550_v17 = vcombine.high %v17050_v0, %v20010_v37  ;;  %v17057_v18 = vrot.slane %v533_v1, %v17006_v30  ;;  %v583_v31 = vcombine.low %v560_v21, %v575_v16 }
 0x122   : > { %v17070_v29 = vrot.slane %v534_v20, %v17006_v30  ;;  %v582_v40 = vrot.slane %v568_v27, %v17002_v25  ;;  %v584_v44 = vcombine.high %v560_v21, %v575_v16  ;;  %v213_v51 = vpop.trf.xlu0  ;;  %v318_v60 = vrot.slane %v304_v52, %v17002_v25 }
 0x123   : > { %2335 = vxpose.xlu0.b32.start.end [1/1] (short) (narrow) %v549_v63, 8  ;;  %v551_v28 = vcombine.high %v17057_v18, %v20010_v37  ;;  %v17079_v42 = vrot.slane %v583_v31, %v17006_v30  ;;  %v641_v55 = vrot.slane %v213_v51, %v17002_v25  ;;  %v634_v62 = vcombine.high %v213_v51, %v20010_v37 }
 0x124   : > { %v552_v41 = vcombine.high %v17070_v29, %v20010_v37  ;;  %v17086_v49 = vrot.slane %v584_v44, %v17006_v30  ;;  %v599_v50 = vcombine.low %v567_v46, %v582_v40  ;;  %v600_v58 = vcombine.high %v567_v46, %v582_v40 }
 0x125   : > { %1471 = vxpose.xlu1.b32.start.end [1/1] (short) (narrow) %v284_v6, 8  ;;  %v615_v48 = vcombine.high %v17079_v42, %v20010_v37  ;;  %v649_v2 = vcombine.low %v626_v59, %v641_v55  ;;  %v619_v6 = vcombine.high %v16982_v8, %v20010_v37  ;;  %v352_v16 = vcombine.high %v334_v53, %v20010_v37 }
 0x126   : > { %v616_v56 = vcombine.high %v17086_v49, %v20010_v37  ;;  %v17097_v57 = vrot.slane %v599_v50, %v17006_v30  ;;  %v17108_v1 = vrot.slane %v600_v58, %v17006_v30  ;;  %v648_v20 = vrot.slane %v634_v62, %v17002_v25 }
 0x127   : > { %2399 = vxpose.xlu0.b32.start.end [1/1] (short) (narrow) %v550_v17, 8  ;;  %v335_v17 = vcombine.low %v303_v3, %v318_v60  ;;  %v17117_v22 = vrot.slane %v649_v2, %v17006_v30  ;;  %v633_v26 = vrot.slane %v619_v6, %v17002_v25  ;;  %v336_v8 = vcombine.high %v303_v3, %v318_v60 }
 0x128   : > { %v617_v63 = vcombine.high %v17097_v57, %v20010_v37  ;;  %v618_v21 = vcombine.high %v17108_v1, %v20010_v37  ;;  %v370_v60 = vcombine.high %v17011_v35, %v20010_v37  ;;  %v355_v3 = vcombine.high %v16976_v4, %v20010_v37 }
 0x129   : > { %1439 = vxpose.xlu1.b32.start.end [1/1] (short) (narrow) %v287_v23, 8  ;;  %v650_v23 = vcombine.high %v626_v59, %v641_v55  ;;  %v343_v27 = vrot.slane %v335_v17, %v17006_v30  ;;  %v665_v33 = vcombine.low %v633_v26, %v648_v20  ;;  %v350_v38 = vrot.slane %v336_v8, %v17006_v30 }
 0x12a   : > { %v666_v46 = vcombine.high %v633_v26, %v648_v20  ;;  %v758_v20 = vrot.slane %v16986_v10, %v17002_v25 }
 0x12b   : > { %2463 = vxpose.xlu0.b32.start.end [1/1] (short) (narrow) %v551_v28, 8  ;;  %v681_v28 = vcombine.high %v17117_v22, %v20010_v37  ;;  %v17124_v31 = vrot.slane %v650_v23, %v17006_v30  ;;  %v17131_v44 = vrot.slane %v665_v33, %v17006_v30  ;;  %v353_v7 = vcombine.high %v343_v27, %v20010_v37 }
 0x12c   : > { %v17140_v51 = vrot.slane %v666_v46, %v17006_v30  ;;  %v354_v54 = vcombine.high %v350_v38, %v20010_v37  ;;  %v751_v33 = vcombine.high %v16986_v10, %v20010_v37 }
 0x12d   : > { %1503 = vxpose.xlu1.b32.start.end [1/1] (short) (narrow) %v288_v34, 8  ;;  %v214_v34 = vpop.trf.xlu0  ;;  %v683_v50 = vcombine.high %v17131_v44, %v20010_v37 }
 0x12e   : > { %v707_v40 = vrot.slane %v214_v34, %v17002_v25 }
 0x12f   : > { %2527 = vxpose.xlu0.b32.start.end [1/1] (short) (narrow) %v552_v41, 8  ;;  %v682_v41 = vcombine.high %v17124_v31, %v20010_v37 }
 0x131   : > { %1535 = vxpose.xlu1.b32.start.end [1/1] (short) (narrow) %v327_v47, 8  ;;  %v692_v47 = vrot.slane %v16984_v9, %v17002_v25  ;;  %v215_v6 = vpop.trf.xlu0 }
 0x132   : > { %v766_v26 = vcombine.high %v215_v6, %v20010_v37 }
 0x133   : > { %2591 = vxpose.xlu0.b32.start.end [1/1] (short) (narrow) %v615_v48, 8  ;;  %v700_v48 = vcombine.high %v214_v34, %v20010_v37  ;;  %v715_v52 = vcombine.low %v692_v47, %v707_v40  ;;  %v716_v59 = vcombine.high %v692_v47, %v707_v40 }
 0x134   : > { %v780_v40 = vrot.slane %v766_v26, %v17002_v25 }
 0x135   : > { %1599 = vxpose.xlu1.b32.start.end [1/1] (short) (narrow) %v334_v53, 8  ;;  %v685_v53 = vcombine.high %v16984_v9, %v20010_v37  ;;  %v714_v55 = vrot.slane %v700_v48, %v17002_v25  ;;  %v17149_v58 = vrot.slane %v715_v52, %v17006_v30  ;;  %v386_v9 = vcombine.high %v17015_v36, %v17020_v39 }
 0x136   : > { %v369_v36 = vrot.slane %v355_v3, %v17002_v25  ;;  %v773_v39 = vrot.slane %v215_v6, %v17002_v25  ;;  %v824_v3 = vrot.slane %v16988_v11, %v17002_v25 }
 0x137   : > { %2655 = vxpose.xlu0.b32.start.end [1/1] (short) (narrow) %v616_v56, 8  ;;  %v684_v56 = vcombine.high %v17140_v51, %v20010_v37  ;;  %v747_v62 = vcombine.high %v17149_v58, %v20010_v37  ;;  %v400_v35 = vrot.slane %v386_v9, %v17006_v30 }
 0x139   : > { %1567 = vxpose.xlu1.b32.start.end [1/1] (short) (narrow) %v351_v32, 8  ;;  %v699_v32 = vrot.slane %v685_v53, %v17002_v25  ;;  %v216_v53 = vpop.trf.xlu0 }
 0x13a   : > { %v832_v6 = vcombine.high %v216_v53, %v20010_v37 }
 0x13b   : > { %2719 = vxpose.xlu0.b32.start.end [1/1] (short) (narrow) %v617_v63, 8  ;;  %v17162_v63 = vrot.slane %v716_v59, %v17006_v30  ;;  %v731_v2 = vcombine.low %v699_v32, %v714_v55  ;;  %v732_v17 = vcombine.high %v699_v32, %v714_v55  ;;  %v839_v32 = vrot.slane %v216_v53, %v17002_v25 }
 0x13c   : > { %v890_v53 = vrot.slane %v16990_v12, %v17002_v25 }
 0x13d   : > { %1631 = vxpose.xlu1.b32.start.end [1/1] (short) (narrow) %v352_v16, 8  ;;  %v384_v16 = vrot.slane %v370_v60, %v17002_v25  ;;  %v748_v4 = vcombine.high %v17162_v63, %v20010_v37 }
 0x13f   : > { %2783 = vxpose.xlu0.b32.start.end [1/1] (short) (narrow) %v618_v21, 8  ;;  %v418_v21 = vcombine.high %v400_v35, %v20010_v37  ;;  %v401_v23 = vcombine.low %v369_v36, %v384_v16 }
 0x141   : > { %1663 = vxpose.xlu1.b32.start.end [1/1] (short) (narrow) %v343_v27, 8  ;;  %v781_v27 = vcombine.low %v758_v20, %v773_v39  ;;  %v409_v34 = vrot.slane %v401_v23, %v17006_v30 }
 0x143   : > { %2847 = vxpose.xlu0.b32.start.end [1/1] (short) (narrow) %v681_v28, 8  ;;  %v17180_v28 = vrot.slane %v732_v17, %v17006_v30  ;;  %v17189_v47 = vrot.slane %v781_v27, %v17006_v30  ;;  %v419_v55 = vcombine.high %v409_v34, %v20010_v37  ;;  %v846_v17 = vrot.slane %v832_v6, %v17002_v25 }
 0x144   : > { %v436_v27 = vcombine.high %v17026_v43, %v20010_v37 }
 0x145   : > { %1727 = vxpose.xlu1.b32.start.end [1/1] (short) (narrow) %v350_v38, 8  ;;  %v402_v38 = vcombine.high %v369_v36, %v384_v16  ;;  %v750_v46 = vcombine.high %v17180_v28, %v20010_v37 }
 0x147   : > { %2911 = vxpose.xlu0.b32.start.end [1/1] (short) (narrow) %v682_v41, 8  ;;  %v782_v41 = vcombine.high %v758_v20, %v773_v39  ;;  %v416_v48 = vrot.slane %v402_v38, %v17006_v30  ;;  %v817_v39 = vcombine.high %v16988_v11, %v20010_v37  ;;  %v848_v20 = vcombine.high %v824_v3, %v839_v32 }
 0x149   : > { %1695 = vxpose.xlu1.b32.start.end [1/1] (short) (narrow) %v353_v7, 8  ;;  %v765_v7 = vrot.slane %v751_v33, %v17002_v25  ;;  %v17196_v52 = vrot.slane %v782_v41, %v17006_v30  ;;  %v831_v26 = vrot.slane %v817_v39, %v17002_v25  ;;  %v421_v33 = vcombine.high %v16978_v5, %v20010_v37  ;;  %v217_v41 = vpop.trf.xlu0 }
 0x14b   : > { %2975 = vxpose.xlu0.b32.start.end [1/1] (short) (narrow) %v683_v50, 8  ;;  %v797_v10 = vcombine.low %v765_v7, %v780_v40  ;;  %v813_v50 = vcombine.high %v17189_v47, %v20010_v37  ;;  %v798_v59 = vcombine.high %v765_v7, %v780_v40  ;;  %v814_v60 = vcombine.high %v17196_v52, %v20010_v37 }
 0x14c   : > { %v17236_v40 = vrot.slane %v848_v20, %v17006_v30  ;;  %v435_v7 = vrot.slane %v421_v33, %v17002_v25 }
 0x14d   : > { %1759 = vxpose.xlu1.b32.start.end [1/1] (short) (narrow) %v354_v54, 8  ;;  %v443_v54 = vrot.slane %v17026_v43, %v17002_v25  ;;  %v17207_v9 = vrot.slane %v797_v10, %v17006_v30  ;;  %v17216_v36 = vrot.slane %v798_v59, %v17006_v30  ;;  %v450_v43 = vrot.slane %v436_v27, %v17002_v25 }
 0x14e   : > { %v905_v10 = vrot.slane %v217_v41, %v17002_v25 }
 0x14f   : > { %3039 = vxpose.xlu0.b32.start.end [1/1] (short) (narrow) %v684_v56, 8  ;;  %v428_v56 = vrot.slane %v16978_v5, %v17002_v25  ;;  %v815_v16 = vcombine.high %v17207_v9, %v20010_v37  ;;  %v880_v5 = vcombine.high %v17236_v40, %v20010_v37 }
 0x150   : > { %v913_v59 = vcombine.low %v890_v53, %v905_v10  ;;  %v914_v6 = vcombine.high %v890_v53, %v905_v10 }
 0x151   : > { %1791 = vxpose.xlu1.b32.start.end [1/1] (short) (narrow) %v17030_v45, 8  ;;  %v17171_v45 = vrot.slane %v731_v2, %v17006_v30  ;;  %v451_v2 = vcombine.low %v428_v56, %v443_v54 }
 0x153   : > { %3103 = vxpose.xlu0.b32.start.end [1/1] (short) (narrow) %v747_v62, 8  ;;  %v749_v8 = vcombine.high %v17171_v45, %v20010_v37  ;;  %v420_v62 = vcombine.high %v416_v48, %v20010_v37 }
 0x155   : > { %1855 = vxpose.xlu1.b32.start.end [1/1] (short) (narrow) %v400_v35, 8  ;;  %v847_v35 = vcombine.low %v824_v3, %v839_v32  ;;  %v883_v3 = vcombine.high %v16990_v12, %v20010_v37 }
 0x157   : > { %3167 = vxpose.xlu0.b32.start.end [1/1] (short) (narrow) %v748_v4, 8  ;;  %v459_v4 = vrot.slane %v451_v2, %v17006_v30  ;;  %v17225_v23 = vrot.slane %v847_v35, %v17006_v30  ;;  %v897_v39 = vrot.slane %v883_v3, %v17002_v25 }
 0x159   : > { %1887 = vxpose.xlu1.b32.start.end [1/1] (short) (narrow) %v418_v21, 8  ;;  %v816_v21 = vcombine.high %v17216_v36, %v20010_v37  ;;  %v483_v11 = vcombine.high %v459_v4, %v20010_v37  ;;  %v879_v38 = vcombine.high %v17225_v23, %v20010_v37 }
 0x15b   : > { %3231 = vxpose.xlu0.b32.start.end [1/1] (short) (narrow) %v749_v8, 8  ;;  %v452_v8 = vcombine.high %v428_v56, %v443_v54  ;;  %v898_v56 = vcombine.high %v217_v41, %v20010_v37 }
 0x15d   : > { %1919 = vxpose.xlu1.b32.start.end [1/1] (short) (narrow) %v409_v34, 8  ;;  %v863_v34 = vcombine.low %v831_v26, %v846_v17  ;;  %v912_v2 = vrot.slane %v898_v56, %v17002_v25 }
 0x15f   : > { %3295 = vxpose.xlu0.b32.start.end [1/1] (short) (narrow) %v750_v46, 8  ;;  %v466_v46 = vrot.slane %v452_v8, %v17006_v30  ;;  %v929_v12 = vcombine.low %v897_v39, %v912_v2 }
 0x161   : > { %1983 = vxpose.xlu1.b32.start.end [1/1] (short) (narrow) %v416_v48, 8  ;;  %v864_v48 = vcombine.high %v831_v26, %v846_v17  ;;  %v484_v54 = vcombine.high %v466_v46, %v20010_v37  ;;  %v468_v17 = vcombine.high %v435_v7, %v450_v43  ;;  %v218_v26 = vpop.trf.xlu0 }
 0x162   : > { %v971_v8 = vrot.slane %v218_v26, %v17002_v25 }
 0x163   : > { %3359 = vxpose.xlu0.b32.start.end [1/1] (short) (narrow) %v813_v50, 8  ;;  %v17245_v50 = vrot.slane %v863_v34, %v17006_v30  ;;  %v482_v27 = vrot.slane %v468_v17, %v17006_v30  ;;  %v17277_v34 = vrot.slane %v929_v12, %v17006_v30  ;;  %v1022_v17 = vrot.slane %v16994_v14, %v17002_v25 }
 0x165   : > { %1951 = vxpose.xlu1.b32.start.end [1/1] (short) (narrow) %v419_v55, 8  ;;  %v467_v55 = vcombine.low %v435_v7, %v450_v43  ;;  %v881_v32 = vcombine.high %v17245_v50, %v20010_v37  ;;  %v486_v41 = vcombine.high %v482_v27, %v20010_v37  ;;  %v219_v7 = vpop.trf.xlu0 }
 0x166   : > { %v1030_v12 = vcombine.high %v219_v7, %v20010_v37 }
 0x167   : > { %3423 = vxpose.xlu0.b32.start.end [1/1] (short) (narrow) %v814_v60, 8  ;;  %v17254_v60 = vrot.slane %v864_v48, %v17006_v30  ;;  %v947_v48 = vcombine.high %v17277_v34, %v20010_v37 }
 0x169   : > { %2015 = vxpose.xlu1.b32.start.end [1/1] (short) (narrow) %v420_v62, 8  ;;  %v475_v62 = vrot.slane %v467_v55, %v17006_v30  ;;  %v882_v35 = vcombine.high %v17254_v60, %v20010_v37 }
 0x16b   : > { %3487 = vxpose.xlu0.b32.start.end [1/1] (short) (narrow) %v815_v16, 8  ;;  %v17263_v16 = vrot.slane %v913_v59, %v17006_v30 }
 0x16d   : > { %2047 = vxpose.xlu1.b32.start.end [1/1] (short) (narrow) %v459_v4, 8  ;;  %v485_v4 = vcombine.high %v475_v62, %v20010_v37  ;;  %v945_v20 = vcombine.high %v17263_v16, %v20010_v37 }
 0x16f   : > { %3551 = vxpose.xlu0.b32.start.end [1/1] (short) (narrow) %v816_v21, 8  ;;  %v17270_v21 = vrot.slane %v914_v6, %v17006_v30  ;;  %v1037_v6 = vrot.slane %v219_v7, %v17002_v25 }
 0x171   : > { %2079 = vxpose.xlu1.b32.start.end [1/1] (short) (narrow) %v483_v11, 8  ;;  %v930_v11 = vcombine.high %v897_v39, %v912_v2  ;;  %v946_v33 = vcombine.high %v17270_v21, %v20010_v37 }
 0x173   : > { %3615 = vxpose.xlu0.b32.start.end [1/1] (short) (narrow) %v879_v38, 8  ;;  %v956_v38 = vrot.slane %v16992_v13, %v17002_v25  ;;  %v17286_v10 = vrot.slane %v930_v11, %v17006_v30  ;;  %v1015_v11 = vcombine.high %v16994_v14, %v20010_v37 }
 0x175   : > { %2111 = vxpose.xlu1.b32.start.end [1/1] (short) (narrow) %v466_v46, 8  ;;  %v964_v46 = vcombine.high %v218_v26, %v20010_v37  ;;  %v979_v43 = vcombine.low %v956_v38, %v971_v8  ;;  %v948_v55 = vcombine.high %v17286_v10, %v20010_v37 }
 0x177   : > { %3679 = vxpose.xlu0.b32.start.end [1/1] (short) (narrow) %v880_v5, 8  ;;  %v949_v5 = vcombine.high %v16992_v13, %v20010_v37  ;;  %v978_v53 = vrot.slane %v964_v46, %v17002_v25  ;;  %v17295_v56 = vrot.slane %v979_v43, %v17006_v30 }
 0x179   : > { %2143 = vxpose.xlu1.b32.start.end [1/1] (short) (narrow) %v484_v54, 8  ;;  %v980_v54 = vcombine.high %v956_v38, %v971_v8  ;;  %v963_v59 = vrot.slane %v949_v5, %v17002_v25  ;;  %v1011_v13 = vcombine.high %v17295_v56, %v20010_v37  ;;  %v1044_v38 = vrot.slane %v1030_v12, %v17002_v25 }
 0x17b   : > { %3743 = vxpose.xlu0.b32.start.end [1/1] (short) (narrow) %v881_v32, 8  ;;  %v17298_v32 = vpop.trf.xlu0  ;;  %v995_v3 = vcombine.low %v963_v59, %v978_v53  ;;  %v996_v2 = vcombine.high %v963_v59, %v978_v53 }
 0x17d   : > { %2175 = vxpose.xlu1.b32.start.end [1/1] (short) (narrow) %v475_v62, 8 }
 0x17f   : > { %3807 = vxpose.xlu0.b32.start.end [1/1] (short) (narrow) %v882_v35, 8  ;;  %v17307_v35 = vpop.trf.xlu0 }
 0x181   : > { %2207 = vxpose.xlu1.b32.start.end [1/1] (short) (narrow) %v485_v4, 8 }
 0x183   : > { %3871 = vxpose.xlu0.b32.start.end [1/1] (short) (narrow) %v945_v20, 8  ;;  %v1045_v20 = vcombine.low %v1022_v17, %v1037_v6  ;;  %v17326_v8 = vpop.trf.xlu0 }
 0x185   : > { %2239 = vxpose.xlu1.b32.start.end [1/1] (short) (narrow) %v482_v27, 8  ;;  %v17333_v43 = vrot.slane %v1045_v20, %v17006_v30 }
 0x187   : > { %3935 = vxpose.xlu0.b32.start.end [1/1] (short) (narrow) %v946_v33, 8 }
 0x189   : > { %2271 = vxpose.xlu1.b32.start.end [1/1] (short) (narrow) %v486_v41, 8  ;;  %v1046_v41 = vcombine.high %v1022_v17, %v1037_v6 }
 0x18b   : > { %3999 = vxpose.xlu0.b32.start.end [1/1] (short) (narrow) %v947_v48, 8  ;;  %v1029_v48 = vrot.slane %v1015_v11, %v17002_v25  ;;  %v17344_v59 = vrot.slane %v1046_v41, %v17006_v30  ;;  %v1096_v41 = vcombine.high %v17298_v32, %v20010_v37 }
 0x18d   : > { %2303 = vxpose.xlu1.b32.start.end [1/1] (short) (narrow) %v17045_v61, 8  ;;  %v17304_v61 = vrot.slane %v980_v54, %v17006_v30  ;;  %v1061_v54 = vcombine.low %v1029_v48, %v1044_v38  ;;  %v1078_v17 = vcombine.high %v17344_v59, %v20010_v37 }
 0x18f   : > { %4063 = vxpose.xlu0.b32.start.end [1/1] (short) (narrow) %v948_v55, 8  ;;  %v1012_v4 = vcombine.high %v17304_v61, %v20010_v37  ;;  %v17356_v12 = vrot.slane %v1061_v54, %v17006_v30  ;;  %v1081_v54 = vcombine.high %v16996_v15, %v20010_v37 }
 0x191   : > { %v1295_v62 = vpop.trf.xlu1  ;;  %2367 = vxpose.xlu1.b32.start.end [1/1] (short) (narrow) %v17050_v0, 8  ;;  %v17313_v0 = vrot.slane %v995_v3, %v17006_v30 }
 0x193   : > { %4127 = vxpose.xlu0.b32.start.end [1/1] (short) (narrow) %v1011_v13, 8  ;;  %v1013_v27 = vcombine.high %v17313_v0, %v20010_v37 }
 0x195   : > { %v1359_v39 = vpop.trf.xlu1  ;;  %2431 = vxpose.xlu1.b32.start.end [1/1] (short) (narrow) %v17057_v18, 8  ;;  %v17322_v18 = vrot.slane %v996_v2, %v17006_v30 }
 0x196   : > { %v5375_v33 = vcombine.low %v1295_v62, %v1359_v39  ;;  %v1062_v39 = vcombine.high %v1029_v48, %v1044_v38 }
 0x197   : > { %4191 = vxpose.xlu0.b32.start.end [1/1] (short) (narrow) %v1012_v4, 8  ;;  %v1103_v4 = vrot.slane %v17298_v32, %v17002_v25 }
 0x198   : > { %v5382_v5 = vrot.slane %v5375_v33, %v17002_v25  ;;  %v17376_v48 = vrot.slane %v1062_v39, %v17006_v30 }
 0x199   : > { %v1327_v26 = vpop.trf.xlu1  ;;  %2495 = vxpose.xlu1.b32.start.end [1/1] (short) (narrow) %v17070_v29, 8  ;;  %v1014_v29 = vcombine.high %v17322_v18, %v20010_v37 }
 0x19b   : > { %4255 = vxpose.xlu0.b32.start.end [1/1] (short) (narrow) %v1013_v27, 8  ;;  %v17336_v14 = vpop.trf.xlu0  ;;  %v1088_v27 = vrot.slane %v16996_v15, %v17002_v25 }
 0x19d   : > { %v1391_v46 = vpop.trf.xlu1  ;;  %2559 = vxpose.xlu1.b32.start.end [1/1] (short) (narrow) %v17079_v42, 8  ;;  %v1077_v42 = vcombine.high %v17333_v43, %v20010_v37 }
 0x19e   : > { %v5383_v7 = vcombine.low %v1327_v26, %v1391_v46  ;;  %v1111_v46 = vcombine.low %v1088_v27, %v1103_v4 }
 0x19f   : > { %4319 = vxpose.xlu0.b32.start.end [1/1] (short) (narrow) %v1014_v29, 8 }
 0x1a0   : > { %v5390_v53 = vrot.slane %v5383_v7, %v17002_v25  ;;  %v1079_v7 = vcombine.high %v17356_v12, %v20010_v37 }
 0x1a1   : > { %v1423_v55 = vpop.trf.xlu1  ;;  %2623 = vxpose.xlu1.b32.start.end [1/1] (short) (narrow) %v17086_v49, 8 }
 0x1a2   : > { %v5407_v3 = vcombine.low %v5382_v5, %v5390_v53  ;;  %v5408_v62 = vcombine.high %v5382_v5, %v5390_v53 }
 0x1a3   : > { %4383 = vxpose.xlu0.b32.start.end [1/1] (short) (narrow) %v1077_v42, 8  ;;  %v17346_v13 = vpop.trf.xlu0 }
 0x1a4   : > { %v5415_v2 = vrot.slane %v5407_v3, %v17006_v30  ;;  %v5422_v6 = vrot.slane %v5408_v62, %v17006_v30  ;;  %v1112_v3 = vcombine.high %v1088_v27, %v1103_v4 }
 0x1a5   : > { %v1487_v49 = vpop.trf.xlu1  ;;  %2687 = vxpose.xlu1.b32.start.end [1/1] (short) (narrow) %v17097_v57, 8 }
 0x1a6   : > { %v16389_v20 = vcombine.low %v5415_v2, %v5422_v6  ;;  %v16391_v26 = vcombine.high %v5415_v2, %v5422_v6  ;;  %v5391_v42 = vcombine.low %v1423_v55, %v1487_v49  ;;  %v1080_v2 = vcombine.high %v17376_v48, %v20010_v37 }
 0x1a7   : > { %4447 = vxpose.xlu0.b32.start.end [1/1] (short) (narrow) %v1078_v17, 8  ;;  %v17360_v11 = vpop.trf.xlu0  ;;  %v17391_v6 = vrot.slane %v1111_v46, %v17006_v30  ;;  %v1095_v17 = vrot.slane %v1081_v54, %v17002_v25  ;;  %v17404_v27 = vrot.slane %v1112_v3, %v17006_v30 }
 0x1a8   : > { %v17363_v33 = vrot.slane %v16389_v20, %v17002_v25  ;;  %v17366_v38 = vrot.slane %v16391_v26, %v17002_v25  ;;  %v5398_v55 = vrot.slane %v5391_v42, %v17002_v25 }
 0x1a9   : > { %v1455_v29 = vpop.trf.xlu1  ;;  %2751 = vxpose.xlu1.b32.start.end [1/1] (short) (narrow) %v17108_v1, 8  ;;  %v1110_v1 = vrot.slane %v1096_v41, %v17002_v25  ;;  %v1143_v26 = vcombine.high %v17391_v6, %v20010_v37  ;;  %v1144_v3 = vcombine.high %v17404_v27, %v20010_v37 }
 0x1ab   : > { %4511 = vxpose.xlu0.b32.start.end [1/1] (short) (narrow) %v1079_v7, 8  ;;  %v17384_v32 = vpop.trf.xlu0  ;;  %v1128_v42 = vcombine.high %v1095_v17, %v1110_v1 }
 0x1ad   : > { %v1519_v62 = vpop.trf.xlu1  ;;  %2815 = vxpose.xlu1.b32.start.end [1/1] (short) (narrow) %v17117_v22, 8  ;;  %v1127_v22 = vcombine.low %v1095_v17, %v1110_v1 }
 0x1ae   : > { %v5399_v39 = vcombine.low %v1455_v29, %v1519_v62  ;;  %v1169_v62 = vrot.slane %v17307_v35, %v17002_v25 }
 0x1af   : > { %4575 = vxpose.xlu0.b32.start.end [1/1] (short) (narrow) %v1080_v2, 8  ;;  %v17394_v15 = vpop.trf.xlu0  ;;  %v17416_v2 = vrot.slane %v1127_v22, %v17006_v30  ;;  %v1162_v22 = vcombine.high %v17307_v35, %v20010_v37 }
 0x1b0   : > { %v5406_v49 = vrot.slane %v5399_v39, %v17002_v25 }
 0x1b1   : > { %v1551_v20 = vpop.trf.xlu1  ;;  %2879 = vxpose.xlu1.b32.start.end [1/1] (short) (narrow) %v17124_v31, 8 }
 0x1b2   : > { %v5423_v41 = vcombine.low %v5398_v55, %v5406_v49  ;;  %v5424_v46 = vcombine.high %v5398_v55, %v5406_v49  ;;  %v1154_v49 = vrot.slane %v16998_v19, %v17002_v25 }
 0x1b3   : > { %4639 = vxpose.xlu0.b32.start.end [1/1] (short) (narrow) %v1143_v26, 8  ;;  %v17406_v29 = vpop.trf.xlu0 }
 0x1b4   : > { %v5431_v7 = vrot.slane %v5423_v41, %v17006_v30  ;;  %v5438_v54 = vrot.slane %v5424_v46, %v17006_v30  ;;  %v1177_v41 = vcombine.low %v1154_v49, %v1169_v62  ;;  %v1178_v5 = vcombine.high %v1154_v49, %v1169_v62 }
 0x1b5   : > { %v1615_v31 = vpop.trf.xlu1  ;;  %2943 = vxpose.xlu1.b32.start.end [1/1] (short) (narrow) %v17131_v44, 8 }
 0x1b6   : > { %v16390_v39 = vcombine.low %v5431_v7, %v5438_v54  ;;  %v16392_v55 = vcombine.high %v5431_v7, %v5438_v54  ;;  %v1145_v7 = vcombine.high %v17416_v2, %v20010_v37  ;;  %v17436_v54 = vrot.slane %v1128_v42, %v17006_v30 }
 0x1b7   : > { %4703 = vxpose.xlu0.b32.start.end [1/1] (short) (narrow) %v1144_v3, 8  ;;  %v17420_v26 = vpop.trf.xlu0  ;;  %v5443_v53 = vcombine.low %v1551_v20, %v1615_v31  ;;  %v17451_v3 = vrot.slane %v1177_v41, %v17006_v30 }
 0x1b8   : > { %v17425_v17 = vrot.slane %v16390_v39, %v17002_v25  ;;  %v17428_v44 = vrot.slane %v16392_v55, %v17002_v25  ;;  %v1147_v55 = vcombine.high %v16998_v19, %v20010_v37  ;;  %v1146_v42 = vcombine.high %v17436_v54, %v20010_v37 }
 0x1b9   : > { %v1583_v46 = vpop.trf.xlu1  ;;  %3007 = vxpose.xlu1.b32.start.end [1/1] (short) (narrow) %v17140_v51, 8  ;;  %v1176_v51 = vrot.slane %v1162_v22, %v17002_v25  ;;  %v5450_v20 = vrot.slane %v5443_v53, %v17002_v25  ;;  %v1209_v22 = vcombine.high %v17451_v3, %v20010_v37 }
 0x1ba   : > { %20248 = vst [vmem:[#allocation19_spill] sm:$0xff] %v17425_v17  ;;  %20249 = vst [vmem:[#allocation20_spill] sm:$0xff] %v17428_v44  ;;  %v1161_v4 = vrot.slane %v1147_v55, %v17002_v25 }
 0x1bb   : > { %4767 = vxpose.xlu0.b32.start.end [1/1] (short) (narrow) %v1145_v7, 8  ;;  %v17444_v35 = vpop.trf.xlu0 }
 0x1bc   : > { %v1194_v55 = vcombine.high %v1161_v4, %v1176_v51 }
 0x1bd   : > { %v1647_v1 = vpop.trf.xlu1  ;;  %3071 = vxpose.xlu1.b32.start.end [1/1] (short) (narrow) %v17149_v58, 8  ;;  %v1193_v58 = vcombine.low %v1161_v4, %v1176_v51  ;;  %v1213_v4 = vcombine.high %v17000_v24, %v20010_v37 }
 0x1be   : > { %v5451_v39 = vcombine.low %v1583_v46, %v1647_v1  ;;  %v17464_v1 = vrot.slane %v1178_v5, %v17006_v30 }
 0x1bf   : > { %4831 = vxpose.xlu0.b32.start.end [1/1] (short) (narrow) %v1146_v42, 8  ;;  %v17454_v19 = vpop.trf.xlu0  ;;  %v1235_v42 = vrot.slane %v17326_v8, %v17002_v25  ;;  %v17476_v62 = vrot.slane %v1193_v58, %v17006_v30  ;;  %v1228_v58 = vcombine.high %v17326_v8, %v20010_v37 }
 0x1c0   : > { %v5458_v31 = vrot.slane %v5451_v39, %v17002_v25  ;;  %v1210_v5 = vcombine.high %v17464_v1, %v20010_v37 }
 0x1c1   : > { %v1679_v49 = vpop.trf.xlu1  ;;  %3135 = vxpose.xlu1.b32.start.end [1/1] (short) (narrow) %v17162_v63, 8 }
 0x1c2   : > { %v5475_v41 = vcombine.low %v5450_v20, %v5458_v31  ;;  %v5476_v46 = vcombine.high %v5450_v20, %v5458_v31 }
 0x1c3   : > { %4895 = vxpose.xlu0.b32.start.end [1/1] (short) (narrow) %v1209_v22, 8  ;;  %v17466_v7 = vpop.trf.xlu0  ;;  %v1220_v22 = vrot.slane %v17000_v24, %v17002_v25 }
 0x1c4   : > { %v5483_v53 = vrot.slane %v5475_v41, %v17006_v30  ;;  %v5490_v39 = vrot.slane %v5476_v46, %v17006_v30 }
 0x1c5   : > { %v1743_v63 = vpop.trf.xlu1  ;;  %3199 = vxpose.xlu1.b32.start.end [1/1] (short) (narrow) %v17171_v45, 8  ;;  %v1243_v46 = vcombine.low %v1220_v22, %v1235_v42  ;;  %v1244_v44 = vcombine.high %v1220_v22, %v1235_v42 }
 0x1c6   : > { %v16393_v20 = vcombine.low %v5483_v53, %v5490_v39  ;;  %v16395_v31 = vcombine.high %v5483_v53, %v5490_v39  ;;  %v1211_v39 = vcombine.high %v17476_v62, %v20010_v37  ;;  %v5459_v57 = vcombine.low %v1679_v49, %v1743_v63 }
 0x1c7   : > { %4959 = vxpose.xlu0.b32.start.end [1/1] (short) (narrow) %v1210_v5, 8  ;;  %v17480_v41 = vpop.trf.xlu0  ;;  %v17496_v5 = vrot.slane %v1194_v55, %v17006_v30 }
 0x1c8   : > { %v17485_v51 = vrot.slane %v16393_v20, %v17002_v25  ;;  %v17488_v45 = vrot.slane %v16395_v31, %v17002_v25  ;;  %v17511_v20 = vrot.slane %v1243_v46, %v17006_v30  ;;  %v5466_v49 = vrot.slane %v5459_v57, %v17002_v25 }
 0x1c9   : > { %v1711_v53 = vpop.trf.xlu1  ;;  %3263 = vxpose.xlu1.b32.start.end [1/1] (short) (narrow) %v17180_v28, 8  ;;  %v1242_v28 = vrot.slane %v1228_v58, %v17002_v25  ;;  %v1212_v55 = vcombine.high %v17496_v5, %v20010_v37 }
 0x1ca   : > { %20250 = vst [vmem:[#allocation21_spill] sm:$0xff] %v17485_v51  ;;  %20251 = vst [vmem:[#allocation22_spill] sm:$0xff] %v17488_v45  ;;  %v1227_v45 = vrot.slane %v1213_v4, %v17002_v25  ;;  %v1275_v58 = vcombine.high %v17511_v20, %v20010_v37 }
 0x1cb   : > { %5023 = vxpose.xlu0.b32.start.end [1/1] (short) (narrow) %v1211_v39, 8  ;;  %v17504_v8 = vpop.trf.xlu0 }
 0x1cd   : > { %v1775_v17 = vpop.trf.xlu1  ;;  %3327 = vxpose.xlu1.b32.start.end [1/1] (short) (narrow) %v17189_v47, 8  ;;  %v1259_v47 = vcombine.low %v1227_v45, %v1242_v28 }
 0x1ce   : > { %v5467_v31 = vcombine.low %v1711_v53, %v1775_v17  ;;  %v17524_v17 = vrot.slane %v1244_v44, %v17006_v30 }
 0x1cf   : > { %5087 = vxpose.xlu0.b32.start.end [1/1] (short) (narrow) %v1212_v55, 8  ;;  %v17514_v24 = vpop.trf.xlu0  ;;  %v17534_v42 = vrot.slane %v1259_v47, %v17006_v30 }
 0x1d0   : > { %v5474_v63 = vrot.slane %v5467_v31, %v17002_v25  ;;  %v1260_v31 = vcombine.high %v1227_v45, %v1242_v28 }
 0x1d1   : > { %v1807_v22 = vpop.trf.xlu1  ;;  %3391 = vxpose.xlu1.b32.start.end [1/1] (short) (narrow) %v17196_v52, 8  ;;  %v1276_v52 = vcombine.high %v17524_v17, %v20010_v37  ;;  %v1277_v47 = vcombine.high %v17534_v42, %v20010_v37 }
 0x1d2   : > { %v5491_v4 = vcombine.low %v5466_v49, %v5474_v63  ;;  %v5492_v46 = vcombine.high %v5466_v49, %v5474_v63 }
 0x1d3   : > { %5151 = vxpose.xlu0.b32.start.end [1/1] (short) (narrow) %v1275_v58, 8  ;;  %v17526_v53 = vpop.trf.xlu0 }
 0x1d4   : > { %v5499_v57 = vrot.slane %v5491_v4, %v17006_v30  ;;  %v5506_v39 = vrot.slane %v5492_v46, %v17006_v30  ;;  %v17550_v4 = vrot.slane %v1260_v31, %v17006_v30 }
 0x1d5   : > { %v1871_v55 = vpop.trf.xlu1  ;;  %3455 = vxpose.xlu1.b32.start.end [1/1] (short) (narrow) %v17207_v9, 8 }
 0x1d6   : > { %v16394_v44 = vcombine.low %v5499_v57, %v5506_v39  ;;  %v16396_v51 = vcombine.high %v5499_v57, %v5506_v39  ;;  %v5511_v63 = vcombine.low %v1807_v22, %v1871_v55  ;;  %v1278_v31 = vcombine.high %v17550_v4, %v20010_v37  ;;  %v17566_v57 = vld [vmem:[%s16967_s5 + $0x8] sm:$0xff]  ;;  %s20041_s5 = smov 40  }
 0x1d7   : > { %5215 = vxpose.xlu0.b32.start.end [1/1] (short) (narrow) %v1276_v52, 8  ;;  %v17536_v49 = vpop.trf.xlu0 }
 0x1d8   : > { %v17541_v45 = vrot.slane %v16394_v44, %v17002_v25  ;;  %v17544_v9 = vrot.slane %v16396_v51, %v17002_v25  ;;  %v5518_v51 = vrot.slane %v5511_v63, %v17002_v25 }
 0x1d9   : > { %v1903_v28 = vpop.trf.xlu1  ;;  %3519 = vxpose.xlu1.b32.start.end [1/1] (short) (narrow) %v17216_v36, 8 }
 0x1da   : > { %v5519_v22 = vcombine.low %v17336_v14, %v1903_v28 }
 0x1db   : > { %5279 = vxpose.xlu0.b32.start.end [1/1] (short) (narrow) %v1277_v47, 8 }
 0x1dc   : > { %v5526_v36 = vrot.slane %v5519_v22, %v17002_v25  ;;  %v17568_v22 = vpop.trf.xlu0 }
 0x1dd   : > { %v1935_v39 = vpop.trf.xlu1  ;;  %3583 = vxpose.xlu1.b32.start.end [1/1] (short) (narrow) %v17225_v23, 8 }
 0x1de   : > { %v5543_v55 = vcombine.low %v5518_v51, %v5526_v36  ;;  %v5544_v14 = vcombine.high %v5518_v51, %v5526_v36 }
 0x1df   : > { %5343 = vxpose.xlu0.b32.start.end [1/1] (short) (narrow) %v1278_v31, 8 }
 0x1e0   : > { %v5551_v52 = vrot.slane %v5543_v55, %v17006_v30  ;;  %v5558_v44 = vrot.slane %v5544_v14, %v17006_v30 }
 0x1e1   : > { %v1999_v28 = vpop.trf.xlu1  ;;  %3647 = vxpose.xlu1.b32.start.end [1/1] (short) (narrow) %v17236_v40, 8 }
 0x1e2   : > { %v16397_v47 = vcombine.low %v5551_v52, %v5558_v44  ;;  %v16399_v63 = vcombine.high %v5551_v52, %v5558_v44  ;;  %v5527_v55 = vcombine.low %v1935_v39, %v1999_v28 }
 0x1e3   : > { %8250 = vxpose.xlu0.b32.start.end [1/1] (short) %v17566_v57, 128 }
 0x1e4   : > { %v17572_v23 = vrot.slane %v16397_v47, %v17002_v25  ;;  %v17575_v51 = vrot.slane %v16399_v63, %v17002_v25  ;;  %v5534_v44 = vrot.slane %v5527_v55, %v17002_v25 }
 0x1e5   : > { %v1967_v36 = vpop.trf.xlu1  ;;  %3711 = vxpose.xlu1.b32.start.end [1/1] (short) (narrow) %v17245_v50, 8 }
 0x1e9   : > { %v2031_v14 = vpop.trf.xlu1  ;;  %3775 = vxpose.xlu1.b32.start.end [1/1] (short) (narrow) %v17254_v60, 8 }
 0x1ea   : > { %v5535_v52 = vcombine.low %v1967_v36, %v2031_v14 }
 0x1ec   : > { %v5542_v47 = vrot.slane %v5535_v52, %v17002_v25 }
 0x1ed   : > { %v2063_v63 = vpop.trf.xlu1  ;;  %3839 = vxpose.xlu1.b32.start.end [1/1] (short) (narrow) %v17263_v16, 8 }
 0x1ee   : > { %v5559_v46 = vcombine.low %v5534_v44, %v5542_v47  ;;  %v5560_v50 = vcombine.high %v5534_v44, %v5542_v47 }
 0x1f0   : > { %v5567_v37 = vrot.slane %v5559_v46, %v17006_v30  ;;  %v5574_v40 = vrot.slane %v5560_v50, %v17006_v30 }
 0x1f1   : > { %v2095_v58 = vpop.trf.xlu1  ;;  %3903 = vxpose.xlu1.b32.start.end [1/1] (short) (narrow) %v17270_v21, 8 }
 0x1f2   : > { %v16398_v39 = vcombine.low %v5567_v37, %v5574_v40  ;;  %v16400_v28 = vcombine.high %v5567_v37, %v5574_v40 }
 0x1f4   : > { %v17590_v60 = vrot.slane %v16398_v39, %v17002_v25  ;;  %v17593_v36 = vrot.slane %v16400_v28, %v17002_v25 }
 0x1f5   : > { %v2127_v55 = vpop.trf.xlu1  ;;  %3967 = vxpose.xlu1.b32.start.end [1/1] (short) (narrow) %v17277_v34, 8 }
 0x1f6   : > { %v5579_v14 = vcombine.low %v2063_v63, %v2127_v55 }
 0x1f8   : > { %v5586_v21 = vrot.slane %v5579_v14, %v17002_v25 }
 0x1f9   : > { %v2159_v52 = vpop.trf.xlu1  ;;  %4031 = vxpose.xlu1.b32.start.end [1/1] (short) (narrow) %v17286_v10, 8 }
 0x1fa   : > { %v5587_v37 = vcombine.low %v2095_v58, %v2159_v52 }
 0x1fc   : > { %v5594_v40 = vrot.slane %v5587_v37, %v17002_v25 }
 0x1fd   : > { %v2191_v44 = vpop.trf.xlu1  ;;  %4095 = vxpose.xlu1.b32.start.end [1/1] (short) (narrow) %v17295_v56, 8  ;;  %v17614_v56 = vpop.trf.xlu0 }
 0x1fe   : > { %v5611_v47 = vcombine.low %v5586_v21, %v5594_v40  ;;  %v5612_v34 = vcombine.high %v5586_v21, %v5594_v40 }
 0x200   : > { %v5619_v50 = vrot.slane %v5611_v47, %v17006_v30  ;;  %v5626_v39 = vrot.slane %v5612_v34, %v17006_v30 }
 0x201   : > { %v2223_v28 = vpop.trf.xlu1  ;;  %4159 = vxpose.xlu1.b32.start.end [1/1] (short) (narrow) %v17304_v61, 8  ;;  %v17621_v47 = vpop.trf.xlu0 }
 0x202   : > { %v16401_v63 = vcombine.low %v5619_v50, %v5626_v39  ;;  %v16403_v55 = vcombine.high %v5619_v50, %v5626_v39  ;;  %20252 = vst [vmem:[#allocation23_spill] sm:$0xff] %v17621_v47 }
 0x204   : > { %v17608_v10 = vrot.slane %v16401_v63, %v17002_v25  ;;  %v17611_v58 = vrot.slane %v16403_v55, %v17002_v25 }
 0x205   : > { %v2255_v14 = vpop.trf.xlu1  ;;  %4223 = vxpose.xlu1.b32.start.end [1/1] (short) (narrow) %v17313_v0, 8 }
 0x206   : > { %v5595_v61 = vcombine.low %v2191_v44, %v2255_v14 }
 0x208   : > { %v5602_v34 = vrot.slane %v5595_v61, %v17002_v25 }
 0x209   : > { %v2287_v21 = vpop.trf.xlu1  ;;  %4287 = vxpose.xlu1.b32.start.end [1/1] (short) (narrow) %v17322_v18, 8  ;;  %v17629_v18 = vpop.trf.xlu0 }
 0x20a   : > { %v5603_v40 = vcombine.low %v2223_v28, %v2287_v21  ;;  %20253 = vst [vmem:[#allocation24_spill] sm:$0xff] %v17629_v18 }
 0x20c   : > { %v5610_v50 = vrot.slane %v5603_v40, %v17002_v25 }
 0x20d   : > { %v2319_v0 = vpop.trf.xlu1  ;;  %4351 = vxpose.xlu1.b32.start.end [1/1] (short) (narrow) %v17333_v43, 8  ;;  %v20254_v43 = vcombine.low %v17346_v13, %v17360_v11 }
 0x20e   : > { %v5627_v39 = vcombine.low %v5602_v34, %v5610_v50  ;;  %v5628_v63 = vcombine.high %v5602_v34, %v5610_v50 }
 0x20f   : > { %v5662_v34 = vrot.slane %v20254_v43, %v17002_v25 }
 0x210   : > { %v5635_v55 = vrot.slane %v5627_v39, %v17006_v30  ;;  %v5642_v37 = vrot.slane %v5628_v63, %v17006_v30 }
 0x211   : > { %v2383_v44 = vpop.trf.xlu1  ;;  %4415 = vxpose.xlu1.b32.start.end [1/1] (short) (narrow) %v17344_v59, 8 }
 0x212   : > { %v16402_v28 = vcombine.low %v5635_v55, %v5642_v37  ;;  %v16404_v14 = vcombine.high %v5635_v55, %v5642_v37  ;;  %v5647_v21 = vcombine.low %v2319_v0, %v2383_v44  ;;  %v17647_v55 = vpop.trf.xlu0 }
 0x213   : > { %20255 = vst [vmem:[#allocation25_spill] sm:$0xff] %v17647_v55 }
 0x214   : > { %v17632_v61 = vrot.slane %v16402_v28, %v17002_v25  ;;  %v17635_v40 = vrot.slane %v16404_v14, %v17002_v25  ;;  %v5654_v50 = vrot.slane %v5647_v21, %v17002_v25 }
 0x215   : > { %v2447_v39 = vpop.trf.xlu1  ;;  %4479 = vxpose.xlu1.b32.start.end [1/1] (short) (narrow) %v17356_v12, 8 }
 0x216   : > { %v5679_v59 = vcombine.low %v5654_v50, %v5662_v34  ;;  %v5680_v63 = vcombine.high %v5654_v50, %v5662_v34  ;;  %v20256_v34 = vcombine.low %v17384_v32, %v17394_v15 }
 0x218   : > { %v5687_v44 = vrot.slane %v5679_v59, %v17006_v30  ;;  %v5694_v13 = vrot.slane %v5680_v63, %v17006_v30  ;;  %v5678_v50 = vrot.slane %v20256_v34, %v17002_v25 }
 0x219   : > { %v2511_v11 = vpop.trf.xlu1  ;;  %4543 = vxpose.xlu1.b32.start.end [1/1] (short) (narrow) %v17376_v48, 8  ;;  %v17664_v48 = vpop.trf.xlu0 }
 0x21a   : > { %v16405_v28 = vcombine.low %v5687_v44, %v5694_v13  ;;  %v16407_v14 = vcombine.high %v5687_v44, %v5694_v13  ;;  %v5663_v12 = vcombine.low %v2447_v39, %v2511_v11  ;;  %20257 = vst [vmem:[#allocation26_spill] sm:$0xff] %v17664_v48 }
 0x21c   : > { %v17653_v21 = vrot.slane %v16405_v28, %v17002_v25  ;;  %v17656_v43 = vrot.slane %v16407_v14, %v17002_v25  ;;  %v5670_v59 = vrot.slane %v5663_v12, %v17002_v25 }
 0x21d   : > { %v2575_v63 = vpop.trf.xlu1  ;;  %4607 = vxpose.xlu1.b32.start.end [1/1] (short) (narrow) %v17391_v6, 8  ;;  %v17673_v34 = vpop.trf.xlu0 }
 0x21e   : > { %v5695_v44 = vcombine.low %v5670_v59, %v5678_v50  ;;  %v5696_v39 = vcombine.high %v5670_v59, %v5678_v50  ;;  %20258 = vst [vmem:[#allocation27_spill] sm:$0xff] %v17673_v34 }
 0x220   : > { %v5703_v28 = vrot.slane %v5695_v44, %v17006_v30  ;;  %v5710_v32 = vrot.slane %v5696_v39, %v17006_v30  ;;  %v20259_v44 = vcombine.low %v17406_v29, %v17420_v26 }
 0x221   : > { %v2639_v15 = vpop.trf.xlu1  ;;  %4671 = vxpose.xlu1.b32.start.end [1/1] (short) (narrow) %v17404_v27, 8  ;;  %v17694_v29 = vpop.trf.xlu0 }
 0x222   : > { %v16406_v14 = vcombine.low %v5703_v28, %v5710_v32  ;;  %v16408_v12 = vcombine.high %v5703_v28, %v5710_v32  ;;  %v5715_v6 = vcombine.low %v2575_v63, %v2639_v15  ;;  %v5730_v11 = vrot.slane %v20259_v44, %v17002_v25  ;;  %20260 = vst [vmem:[#allocation28_spill] sm:$0xff] %v17694_v29 }
 0x224   : > { %v17676_v50 = vrot.slane %v16406_v14, %v17002_v25  ;;  %v17679_v59 = vrot.slane %v16408_v12, %v17002_v25  ;;  %v5722_v39 = vrot.slane %v5715_v6, %v17002_v25 }
 0x225   : > { %v2703_v13 = vpop.trf.xlu1  ;;  %4735 = vxpose.xlu1.b32.start.end [1/1] (short) (narrow) %v17416_v2, 8 }
 0x226   : > { %v5747_v27 = vcombine.low %v5722_v39, %v5730_v11  ;;  %v5748_v63 = vcombine.high %v5722_v39, %v5730_v11  ;;  %v20261_v39 = vcombine.low %v17444_v35, %v17454_v19 }
 0x228   : > { %v5755_v15 = vrot.slane %v5747_v27, %v17006_v30  ;;  %v5762_v14 = vrot.slane %v5748_v63, %v17006_v30  ;;  %v5746_v27 = vrot.slane %v20261_v39, %v17002_v25 }
 0x229   : > { %v2767_v12 = vpop.trf.xlu1  ;;  %4799 = vxpose.xlu1.b32.start.end [1/1] (short) (narrow) %v17436_v54, 8 }
 0x22a   : > { %v16409_v26 = vcombine.low %v5755_v15, %v5762_v14  ;;  %v16411_v6 = vcombine.high %v5755_v15, %v5762_v14  ;;  %v5731_v2 = vcombine.low %v2703_v13, %v2767_v12  ;;  %v17712_v14 = vpop.trf.xlu0 }
 0x22b   : > { %20262 = vst [vmem:[#allocation29_spill] sm:$0xff] %v17712_v14 }
 0x22c   : > { %v17697_v11 = vrot.slane %v16409_v26, %v17002_v25  ;;  %v17700_v44 = vrot.slane %v16411_v6, %v17002_v25  ;;  %v5738_v63 = vrot.slane %v5731_v2, %v17002_v25 }
 0x22d   : > { %v2831_v32 = vpop.trf.xlu1  ;;  %4863 = vxpose.xlu1.b32.start.end [1/1] (short) (narrow) %v17451_v3, 8 }
 0x22e   : > { %v5763_v54 = vcombine.low %v5738_v63, %v5746_v27  ;;  %v5764_v28 = vcombine.high %v5738_v63, %v5746_v27  ;;  %v20263_v27 = vcombine.low %v17466_v7, %v17480_v41 }
 0x230   : > { %v5771_v12 = vrot.slane %v5763_v54, %v17006_v30  ;;  %v5778_v35 = vrot.slane %v5764_v28, %v17006_v30  ;;  %v5798_v63 = vrot.slane %v20263_v27, %v17002_v25 }
 0x231   : > { %v2895_v19 = vpop.trf.xlu1  ;;  %4927 = vxpose.xlu1.b32.start.end [1/1] (short) (narrow) %v17464_v1, 8  ;;  %v17729_v1 = vpop.trf.xlu0 }
 0x232   : > { %v16410_v26 = vcombine.low %v5771_v12, %v5778_v35  ;;  %v16412_v6 = vcombine.high %v5771_v12, %v5778_v35  ;;  %v5783_v3 = vcombine.low %v2831_v32, %v2895_v19  ;;  %20264 = vst [vmem:[#allocation30_spill] sm:$0xff] %v17729_v1 }
 0x234   : > { %v17718_v2 = vrot.slane %v16410_v26, %v17002_v25  ;;  %v17721_v39 = vrot.slane %v16412_v6, %v17002_v25  ;;  %v5790_v54 = vrot.slane %v5783_v3, %v17002_v25 }
 0x235   : > { %v2959_v28 = vpop.trf.xlu1  ;;  %4991 = vxpose.xlu1.b32.start.end [1/1] (short) (narrow) %v17476_v62, 8  ;;  %v17738_v27 = vpop.trf.xlu0 }
 0x236   : > { %v5815_v12 = vcombine.low %v5790_v54, %v5798_v63  ;;  %v5816_v32 = vcombine.high %v5790_v54, %v5798_v63  ;;  %20265 = vst [vmem:[#allocation31_spill] sm:$0xff] %v17738_v27 }
 0x238   : > { %v5823_v26 = vrot.slane %v5815_v12, %v17006_v30  ;;  %v5830_v7 = vrot.slane %v5816_v32, %v17006_v30  ;;  %v20267_v12 = vcombine.low %v17504_v8, %v17514_v24 }
 0x239   : > { %v3023_v41 = vpop.trf.xlu1  ;;  %5055 = vxpose.xlu1.b32.start.end [1/1] (short) (narrow) %v17496_v5, 8  ;;  %v17759_v8 = vpop.trf.xlu0 }
 0x23a   : > { %v16413_v6 = vcombine.low %v5823_v26, %v5830_v7  ;;  %v16415_v3 = vcombine.high %v5823_v26, %v5830_v7  ;;  %v5799_v62 = vcombine.low %v2959_v28, %v3023_v41  ;;  %v5814_v19 = vrot.slane %v20267_v12, %v17002_v25  ;;  %20268 = vst [vmem:[#allocation33_spill] sm:$0xff] %v17759_v8 }
 0x23c   : > { %v17741_v63 = vrot.slane %v16413_v6, %v17002_v25  ;;  %v17744_v54 = vrot.slane %v16415_v3, %v17002_v25  ;;  %v5806_v32 = vrot.slane %v5799_v62, %v17002_v25 }
 0x23d   : > { %v3087_v35 = vpop.trf.xlu1  ;;  %5119 = vxpose.xlu1.b32.start.end [1/1] (short) (narrow) %v17511_v20, 8 }
 0x23e   : > { %20266 = vst [vmem:[#allocation32_spill] sm:$0xff] %v17744_v54  ;;  %v5831_v5 = vcombine.low %v5806_v32, %v5814_v19  ;;  %v5832_v28 = vcombine.high %v5806_v32, %v5814_v19  ;;  %v20271_v32 = vcombine.low %v17526_v53, %v17536_v49  ;;  %v5875_v49 = vcombine.low %v17568_v22, %v17614_v56 }
 0x240   : > { %v5839_v41 = vrot.slane %v5831_v5, %v17006_v30  ;;  %v5846_v6 = vrot.slane %v5832_v28, %v17006_v30  ;;  %v5866_v5 = vrot.slane %v20271_v32, %v17002_v25 }
 0x241   : > { %v3151_v3 = vpop.trf.xlu1  ;;  %5183 = vxpose.xlu1.b32.start.end [1/1] (short) (narrow) %v17524_v17, 8 }
 0x242   : > { %v16414_v24 = vcombine.low %v5839_v41, %v5846_v6  ;;  %v16416_v62 = vcombine.high %v5839_v41, %v5846_v6  ;;  %v5851_v20 = vcombine.low %v3087_v35, %v3151_v3  ;;  %v17777_v6 = vpop.trf.xlu0 }
 0x243   : > { %20272 = vst [vmem:[#allocation36_spill] sm:$0xff] %v17777_v6 }
 0x244   : > { %v17762_v19 = vrot.slane %v16414_v24, %v17002_v25  ;;  %v17765_v12 = vrot.slane %v16416_v62, %v17002_v25  ;;  %v5858_v28 = vrot.slane %v5851_v20, %v17002_v25 }
 0x245   : > { %v3215_v7 = vpop.trf.xlu1  ;;  %5247 = vxpose.xlu1.b32.start.end [1/1] (short) (narrow) %v17534_v42, 8  ;;  %v8248_v42 = vcombine.high %v17566_v57, %v17566_v57 }
 0x246   : > { %20269 = vst [vmem:[#allocation34_spill] sm:$0xff] %v17762_v19  ;;  %20270 = vst [vmem:[#allocation35_spill] sm:$0xff] %v17765_v12  ;;  %v5883_v17 = vcombine.low %v5858_v28, %v5866_v5  ;;  %v5884_v26 = vcombine.high %v5858_v28, %v5866_v5 }
 0x248   : > { %v5891_v3 = vrot.slane %v5883_v17, %v17006_v30  ;;  %v5898_v53 = vrot.slane %v5884_v26, %v17006_v30  ;;  %v5882_v26 = vrot.slane %v5875_v49, %v17002_v25 }
 0x249   : > { %v3279_v24 = vpop.trf.xlu1  ;;  %5311 = vxpose.xlu1.b32.start.end [1/1] (short) (narrow) %v17550_v4, 8  ;;  %v17796_v4 = vpop.trf.xlu0 }
 0x24a   : > { %v16417_v62 = vcombine.low %v5891_v3, %v5898_v53  ;;  %v16419_v20 = vcombine.high %v5891_v3, %v5898_v53  ;;  %v5867_v32 = vcombine.low %v3215_v7, %v3279_v24  ;;  %20275 = vst [vmem:[#allocation39_spill] sm:$0xff] %v17796_v4 }
 0x24c   : > { %v17787_v5 = vrot.slane %v16417_v62, %v17002_v25  ;;  %v17790_v28 = vrot.slane %v16419_v20, %v17002_v25  ;;  %v5874_v17 = vrot.slane %v5867_v32, %v17002_v25 }
 0x24d   : > { %v17794_v22 = vpop.trf.xlu1  ;;  %8282 = vxpose.xlu1.b32.start.end [1/1] (short) %v8248_v42, 128  ;;  %v17806_v32 = vpop.trf.xlu0 }
 0x24e   : > { %20273 = vst [vmem:[#allocation37_spill] sm:$0xff] %v17787_v5  ;;  %20274 = vst [vmem:[#allocation38_spill] sm:$0xff] %v17790_v28  ;;  %v5899_v56 = vcombine.low %v5874_v17, %v5882_v26  ;;  %v5900_v57 = vcombine.high %v5874_v17, %v5882_v26 }
 0x24f   : > { %20276 = vst [vmem:[#allocation40_spill] sm:$0xff] %v17806_v32 }
 0x250   : > { %v5907_v53 = vrot.slane %v5899_v56, %v17006_v30  ;;  %v5914_v24 = vrot.slane %v5900_v57, %v17006_v30 }
 0x251   : > { %v17804_v49 = vpop.trf.xlu1  ;;  %v17822_v7 = vpop.trf.xlu0 }
 0x252   : > { %v16418_v62 = vcombine.low %v5907_v53, %v5914_v24  ;;  %v16420_v20 = vcombine.high %v5907_v53, %v5914_v24  ;;  %20281 = vst [vmem:[#allocation45_spill] sm:$0xff] %v17822_v7 }
 0x254   : > { %v17809_v42 = vrot.slane %v16418_v62, %v17002_v25  ;;  %v17812_v26 = vrot.slane %v16420_v20, %v17002_v25 }
 0x255   : > { %v17814_v17 = vpop.trf.xlu1  ;;  %v17826_v24 = vpop.trf.xlu0 }
 0x256   : > { %20277 = vst [vmem:[#allocation41_spill] sm:$0xff] %v17809_v42  ;;  %20278 = vst [vmem:[#allocation42_spill] sm:$0xff] %v17812_v26 }
 0x257   : > { %20279 = vst [vmem:[#allocation43_spill] sm:$0xff] %v17814_v17  ;;  %20283 = vst [vmem:[#allocation47_spill] sm:$0xff] %v17826_v24 }
 0x259   : > { %v17820_v57 = vpop.trf.xlu1  ;;  %v17832_v41 = vpop.trf.xlu0 }
 0x25a   : > { %20280 = vst [vmem:[#allocation44_spill] sm:$0xff] %v17820_v57  ;;  %20286 = vst [vmem:[#allocation50_spill] sm:$0xff] %v17832_v41 }
 0x25d   : > { %v17824_v53 = vpop.trf.xlu1  ;;  %v17836_v3 = vpop.trf.xlu0 }
 0x25e   : > { %20282 = vst [vmem:[#allocation46_spill] sm:$0xff] %v17824_v53  ;;  %20288 = vst [vmem:[#allocation52_spill] sm:$0xff] %v17836_v3 }
 0x261   : > { %v17828_v62 = vpop.trf.xlu1  ;;  %v17842_v13 = vpop.trf.xlu0 }
 0x262   : > { %20284 = vst [vmem:[#allocation48_spill] sm:$0xff] %v17828_v62  ;;  %20291 = vst [vmem:[#allocation55_spill] sm:$0xff] %v17842_v13 }
 0x265   : > { %v17830_v20 = vpop.trf.xlu1  ;;  %v17846_v37 = vpop.trf.xlu0 }
 0x266   : > { %20285 = vst [vmem:[#allocation49_spill] sm:$0xff] %v17830_v20  ;;  %20293 = vst [vmem:[#allocation57_spill] sm:$0xff] %v17846_v37 }
 0x269   : > { %v17834_v35 = vpop.trf.xlu1  ;;  %v17852_v16 = vpop.trf.xlu0 }
 0x26a   : > { %20287 = vst [vmem:[#allocation51_spill] sm:$0xff] %v17834_v35  ;;  %20296 = vst [vmem:[#allocation60_spill] sm:$0xff] %v17852_v16 }
 0x26d   : > { %v17838_v15 = vpop.trf.xlu1  ;;  %v17856_v24 = vpop.trf.xlu0 }
 0x26e   : > { %20289 = vst [vmem:[#allocation53_spill] sm:$0xff] %v17838_v15  ;;  %20298 = vst [vmem:[#allocation62_spill] sm:$0xff] %v17856_v24 }
 0x271   : > { %v17840_v56 = vpop.trf.xlu1  ;;  %v17862_v32 = vpop.trf.xlu0 }
 0x272   : > { %20290 = vst [vmem:[#allocation54_spill] sm:$0xff] %v17840_v56  ;;  %20301 = vst [vmem:[#allocation65_spill] sm:$0xff] %v17862_v32 }
 0x275   : > { %v17844_v0 = vpop.trf.xlu1  ;;  %v17866_v7 = vpop.trf.xlu0 }
 0x276   : > { %20292 = vst [vmem:[#allocation56_spill] sm:$0xff] %v17844_v0  ;;  %20303 = vst [vmem:[#allocation67_spill] sm:$0xff] %v17866_v7 }
 0x279   : > { %v17848_v52 = vpop.trf.xlu1 }
 0x27a   : > { %20294 = vst [vmem:[#allocation58_spill] sm:$0xff] %v17848_v52 }
 0x27d   : > { %v17850_v46 = vpop.trf.xlu1 }
 0x27e   : > { %20295 = vst [vmem:[#allocation59_spill] sm:$0xff] %v17850_v46  ;;  %v17872_v46 = vpop.trf.xlu0 }
 0x27f   : > { %20306 = vst [vmem:[#allocation70_spill] sm:$0xff] %v17872_v46 }
 0x281   : > { %v17854_v31 = vpop.trf.xlu1 }
 0x282   : > { %20297 = vst [vmem:[#allocation61_spill] sm:$0xff] %v17854_v31  ;;  %v17876_v31 = vpop.trf.xlu0 }
 0x283   : > { %20308 = vst [vmem:[#allocation72_spill] sm:$0xff] %v17876_v31 }
 0x285   : > { %v17858_v3 = vpop.trf.xlu1 }
 0x286   : > { %20299 = vst [vmem:[#allocation63_spill] sm:$0xff] %v17858_v3 }
 0x289   : > { %v17860_v41 = vpop.trf.xlu1 }
 0x28a   : > { %20300 = vst [vmem:[#allocation64_spill] sm:$0xff] %v17860_v41  ;;  %v17882_v41 = vpop.trf.xlu0 }
 0x28b   : > { %20311 = vst [vmem:[#allocation75_spill] sm:$0xff] %v17882_v41 }
 0x28d   : > { %v17864_v13 = vpop.trf.xlu1 }
 0x28e   : > { %20302 = vst [vmem:[#allocation66_spill] sm:$0xff] %v17864_v13  ;;  %v17886_v13 = vpop.trf.xlu0 }
 0x28f   : > { %20313 = vst [vmem:[#allocation77_spill] sm:$0xff] %v17886_v13 }
 0x291   : > { %v17868_v37 = vpop.trf.xlu1 }
 0x292   : > { %20304 = vst [vmem:[#allocation68_spill] sm:$0xff] %v17868_v37 }
 0x295   : > { %v17870_v0 = vpop.trf.xlu1 }
 0x296   : > { %20305 = vst [vmem:[#allocation69_spill] sm:$0xff] %v17870_v0  ;;  %v17892_v0 = vpop.trf.xlu0 }
 0x297   : > { %20316 = vst [vmem:[#allocation80_spill] sm:$0xff] %v17892_v0 }
 0x299   : > { %v17874_v16 = vpop.trf.xlu1 }
 0x29a   : > { %20307 = vst [vmem:[#allocation71_spill] sm:$0xff] %v17874_v16  ;;  %v17896_v16 = vpop.trf.xlu0 }
 0x29b   : > { %20318 = vst [vmem:[#allocation82_spill] sm:$0xff] %v17896_v16  ;;  %v20328_v16 = vmov 0.0  }
 0x29d   : > { %v17878_v24 = vpop.trf.xlu1 }
 0x29e   : > { %20309 = vst [vmem:[#allocation73_spill] sm:$0xff] %v17878_v24 }
 0x2a1   : > { %v17880_v3 = vpop.trf.xlu1 }
 0x2a2   : > { %20310 = vst [vmem:[#allocation74_spill] sm:$0xff] %v17880_v3  ;;  %v17902_v3 = vpop.trf.xlu0 }
 0x2a3   : > { %20321 = vst [vmem:[#allocation85_spill] sm:$0xff] %v17902_v3 }
 0x2a5   : > { %v17884_v32 = vpop.trf.xlu1 }
 0x2a6   : > { %20312 = vst [vmem:[#allocation76_spill] sm:$0xff] %v17884_v32  ;;  %v17906_v32 = vpop.trf.xlu0 }
 0x2a7   : > { %20323 = vst [vmem:[#allocation87_spill] sm:$0xff] %v17906_v32 }
 0x2a9   : > { %v17888_v7 = vpop.trf.xlu1 }
 0x2aa   : > { %20314 = vst [vmem:[#allocation78_spill] sm:$0xff] %v17888_v7 }
 0x2ad   : > { %v17890_v37 = vpop.trf.xlu1 }
 0x2ae   : > { %20315 = vst [vmem:[#allocation79_spill] sm:$0xff] %v17890_v37  ;;  %v17912_v37 = vpop.trf.xlu0 }
 0x2af   : > { %20326 = vst [vmem:[#allocation90_spill] sm:$0xff] %v17912_v37 }
 0x2b1   : > { %v17894_v46 = vpop.trf.xlu1 }
 0x2b2   : > { %20317 = vst [vmem:[#allocation81_spill] sm:$0xff] %v17894_v46  ;;  %v8266_v46 = vpop.trf.xlu0 }
 0x2b3   : > { %v8314_v52 = vcombine.high %v8266_v46, %v20328_v16 }
 0x2b5   : > { %v17898_v31 = vpop.trf.xlu1 }
 0x2b6   : > { %20319 = vst [vmem:[#allocation83_spill] sm:$0xff] %v17898_v31  ;;  %v8321_v31 = vrot.slane %v8266_v46, %v17002_v25  ;;  %v8267_v6 = vpop.trf.xlu0 }
 0x2b7   : > { %v8387_v27 = vrot.slane %v8267_v6, %v17002_v25 }
 0x2b9   : > { %v17900_v24 = vpop.trf.xlu1 }
 0x2ba   : > { %20320 = vst [vmem:[#allocation84_spill] sm:$0xff] %v17900_v24 }
 0x2bd   : > { %v17904_v41 = vpop.trf.xlu1 }
 0x2be   : > { %20322 = vst [vmem:[#allocation86_spill] sm:$0xff] %v17904_v41 }
 0x2c1   : > { %v17908_v13 = vpop.trf.xlu1 }
 0x2c2   : > { %20324 = vst [vmem:[#allocation88_spill] sm:$0xff] %v17908_v13  ;;  %v8328_v13 = vrot.slane %v8314_v52, %v17002_v25  ;;  %v8380_v52 = vcombine.high %v8267_v6, %v20328_v16  ;;  %v8268_v6 = vpop.trf.xlu0 }
 0x2c5   : > { %v17910_v7 = vpop.trf.xlu1 }
 0x2c6   : > { %20325 = vst [vmem:[#allocation89_spill] sm:$0xff] %v17910_v7 }
 0x2c9   : > { %v17914_v0 = vpop.trf.xlu1 }
 0x2ca   : > { %20327 = vst [vmem:[#allocation91_spill] sm:$0xff] %v17914_v0 }
 0x2cd   : > { %v8298_v24 = vpop.trf.xlu1 }
 0x2ce   : > { %v8329_v3 = vcombine.high %v8298_v24, %v20328_v16  ;;  %v8336_v41 = vrot.slane %v8298_v24, %v17002_v25 }
 0x2d0   : > { %v8343_v32 = vrot.slane %v8329_v3, %v17002_v25  ;;  %v8344_v7 = vcombine.low %v8321_v31, %v8336_v41  ;;  %v8345_v37 = vcombine.high %v8321_v31, %v8336_v41 }
 0x2d1   : > { %v8299_v4 = vpop.trf.xlu1 }
 0x2d2   : > { %v8352_v0 = vrot.slane %v8344_v7, %v17006_v30  ;;  %v8402_v8 = vrot.slane %v8299_v4, %v17002_v25  ;;  %v8361_v15 = vcombine.high %v8328_v13, %v8343_v32  ;;  %v8359_v56 = vrot.slane %v8345_v37, %v17006_v30 }
 0x2d3   : > { %v8395_v3 = vcombine.high %v8299_v4, %v20328_v16  ;;  %v8360_v14 = vcombine.low %v8328_v13, %v8343_v32  ;;  %v8453_v32 = vrot.slane %v8268_v6, %v17002_v25 }
 0x2d4   : > { %9370 = vxpose.xlu0.b32.start.end [1/1] (short) (narrow) %v8352_v0, 8  ;;  %v8376_v46 = vcombine.high %v8352_v0, %v20328_v16  ;;  %v8410_v24 = vcombine.low %v8387_v27, %v8402_v8  ;;  %v8375_v31 = vrot.slane %v8361_v15, %v17006_v30  ;;  %v8377_v41 = vcombine.high %v8359_v56, %v20328_v16 }
 0x2d5   : > { %v8409_v0 = vrot.slane %v8395_v3, %v17002_v25  ;;  %v8411_v1 = vcombine.high %v8387_v27, %v8402_v8  ;;  %v8368_v37 = vrot.slane %v8360_v14, %v17006_v30  ;;  %v8300_v4 = vpop.trf.xlu1 }
 0x2d6   : > { %9402 = vxpose.xlu1.b32.start.end [1/1] (short) (narrow) %v8376_v46, 8  ;;  %v8418_v7 = vrot.slane %v8410_v24, %v17006_v30  ;;  %v8394_v46 = vrot.slane %v8380_v52, %v17002_v25  ;;  %v8468_v13 = vrot.slane %v8300_v4, %v17002_v25  ;;  %v8379_v14 = vcombine.high %v8375_v31, %v20328_v16 }
 0x2d7   : > { %v8425_v15 = vrot.slane %v8411_v1, %v17006_v30  ;;  %v8461_v3 = vcombine.high %v8300_v4, %v20328_v16  ;;  %v8446_v1 = vcombine.high %v8268_v6, %v20328_v16  ;;  %v8269_v4 = vpop.trf.xlu0 }
 0x2d8   : > { %9434 = vxpose.xlu0.b32.start.end [1/1] (short) (narrow) %v8359_v56, 8  ;;  %v8426_v20 = vcombine.low %v8394_v46, %v8409_v0  ;;  %v8378_v56 = vcombine.high %v8368_v37, %v20328_v16  ;;  %v8427_v8 = vcombine.high %v8394_v46, %v8409_v0  ;;  %v8476_v24 = vcombine.low %v8453_v32, %v8468_v13 }
 0x2d9   : > { %v8477_v0 = vcombine.high %v8453_v32, %v8468_v13  ;;  %v8301_v46 = vpop.trf.xlu1 }
 0x2da   : > { %9562 = vxpose.xlu1.b32.start.end [1/1] (short) (narrow) %v8375_v31, 8  ;;  %v8434_v27 = vrot.slane %v8426_v20, %v17006_v30  ;;  %v8441_v52 = vrot.slane %v8427_v8, %v17006_v30  ;;  %v8460_v20 = vrot.slane %v8446_v1, %v17002_v25  ;;  %v8443_v31 = vcombine.high %v8425_v15, %v20328_v16 }
 0x2db   : > { %v8491_v6 = vrot.slane %v8477_v0, %v17006_v30  ;;  %v8527_v1 = vcombine.high %v8301_v46, %v20328_v16 }
 0x2dc   : > { %9466 = vxpose.xlu0.b32.start.end [1/1] (short) (narrow) %v8377_v41, 8  ;;  %v8442_v41 = vcombine.high %v8418_v7, %v20328_v16 }
 0x2de   : > { %9626 = vxpose.xlu1.b32.start.end [1/1] (short) (narrow) %v8418_v7, 8  ;;  %v8444_v7 = vcombine.high %v8434_v27, %v20328_v16 }
 0x2e0   : > { %9498 = vxpose.xlu0.b32.start.end [1/1] (short) (narrow) %v8368_v37, 8  ;;  %v8484_v37 = vrot.slane %v8476_v24, %v17006_v30  ;;  %v8534_v24 = vrot.slane %v8301_v46, %v17002_v25  ;;  %v8302_v46 = vpop.trf.xlu1 }
 0x2e2   : > { %9690 = vxpose.xlu1.b32.start.end [1/1] (short) (narrow) %v8425_v15, 8  ;;  %v8445_v15 = vcombine.high %v8441_v52, %v20328_v16 }
 0x2e4   : > { %9530 = vxpose.xlu0.b32.start.end [1/1] (short) (narrow) %v8378_v56, 8  ;;  %v8475_v56 = vrot.slane %v8461_v3, %v17002_v25 }
 0x2e6   : > { %9754 = vxpose.xlu1.b32.start.end [1/1] (short) (narrow) %v8434_v27, 8  ;;  %v8492_v8 = vcombine.low %v8460_v20, %v8475_v56  ;;  %v8493_v32 = vcombine.high %v8460_v20, %v8475_v56  ;;  %v8508_v27 = vcombine.high %v8484_v37, %v20328_v16 }
 0x2e8   : > { %9594 = vxpose.xlu0.b32.start.end [1/1] (short) (narrow) %v8379_v14, 8  ;;  %v8519_v14 = vrot.slane %v8269_v4, %v17002_v25  ;;  %v8500_v13 = vrot.slane %v8492_v8, %v17006_v30  ;;  %v8507_v0 = vrot.slane %v8493_v32, %v17006_v30  ;;  %v8270_v8 = vpop.trf.xlu0 }
 0x2ea   : > { %9818 = vxpose.xlu1.b32.start.end [1/1] (short) (narrow) %v8441_v52, 8  ;;  %v8542_v3 = vcombine.low %v8519_v14, %v8534_v24  ;;  %v8543_v20 = vcombine.high %v8519_v14, %v8534_v24  ;;  %v8509_v52 = vcombine.high %v8491_v6, %v20328_v16 }
 0x2ec   : > { %9658 = vxpose.xlu0.b32.start.end [1/1] (short) (narrow) %v8442_v41, 8  ;;  %v8512_v41 = vcombine.high %v8269_v4, %v20328_v16  ;;  %v8557_v4 = vrot.slane %v8543_v20, %v17006_v30 }
 0x2ee   : > { %9882 = vxpose.xlu1.b32.start.end [1/1] (short) (narrow) %v8484_v37, 8  ;;  %v8526_v56 = vrot.slane %v8512_v41, %v17002_v25  ;;  %v8510_v37 = vcombine.high %v8500_v13, %v20328_v16  ;;  %v8593_v41 = vcombine.high %v8302_v46, %v20328_v16 }
 0x2f0   : > { %9722 = vxpose.xlu0.b32.start.end [1/1] (short) (narrow) %v8443_v31, 8  ;;  %v8550_v31 = vrot.slane %v8542_v3, %v17006_v30  ;;  %v8600_v3 = vrot.slane %v8302_v46, %v17002_v25  ;;  %v8303_v46 = vpop.trf.xlu1 }
 0x2f2   : > { %9946 = vxpose.xlu1.b32.start.end [1/1] (short) (narrow) %v8491_v6, 8  ;;  %v8511_v6 = vcombine.high %v8507_v0, %v20328_v16 }
 0x2f4   : > { %9786 = vxpose.xlu0.b32.start.end [1/1] (short) (narrow) %v8444_v7, 8  ;;  %v8541_v7 = vrot.slane %v8527_v1, %v17002_v25 }
 0x2f6   : > { %10010 = vxpose.xlu1.b32.start.end [1/1] (short) (narrow) %v8500_v13, 8  ;;  %v8558_v32 = vcombine.low %v8526_v56, %v8541_v7  ;;  %v8559_v14 = vcombine.high %v8526_v56, %v8541_v7  ;;  %v8574_v13 = vcombine.high %v8550_v31, %v20328_v16 }
 0x2f8   : > { %9850 = vxpose.xlu0.b32.start.end [1/1] (short) (narrow) %v8445_v15, 8  ;;  %v8585_v15 = vrot.slane %v8270_v8, %v17002_v25  ;;  %v8566_v24 = vrot.slane %v8558_v32, %v17006_v30  ;;  %v8573_v20 = vrot.slane %v8559_v14, %v17006_v30  ;;  %v8271_v32 = vpop.trf.xlu0 }
 0x2fa   : > { %10074 = vxpose.xlu1.b32.start.end [1/1] (short) (narrow) %v8507_v0, 8  ;;  %v8608_v1 = vcombine.low %v8585_v15, %v8600_v3  ;;  %v8609_v56 = vcombine.high %v8585_v15, %v8600_v3  ;;  %v8575_v0 = vcombine.high %v8557_v4, %v20328_v16 }
 0x2fc   : > { %9914 = vxpose.xlu0.b32.start.end [1/1] (short) (narrow) %v8508_v27, 8  ;;  %v8578_v27 = vcombine.high %v8270_v8, %v20328_v16  ;;  %v8623_v8 = vrot.slane %v8609_v56, %v17006_v30 }
 0x2fe   : > { %10138 = vxpose.xlu1.b32.start.end [1/1] (short) (narrow) %v8550_v31, 8  ;;  %v8592_v7 = vrot.slane %v8578_v27, %v17002_v25  ;;  %v8576_v31 = vcombine.high %v8566_v24, %v20328_v16  ;;  %v8659_v27 = vcombine.high %v8303_v46, %v20328_v16 }
 0x300   : > { %9978 = vxpose.xlu0.b32.start.end [1/1] (short) (narrow) %v8509_v52, 8  ;;  %v8616_v52 = vrot.slane %v8608_v1, %v17006_v30  ;;  %v8666_v1 = vrot.slane %v8303_v46, %v17002_v25  ;;  %v8304_v46 = vpop.trf.xlu1 }
 0x302   : > { %10202 = vxpose.xlu1.b32.start.end [1/1] (short) (narrow) %v8557_v4, 8  ;;  %v8577_v4 = vcombine.high %v8573_v20, %v20328_v16 }
 0x304   : > { %10042 = vxpose.xlu0.b32.start.end [1/1] (short) (narrow) %v8510_v37, 8  ;;  %v8607_v37 = vrot.slane %v8593_v41, %v17002_v25  ;;  %v8305_v35 = vpop.trf.xlu1 }
 0x305   : > { %v8791_v29 = vcombine.high %v8305_v35, %v20328_v16 }
 0x306   : > { %10266 = vxpose.xlu1.b32.start.end [1/1] (short) (narrow) %v8566_v24, 8  ;;  %v8624_v14 = vcombine.low %v8592_v7, %v8607_v37  ;;  %v8625_v15 = vcombine.high %v8592_v7, %v8607_v37  ;;  %v8640_v24 = vcombine.high %v8616_v52, %v20328_v16 }
 0x308   : > { %10106 = vxpose.xlu0.b32.start.end [1/1] (short) (narrow) %v8511_v6, 8  ;;  %v8651_v6 = vrot.slane %v8271_v32, %v17002_v25  ;;  %v8632_v3 = vrot.slane %v8624_v14, %v17006_v30  ;;  %v8639_v56 = vrot.slane %v8625_v15, %v17006_v30  ;;  %v8673_v14 = vrot.slane %v8659_v27, %v17002_v25 }
 0x30a   : > { %10330 = vxpose.xlu1.b32.start.end [1/1] (short) (narrow) %v8573_v20, 8  ;;  %v8674_v41 = vcombine.low %v8651_v6, %v8666_v1  ;;  %v8675_v7 = vcombine.high %v8651_v6, %v8666_v1  ;;  %v8641_v20 = vcombine.high %v8623_v8, %v20328_v16 }
 0x30c   : > { %10170 = vxpose.xlu0.b32.start.end [1/1] (short) (narrow) %v8574_v13, 8  ;;  %v8644_v13 = vcombine.high %v8271_v32, %v20328_v16  ;;  %v8689_v15 = vrot.slane %v8675_v7, %v17006_v30  ;;  %v17999_v7 = vpop.trf.xlu1 }
 0x30e   : > { %10394 = vxpose.xlu1.b32.start.end [1/1] (short) (narrow) %v8616_v52, 8  ;;  %v8658_v37 = vrot.slane %v8644_v13, %v17002_v25  ;;  %v8642_v52 = vcombine.high %v8632_v3, %v20328_v16 }
 0x310   : > { %10234 = vxpose.xlu0.b32.start.end [1/1] (short) (narrow) %v8575_v0, 8  ;;  %v8682_v0 = vrot.slane %v8674_v41, %v17006_v30  ;;  %v8732_v41 = vrot.slane %v8304_v46, %v17002_v25  ;;  %v8691_v6 = vcombine.high %v8658_v37, %v8673_v14  ;;  %v18010_v34 = vpop.trf.xlu1 }
 0x312   : > { %10458 = vxpose.xlu1.b32.start.end [1/1] (short) (narrow) %v8623_v8, 8  ;;  %v8705_v26 = vrot.slane %v8691_v6, %v17006_v30 }
 0x314   : > { %10298 = vxpose.xlu0.b32.start.end [1/1] (short) (narrow) %v8576_v31, 8  ;;  %v8272_v31 = vpop.trf.xlu0 }
 0x315   : > { %v8717_v27 = vrot.slane %v8272_v31, %v17002_v25 }
 0x316   : > { %10522 = vxpose.xlu1.b32.start.end [1/1] (short) (narrow) %v8632_v3, 8  ;;  %v8710_v3 = vcombine.high %v8272_v31, %v20328_v16  ;;  %v8707_v31 = vcombine.high %v8689_v15, %v20328_v16 }
 0x317   : > { %v8740_v8 = vcombine.low %v8717_v27, %v8732_v41  ;;  %v8741_v42 = vcombine.high %v8717_v27, %v8732_v41  ;;  %v18019_v41 = vpop.trf.xlu1 }
 0x318   : > { %10362 = vxpose.xlu0.b32.start.end [1/1] (short) (narrow) %v8577_v4, 8  ;;  %v8273_v32 = vpop.trf.xlu0  ;;  %v8690_v4 = vcombine.low %v8658_v37, %v8673_v14 }
 0x319   : > { %v8748_v14 = vrot.slane %v8740_v8, %v17006_v30  ;;  %v8783_v8 = vrot.slane %v8273_v32, %v17002_v25 }
 0x31a   : > { %10586 = vxpose.xlu1.b32.start.end [1/1] (short) (narrow) %v8639_v56, 8  ;;  %v8698_v1 = vrot.slane %v8690_v4, %v17006_v30 }
 0x31b   : > { %v18028_v28 = vpop.trf.xlu1 }
 0x31c   : > { %10426 = vxpose.xlu0.b32.start.end [1/1] (short) (narrow) %v8640_v24, 8  ;;  %v17996_v13 = vpop.trf.xlu0  ;;  %v8643_v24 = vcombine.high %v8639_v56, %v20328_v16  ;;  %v8724_v56 = vrot.slane %v8710_v3, %v17002_v25 }
 0x31e   : > { %10650 = vxpose.xlu1.b32.start.end [1/1] (short) (narrow) %v8682_v0, 8 }
 0x320   : > { %10490 = vxpose.xlu0.b32.start.end [1/1] (short) (narrow) %v8641_v20, 8  ;;  %v8725_v20 = vcombine.high %v8304_v46, %v20328_v16  ;;  %v18006_v37 = vpop.trf.xlu0  ;;  %v8755_v46 = vrot.slane %v8741_v42, %v17006_v30  ;;  %v8709_v42 = vcombine.high %v8705_v26, %v20328_v16 }
 0x322   : > { %10714 = vxpose.xlu1.b32.start.end [1/1] (short) (narrow) %v8689_v15, 8  ;;  %v8739_v4 = vrot.slane %v8725_v20, %v17002_v25  ;;  %v8798_v20 = vrot.slane %v8305_v35, %v17002_v25  ;;  %v8773_v35 = vcombine.high %v8755_v46, %v20328_v16 }
 0x324   : > { %10554 = vxpose.xlu0.b32.start.end [1/1] (short) (narrow) %v8642_v52, 8  ;;  %v8706_v52 = vcombine.high %v8682_v0, %v20328_v16  ;;  %v8756_v6 = vcombine.low %v8724_v56, %v8739_v4  ;;  %v18014_v0 = vpop.trf.xlu0  ;;  %v8757_v3 = vcombine.high %v8724_v56, %v8739_v4  ;;  %v8806_v15 = vcombine.low %v8783_v8, %v8798_v20 }
 0x326   : > { %10778 = vxpose.xlu1.b32.start.end [1/1] (short) (narrow) %v8698_v1, 8  ;;  %v8764_v27 = vrot.slane %v8756_v6, %v17006_v30  ;;  %v8814_v4 = vrot.slane %v8806_v15, %v17006_v30  ;;  %v8807_v6 = vcombine.high %v8783_v8, %v8798_v20  ;;  %v8864_v8 = vrot.slane %v17999_v7, %v17002_v25 }
 0x328   : > { %10618 = vxpose.xlu0.b32.start.end [1/1] (short) (narrow) %v8643_v24, 8  ;;  %v8708_v24 = vcombine.high %v8698_v1, %v20328_v16  ;;  %v8771_v1 = vrot.slane %v8757_v3, %v17006_v30  ;;  %v8821_v3 = vrot.slane %v8807_v6, %v17006_v30  ;;  %v8857_v6 = vcombine.high %v17999_v7, %v20328_v16 }
 0x32a   : > { %10842 = vxpose.xlu1.b32.start.end [1/1] (short) (narrow) %v8705_v26, 8  ;;  %v8805_v26 = vrot.slane %v8791_v29, %v17002_v25  ;;  %v8849_v29 = vrot.slane %v17996_v13, %v17002_v25  ;;  %v8839_v7 = vcombine.high %v8821_v3, %v20328_v16 }
 0x32c   : > { %10682 = vxpose.xlu0.b32.start.end [1/1] (short) (narrow) %v8706_v52, 8  ;;  %v18023_v52 = vpop.trf.xlu0 }
 0x32e   : > { %10906 = vxpose.xlu1.b32.start.end [1/1] (short) (narrow) %v8748_v14, 8 }
 0x330   : > { %10746 = vxpose.xlu0.b32.start.end [1/1] (short) (narrow) %v8707_v31, 8  ;;  %v8776_v31 = vcombine.high %v8273_v32, %v20328_v16  ;;  %v18034_v5 = vpop.trf.xlu0  ;;  %v18037_v32 = vpop.trf.xlu1 }
 0x332   : > { %10970 = vxpose.xlu1.b32.start.end [1/1] (short) (narrow) %v8755_v46, 8  ;;  %v8790_v56 = vrot.slane %v8776_v31, %v17002_v25 }
 0x334   : > { %10810 = vxpose.xlu0.b32.start.end [1/1] (short) (narrow) %v8708_v24, 8  ;;  %v8772_v24 = vcombine.high %v8748_v14, %v20328_v16  ;;  %v8774_v14 = vcombine.high %v8764_v27, %v20328_v16  ;;  %v18041_v15 = vpop.trf.xlu0  ;;  %v8823_v20 = vcombine.high %v8790_v56, %v8805_v26  ;;  %v18048_v31 = vpop.trf.xlu1 }
 0x336   : > { %11034 = vxpose.xlu1.b32.start.end [1/1] (short) (narrow) %v8764_v27, 8  ;;  %v8842_v27 = vcombine.high %v17996_v13, %v20328_v16  ;;  %v8837_v53 = vrot.slane %v8823_v20, %v17006_v30 }
 0x338   : > { %10874 = vxpose.xlu0.b32.start.end [1/1] (short) (narrow) %v8709_v42, 8  ;;  %v8822_v42 = vcombine.low %v8790_v56, %v8805_v26  ;;  %v18056_v62 = vpop.trf.xlu0  ;;  %v8838_v56 = vcombine.high %v8814_v4, %v20328_v16  ;;  %v18059_v26 = vpop.trf.xlu1 }
 0x33a   : > { %11098 = vxpose.xlu1.b32.start.end [1/1] (short) (narrow) %v8771_v1, 8  ;;  %v8830_v46 = vrot.slane %v8822_v42, %v17006_v30  ;;  %v8856_v42 = vrot.slane %v8842_v27, %v17002_v25 }
 0x33c   : > { %10938 = vxpose.xlu0.b32.start.end [1/1] (short) (narrow) %v8772_v24, 8  ;;  %v8775_v24 = vcombine.high %v8771_v1, %v20328_v16  ;;  %v8871_v1 = vrot.slane %v8857_v6, %v17002_v25  ;;  %v8840_v27 = vcombine.high %v8830_v46, %v20328_v16 }
 0x33e   : > { %11162 = vxpose.xlu1.b32.start.end [1/1] (short) (narrow) %v8814_v4, 8  ;;  %v8888_v55 = vcombine.low %v8856_v42, %v8871_v1  ;;  %v18068_v4 = vpop.trf.xlu1 }
 0x340   : > { %11002 = vxpose.xlu0.b32.start.end [1/1] (short) (narrow) %v8773_v35, 8  ;;  %v8872_v35 = vcombine.low %v8849_v29, %v8864_v8 }
 0x342   : > { %11226 = vxpose.xlu1.b32.start.end [1/1] (short) (narrow) %v8821_v3, 8  ;;  %v8880_v13 = vrot.slane %v8872_v35, %v17006_v30  ;;  %v8896_v3 = vrot.slane %v8888_v55, %v17006_v30  ;;  %v8889_v35 = vcombine.high %v8856_v42, %v8871_v1 }
 0x344   : > { %11066 = vxpose.xlu0.b32.start.end [1/1] (short) (narrow) %v8774_v14, 8  ;;  %v8873_v14 = vcombine.high %v8849_v29, %v8864_v8  ;;  %v8915_v29 = vrot.slane %v18006_v37, %v17002_v25  ;;  %v8930_v8 = vrot.slane %v18010_v34, %v17002_v25  ;;  %v8903_v19 = vrot.slane %v8889_v35, %v17006_v30 }
 0x345   : > { %v8904_v55 = vcombine.high %v8880_v13, %v20328_v16 }
 0x346   : > { %11290 = vxpose.xlu1.b32.start.end [1/1] (short) (narrow) %v8830_v46, 8  ;;  %v8887_v20 = vrot.slane %v8873_v14, %v17006_v30  ;;  %v8923_v46 = vcombine.high %v18010_v34, %v20328_v16  ;;  %v8938_v48 = vcombine.low %v8915_v29, %v8930_v8  ;;  %v8939_v17 = vcombine.high %v8915_v29, %v8930_v8 }
 0x348   : > { %11130 = vxpose.xlu0.b32.start.end [1/1] (short) (narrow) %v8775_v24, 8  ;;  %v18065_v24 = vpop.trf.xlu0  ;;  %v8946_v57 = vrot.slane %v8938_v48, %v17006_v30  ;;  %v8905_v35 = vcombine.high %v8887_v20, %v20328_v16  ;;  %v8906_v48 = vcombine.high %v8896_v3, %v20328_v16 }
 0x34a   : > { %11354 = vxpose.xlu1.b32.start.end [1/1] (short) (narrow) %v8837_v53, 8 }
 0x34c   : > { %11194 = vxpose.xlu0.b32.start.end [1/1] (short) (narrow) %v8838_v56, 8  ;;  %v8841_v56 = vcombine.high %v8837_v53, %v20328_v16  ;;  %v8937_v53 = vrot.slane %v8923_v46, %v17002_v25 }
 0x34e   : > { %11418 = vxpose.xlu1.b32.start.end [1/1] (short) (narrow) %v8880_v13, 8 }
 0x350   : > { %11258 = vxpose.xlu0.b32.start.end [1/1] (short) (narrow) %v8839_v7, 8  ;;  %v8908_v7 = vcombine.high %v18006_v37, %v20328_v16 }
 0x352   : > { %11482 = vxpose.xlu1.b32.start.end [1/1] (short) (narrow) %v8887_v20, 8  ;;  %v8922_v1 = vrot.slane %v8908_v7, %v17002_v25  ;;  %v8953_v7 = vrot.slane %v8939_v17, %v17006_v30  ;;  %v8981_v20 = vrot.slane %v18014_v0, %v17002_v25 }
 0x354   : > { %11322 = vxpose.xlu0.b32.start.end [1/1] (short) (narrow) %v8840_v27, 8  ;;  %v9386_v6 = vpop.trf.xlu0  ;;  %v8954_v46 = vcombine.low %v8922_v1, %v8937_v53 }
 0x356   : > { %11546 = vxpose.xlu1.b32.start.end [1/1] (short) (narrow) %v8896_v3, 8  ;;  %v9418_v14 = vpop.trf.xlu1  ;;  %v8962_v17 = vrot.slane %v8954_v46, %v17006_v30  ;;  %v8907_v3 = vcombine.high %v8903_v19, %v20328_v16 }
 0x358   : > { %11386 = vxpose.xlu0.b32.start.end [1/1] (short) (narrow) %v8841_v56, 8  ;;  %v9450_v12 = vpop.trf.xlu0 }
 0x359   : > { %v13466_v27 = vcombine.low %v9386_v6, %v9450_v12 }
 0x35a   : > { %11610 = vxpose.xlu1.b32.start.end [1/1] (short) (narrow) %v8903_v19, 8  ;;  %v9578_v42 = vpop.trf.xlu1 }
 0x35b   : > { %v13473_v34 = vrot.slane %v13466_v27, %v17002_v25 }
 0x35c   : > { %11450 = vxpose.xlu0.b32.start.end [1/1] (short) (narrow) %v8904_v55, 8  ;;  %v9482_v37 = vpop.trf.xlu0 }
 0x35d   : > { %v13474_v56 = vcombine.low %v9418_v14, %v9482_v37  ;;  %v8996_v37 = vrot.slane %v18019_v41, %v17002_v25 }
 0x35e   : > { %11674 = vxpose.xlu1.b32.start.end [1/1] (short) (narrow) %v8946_v57, 8  ;;  %v18088_v12 = vpop.trf.xlu1 }
 0x35f   : > { %v13481_v13 = vrot.slane %v13474_v56, %v17002_v25 }
 0x360   : > { %11514 = vxpose.xlu0.b32.start.end [1/1] (short) (narrow) %v8905_v35, 8  ;;  %v9514_v6 = vpop.trf.xlu0  ;;  %v8955_v35 = vcombine.high %v8922_v1, %v8937_v53  ;;  %v8989_v1 = vcombine.high %v18019_v41, %v20328_v16  ;;  %v9004_v53 = vcombine.low %v8981_v20, %v8996_v37 }
 0x361   : > { %v13498_v29 = vcombine.low %v13473_v34, %v13481_v13  ;;  %v13499_v8 = vcombine.high %v13473_v34, %v13481_v13  ;;  %v13482_v18 = vcombine.low %v9514_v6, %v9578_v42  ;;  %v8970_v42 = vcombine.high %v8946_v57, %v20328_v16 }
 0x362   : > { %11738 = vxpose.xlu1.b32.start.end [1/1] (short) (narrow) %v8953_v7, 8  ;;  %v9706_v55 = vpop.trf.xlu1  ;;  %v8969_v19 = vrot.slane %v8955_v35, %v17006_v30  ;;  %v9005_v35 = vcombine.high %v8981_v20, %v8996_v37 }
 0x363   : > { %v13506_v14 = vrot.slane %v13498_v29, %v17006_v30  ;;  %v13513_v27 = vrot.slane %v13499_v8, %v17006_v30 }
 0x364   : > { %11578 = vxpose.xlu0.b32.start.end [1/1] (short) (narrow) %v8906_v48, 8  ;;  %v9546_v56 = vpop.trf.xlu0  ;;  %v8974_v48 = vcombine.high %v18014_v0, %v20328_v16  ;;  %v13489_v0 = vrot.slane %v13482_v18, %v17002_v25  ;;  %v9019_v20 = vrot.slane %v9005_v35, %v17006_v30 }
 0x365   : > { %v16453_v34 = vcombine.low %v13506_v14, %v13513_v27  ;;  %v16455_v13 = vcombine.high %v13506_v14, %v13513_v27 }
 0x366   : > { %11802 = vxpose.xlu1.b32.start.end [1/1] (short) (narrow) %v8962_v17, 8  ;;  %v18101_v47 = vpop.trf.xlu1 }
 0x367   : > { %v18104_v29 = vrot.slane %v16453_v34, %v17002_v25  ;;  %v18107_v8 = vrot.slane %v16455_v13, %v17002_v25  ;;  %v8988_v13 = vrot.slane %v8974_v48, %v17002_v25  ;;  %v8971_v34 = vcombine.high %v8953_v7, %v20328_v16 }
 0x368   : > { %11642 = vxpose.xlu0.b32.start.end [1/1] (short) (narrow) %v8907_v3, 8  ;;  %v9610_v46 = vpop.trf.xlu0  ;;  %v9003_v3 = vrot.slane %v8989_v1, %v17002_v25  ;;  %v13534_v48 = vcombine.low %v18088_v12, %v9706_v55  ;;  %v9047_v55 = vrot.slane %v18023_v52, %v17002_v25 }
 0x369   : > { %20329 = vst [vmem:[#allocation92_spill] sm:$0xff] %v18104_v29  ;;  %20330 = vst [vmem:[#allocation93_spill] sm:$0xff] %v18107_v8  ;;  %v13490_v14 = vcombine.low %v9546_v56, %v9610_v46  ;;  %v9012_v46 = vrot.slane %v9004_v53, %v17006_v30 }
 0x36a   : > { %11866 = vxpose.xlu1.b32.start.end [1/1] (short) (narrow) %v8969_v19, 8  ;;  %v9834_v6 = vpop.trf.xlu1  ;;  %v9020_v37 = vcombine.low %v8988_v13, %v9003_v3 }
 0x36b   : > { %v13497_v41 = vrot.slane %v13490_v14, %v17002_v25 }
 0x36c   : > { %11706 = vxpose.xlu0.b32.start.end [1/1] (short) (narrow) %v8970_v42, 8  ;;  %v9674_v56 = vpop.trf.xlu0  ;;  %v9028_v35 = vrot.slane %v9020_v37, %v17006_v30  ;;  %v13550_v37 = vcombine.low %v18101_v47, %v9834_v6 }
 0x36d   : > { %v13514_v27 = vcombine.low %v13489_v0, %v13497_v41  ;;  %v13515_v54 = vcombine.high %v13489_v0, %v13497_v41  ;;  %v8972_v0 = vcombine.high %v8962_v17, %v20328_v16  ;;  %v13541_v41 = vrot.slane %v13534_v48, %v17002_v25 }
 0x36e   : > { %11930 = vxpose.xlu1.b32.start.end [1/1] (short) (narrow) %v9012_v46, 8  ;;  %v18125_v57 = vpop.trf.xlu1  ;;  %v8973_v48 = vcombine.high %v8969_v19, %v20328_v16 }
 0x36f   : > { %v13522_v18 = vrot.slane %v13514_v27, %v17006_v30  ;;  %v13529_v14 = vrot.slane %v13515_v54, %v17006_v30 }
 0x370   : > { %11770 = vxpose.xlu0.b32.start.end [1/1] (short) (narrow) %v8971_v34, 8  ;;  %v9738_v1 = vpop.trf.xlu0  ;;  %v9062_v34 = vrot.slane %v18028_v28, %v17002_v25 }
 0x371   : > { %v16454_v42 = vcombine.low %v13522_v18, %v13529_v14  ;;  %v16456_v53 = vcombine.high %v13522_v18, %v13529_v14  ;;  %v13542_v8 = vcombine.low %v9674_v56, %v9738_v1  ;;  %v9021_v56 = vcombine.high %v8988_v13, %v9003_v3 }
 0x372   : > { %11994 = vxpose.xlu1.b32.start.end [1/1] (short) (narrow) %v9019_v20, 8  ;;  %v18132_v7 = vpop.trf.xlu1  ;;  %v9040_v13 = vcombine.high %v18023_v52, %v20328_v16  ;;  %v9055_v3 = vcombine.high %v18028_v28, %v20328_v16  ;;  %v13557_v28 = vrot.slane %v13550_v37, %v17002_v25 }
 0x373   : > { %v13549_v27 = vrot.slane %v13542_v8, %v17002_v25  ;;  %v18137_v54 = vrot.slane %v16454_v42, %v17002_v25  ;;  %v18140_v12 = vrot.slane %v16456_v53, %v17002_v25 }
 0x374   : > { %11834 = vxpose.xlu0.b32.start.end [1/1] (short) (narrow) %v8972_v0, 8  ;;  %v9802_v17 = vpop.trf.xlu0 }
 0x375   : > { %20331 = vst [vmem:[#allocation94_spill] sm:$0xff] %v18140_v12  ;;  %v13566_v18 = vcombine.low %v13541_v41, %v13549_v27  ;;  %v13567_v14 = vcombine.high %v13541_v41, %v13549_v27  ;;  %v9070_v41 = vcombine.low %v9047_v55, %v9062_v34  ;;  %v9035_v27 = vrot.slane %v9021_v56, %v17006_v30 }
 0x376   : > { %12058 = vxpose.xlu1.b32.start.end [1/1] (short) (narrow) %v9028_v35, 8  ;;  %v18150_v1 = vpop.trf.xlu1  ;;  %v9054_v56 = vrot.slane %v9040_v13, %v17002_v25 }
 0x377   : > { %v13574_v53 = vrot.slane %v13566_v18, %v17006_v30  ;;  %v13581_v0 = vrot.slane %v13567_v14, %v17006_v30  ;;  %v9036_v18 = vcombine.high %v9012_v46, %v20328_v16  ;;  %v9078_v46 = vrot.slane %v9070_v41, %v17006_v30 }
 0x378   : > { %11898 = vxpose.xlu0.b32.start.end [1/1] (short) (narrow) %v8973_v48, 8  ;;  %v9866_v19 = vpop.trf.xlu0  ;;  %v9069_v48 = vrot.slane %v9055_v3, %v17002_v25 }
 0x379   : > { %v16457_v8 = vcombine.low %v13574_v53, %v13581_v0  ;;  %v16459_v29 = vcombine.high %v13574_v53, %v13581_v0  ;;  %v13558_v42 = vcombine.low %v9802_v17, %v9866_v19  ;;  %v9071_v17 = vcombine.high %v9047_v55, %v9062_v34 }
 0x37a   : > { %12122 = vxpose.xlu1.b32.start.end [1/1] (short) (narrow) %v9035_v27, 8  ;;  %v18163_v14 = vpop.trf.xlu1  ;;  %v13602_v34 = vcombine.low %v18125_v57, %v18132_v7 }
 0x37b   : > { %v18166_v47 = vrot.slane %v16457_v8, %v17002_v25  ;;  %v18169_v52 = vrot.slane %v16459_v29, %v17002_v25  ;;  %v13565_v6 = vrot.slane %v13558_v42, %v17002_v25  ;;  %v9037_v29 = vcombine.high %v9019_v20, %v20328_v16 }
 0x37c   : > { %11962 = vxpose.xlu0.b32.start.end [1/1] (short) (narrow) %v9036_v18, 8  ;;  %v9930_v53 = vpop.trf.xlu0  ;;  %v9085_v41 = vrot.slane %v9071_v17, %v17006_v30  ;;  %v9086_v18 = vcombine.low %v9054_v56, %v9069_v48  ;;  %v9038_v8 = vcombine.high %v9028_v35, %v20328_v16  ;;  %v13609_v57 = vrot.slane %v13602_v34, %v17002_v25 }
 0x37d   : > { %v13582_v0 = vcombine.low %v13557_v28, %v13565_v6  ;;  %v13583_v19 = vcombine.high %v13557_v28, %v13565_v6  ;;  %v9113_v17 = vrot.slane %v18034_v5, %v17002_v25  ;;  %v9039_v34 = vcombine.high %v9035_v27, %v20328_v16 }
 0x37e   : > { %12186 = vxpose.xlu1.b32.start.end [1/1] (short) (narrow) %v9078_v46, 8  ;;  %v18179_v37 = vpop.trf.xlu1 }
 0x37f   : > { %v13590_v13 = vrot.slane %v13582_v0, %v17006_v30  ;;  %v13597_v55 = vrot.slane %v13583_v19, %v17006_v30 }
 0x380   : > { %12026 = vxpose.xlu0.b32.start.end [1/1] (short) (narrow) %v9037_v29, 8  ;;  %v9994_v3 = vpop.trf.xlu0  ;;  %v9094_v29 = vrot.slane %v9086_v18, %v17006_v30  ;;  %v9121_v18 = vcombine.high %v18037_v32, %v20328_v16 }
 0x381   : > { %v16458_v28 = vcombine.low %v13590_v13, %v13597_v55  ;;  %v16460_v6 = vcombine.high %v13590_v13, %v13597_v55  ;;  %v13610_v20 = vcombine.low %v9930_v53, %v9994_v3  ;;  %v9128_v53 = vrot.slane %v18037_v32, %v17002_v25 }
 0x382   : > { %12250 = vxpose.xlu1.b32.start.end [1/1] (short) (narrow) %v9085_v41, 8  ;;  %v18189_v12 = vpop.trf.xlu1  ;;  %v9087_v13 = vcombine.high %v9054_v56, %v9069_v48  ;;  %v13618_v56 = vcombine.low %v18150_v1, %v18163_v14  ;;  %v9106_v48 = vcombine.high %v18034_v5, %v20328_v16 }
 0x383   : > { %v18192_v0 = vrot.slane %v16458_v28, %v17002_v25  ;;  %v18195_v19 = vrot.slane %v16460_v6, %v17002_v25  ;;  %v13617_v7 = vrot.slane %v13610_v20, %v17002_v25 }
 0x384   : > { %12090 = vxpose.xlu0.b32.start.end [1/1] (short) (narrow) %v9038_v8, 8  ;;  %v10058_v35 = vpop.trf.xlu0  ;;  %v13625_v32 = vrot.slane %v13618_v56, %v17002_v25 }
 0x385   : > { %20332 = vst [vmem:[#allocation95_spill] sm:$0xff] %v18195_v19  ;;  %v13634_v55 = vcombine.low %v13609_v57, %v13617_v7  ;;  %v13635_v3 = vcombine.high %v13609_v57, %v13617_v7  ;;  %v9136_v57 = vcombine.low %v9113_v17, %v9128_v53  ;;  %v9101_v7 = vrot.slane %v9087_v13, %v17006_v30 }
 0x386   : > { %12314 = vxpose.xlu1.b32.start.end [1/1] (short) (narrow) %v9094_v29, 8  ;;  %v18207_v6 = vpop.trf.xlu1  ;;  %v9120_v13 = vrot.slane %v9106_v48, %v17002_v25 }
 0x387   : > { %v13642_v42 = vrot.slane %v13634_v55, %v17006_v30  ;;  %v13649_v8 = vrot.slane %v13635_v3, %v17006_v30  ;;  %v9102_v55 = vcombine.high %v9078_v46, %v20328_v16  ;;  %v9144_v46 = vrot.slane %v9136_v57, %v17006_v30 }
 0x388   : > { %12154 = vxpose.xlu0.b32.start.end [1/1] (short) (narrow) %v9039_v34, 8  ;;  %v10122_v27 = vpop.trf.xlu0 }
 0x389   : > { %v16461_v28 = vcombine.low %v13642_v42, %v13649_v8  ;;  %v16463_v20 = vcombine.high %v13642_v42, %v13649_v8  ;;  %v13626_v19 = vcombine.low %v10058_v35, %v10122_v27  ;;  %v9135_v42 = vrot.slane %v9121_v18, %v17002_v25 }
 0x38a   : > { %12378 = vxpose.xlu1.b32.start.end [1/1] (short) (narrow) %v9101_v7, 8  ;;  %v18221_v3 = vpop.trf.xlu1  ;;  %v9137_v35 = vcombine.high %v9113_v17, %v9128_v53  ;;  %v13670_v53 = vcombine.low %v18179_v37, %v18189_v12 }
 0x38b   : > { %v18224_v1 = vrot.slane %v16461_v28, %v17002_v25  ;;  %v18227_v5 = vrot.slane %v16463_v20, %v17002_v25  ;;  %v13633_v14 = vrot.slane %v13626_v19, %v17002_v25  ;;  %v9103_v20 = vcombine.high %v9085_v41, %v20328_v16 }
 0x38c   : > { %12218 = vxpose.xlu0.b32.start.end [1/1] (short) (narrow) %v9102_v55, 8  ;;  %v10186_v34 = vpop.trf.xlu0  ;;  %v9151_v57 = vrot.slane %v9137_v35, %v17006_v30  ;;  %v9152_v55 = vcombine.low %v9120_v13, %v9135_v42  ;;  %v9104_v28 = vcombine.high %v9094_v29, %v20328_v16  ;;  %v13677_v12 = vrot.slane %v13670_v53, %v17002_v25 }
 0x38d   : > { %v13650_v8 = vcombine.low %v13625_v32, %v13633_v14  ;;  %v13651_v27 = vcombine.high %v13625_v32, %v13633_v14  ;;  %v9179_v35 = vrot.slane %v18041_v15, %v17002_v25  ;;  %v9105_v53 = vcombine.high %v9101_v7, %v20328_v16 }
 0x38e   : > { %12442 = vxpose.xlu1.b32.start.end [1/1] (short) (narrow) %v9144_v46, 8  ;;  %v18237_v56 = vpop.trf.xlu1 }
 0x38f   : > { %20333 = vst [vmem:[#allocation96_spill] sm:$0xff] %v18237_v56  ;;  %v13658_v48 = vrot.slane %v13650_v8, %v17006_v30  ;;  %v13665_v17 = vrot.slane %v13651_v27, %v17006_v30 }
 0x390   : > { %12282 = vxpose.xlu0.b32.start.end [1/1] (short) (narrow) %v9103_v20, 8  ;;  %v10250_v18 = vpop.trf.xlu0  ;;  %v9160_v20 = vrot.slane %v9152_v55, %v17006_v30  ;;  %v9187_v55 = vcombine.high %v18048_v31, %v20328_v16 }
 0x391   : > { %v16462_v32 = vcombine.low %v13658_v48, %v13665_v17  ;;  %v16464_v14 = vcombine.high %v13658_v48, %v13665_v17  ;;  %v13678_v41 = vcombine.low %v10186_v34, %v10250_v18  ;;  %v9194_v34 = vrot.slane %v18048_v31, %v17002_v25 }
 0x392   : > { %12506 = vxpose.xlu1.b32.start.end [1/1] (short) (narrow) %v9151_v57, 8  ;;  %v18247_v56 = vpop.trf.xlu1  ;;  %v9153_v48 = vcombine.high %v9120_v13, %v9135_v42  ;;  %v13686_v13 = vcombine.low %v18207_v6, %v18221_v3  ;;  %v9172_v42 = vcombine.high %v18041_v15, %v20328_v16 }
 0x393   : > { %v18250_v8 = vrot.slane %v16462_v32, %v17002_v25  ;;  %v18253_v27 = vrot.slane %v16464_v14, %v17002_v25  ;;  %v13685_v37 = vrot.slane %v13678_v41, %v17002_v25 }
 0x394   : > { %12346 = vxpose.xlu0.b32.start.end [1/1] (short) (narrow) %v9104_v28, 8  ;;  %v10314_v29 = vpop.trf.xlu0  ;;  %v13693_v31 = vrot.slane %v13686_v13, %v17002_v25  ;;  %v9169_v13 = vcombine.high %v9151_v57, %v20328_v16  ;;  %v9170_v57 = vcombine.high %v9160_v20, %v20328_v16 }
 0x395   : > { %v13702_v17 = vcombine.low %v13677_v12, %v13685_v37  ;;  %v13703_v18 = vcombine.high %v13677_v12, %v13685_v37  ;;  %v9202_v12 = vcombine.low %v9179_v35, %v9194_v34  ;;  %v9167_v37 = vrot.slane %v9153_v48, %v17006_v30 }
 0x396   : > { %12570 = vxpose.xlu1.b32.start.end [1/1] (short) (narrow) %v9160_v20, 8  ;;  %v18265_v14 = vpop.trf.xlu1  ;;  %v9186_v48 = vrot.slane %v9172_v42, %v17002_v25 }
 0x397   : > { %20334 = vst [vmem:[#allocation97_spill] sm:$0xff] %v18265_v14  ;;  %v13710_v19 = vrot.slane %v13702_v17, %v17006_v30  ;;  %v13717_v28 = vrot.slane %v13703_v18, %v17006_v30  ;;  %v9168_v17 = vcombine.high %v9144_v46, %v20328_v16  ;;  %v9210_v46 = vrot.slane %v9202_v12, %v17006_v30 }
 0x398   : > { %12410 = vxpose.xlu0.b32.start.end [1/1] (short) (narrow) %v9105_v53, 8  ;;  %v10378_v7 = vpop.trf.xlu0 }
 0x399   : > { %v16465_v32 = vcombine.low %v13710_v19, %v13717_v28  ;;  %v16467_v41 = vcombine.high %v13710_v19, %v13717_v28  ;;  %v13694_v14 = vcombine.low %v10314_v29, %v10378_v7  ;;  %v9201_v19 = vrot.slane %v9187_v55, %v17002_v25 }
 0x39a   : > { %12634 = vxpose.xlu1.b32.start.end [1/1] (short) (narrow) %v9167_v37, 8  ;;  %v18279_v18 = vpop.trf.xlu1  ;;  %v9203_v29 = vcombine.high %v9179_v35, %v9194_v34 }
 0x39b   : > { %v18282_v6 = vrot.slane %v16465_v32, %v17002_v25  ;;  %v18285_v15 = vrot.slane %v16467_v41, %v17002_v25  ;;  %v13701_v3 = vrot.slane %v13694_v14, %v17002_v25  ;;  %v9218_v12 = vcombine.low %v9186_v48, %v9201_v19 }
 0x39c   : > { %12474 = vxpose.xlu0.b32.start.end [1/1] (short) (narrow) %v9168_v17, 8  ;;  %v18291_v53 = vpop.trf.xlu0  ;;  %v9217_v55 = vrot.slane %v9203_v29, %v17006_v30  ;;  %v9260_v29 = vrot.slane %v18059_v26, %v17002_v25  ;;  %v9219_v20 = vcombine.high %v9186_v48, %v9201_v19 }
 0x39d   : > { %v13718_v28 = vcombine.low %v13693_v31, %v13701_v3  ;;  %v13719_v32 = vcombine.high %v13693_v31, %v13701_v3 }
 0x39e   : > { %12698 = vxpose.xlu1.b32.start.end [1/1] (short) (narrow) %v9210_v46, 8  ;;  %v18297_v7 = vpop.trf.xlu1  ;;  %v9233_v19 = vrot.slane %v9219_v20, %v17006_v30 }
 0x39f   : > { %20335 = vst [vmem:[#allocation98_spill] sm:$0xff] %v18297_v7  ;;  %v13726_v35 = vrot.slane %v13718_v28, %v17006_v30  ;;  %v13733_v34 = vrot.slane %v13719_v32, %v17006_v30  ;;  %v9245_v32 = vrot.slane %v18056_v62, %v17002_v25  ;;  %v9238_v7 = vcombine.high %v18056_v62, %v20328_v16 }
 0x3a0   : > { %12538 = vxpose.xlu0.b32.start.end [1/1] (short) (narrow) %v9169_v13, 8  ;;  %v18303_v42 = vpop.trf.xlu0 }
 0x3a1   : > { %v16466_v17 = vcombine.low %v13726_v35, %v13733_v34  ;;  %v16468_v31 = vcombine.high %v13726_v35, %v13733_v34  ;;  %v9226_v35 = vrot.slane %v9218_v12, %v17006_v30  ;;  %v9252_v34 = vrot.slane %v9238_v7, %v17002_v25 }
 0x3a2   : > { %12762 = vxpose.xlu1.b32.start.end [1/1] (short) (narrow) %v9217_v55, 8  ;;  %v18307_v3 = vpop.trf.xlu1 }
 0x3a3   : > { %20336 = vst [vmem:[#allocation99_spill] sm:$0xff] %v18307_v3  ;;  %v18310_v41 = vrot.slane %v16466_v17, %v17002_v25  ;;  %v18313_v28 = vrot.slane %v16468_v31, %v17002_v25  ;;  %v9171_v17 = vcombine.high %v9167_v37, %v20328_v16  ;;  %v9268_v3 = vcombine.low %v9245_v32, %v9260_v29 }
 0x3a4   : > { %12602 = vxpose.xlu0.b32.start.end [1/1] (short) (narrow) %v9170_v57, 8  ;;  %v18319_v13 = vpop.trf.xlu0  ;;  %v9253_v57 = vcombine.high %v18059_v26, %v20328_v16  ;;  %v9234_v37 = vcombine.high %v9210_v46, %v20328_v16  ;;  %v9236_v7 = vcombine.high %v9226_v35, %v20328_v16 }
 0x3a5   : > { %20337 = vst [vmem:[#allocation100_spill] sm:$0xff] %v18310_v41  ;;  %20338 = vst [vmem:[#allocation101_spill] sm:$0xff] %v18313_v28  ;;  %v9276_v26 = vrot.slane %v9268_v3, %v17006_v30  ;;  %v9326_v3 = vrot.slane %v18068_v4, %v17002_v25 }
 0x3a6   : > { %12826 = vxpose.xlu1.b32.start.end [1/1] (short) (narrow) %v9226_v35, 8  ;;  %v18325_v31 = vpop.trf.xlu1  ;;  %v9267_v14 = vrot.slane %v9253_v57, %v17002_v25  ;;  %v9304_v35 = vcombine.high %v18065_v24, %v20328_v16 }
 0x3a7   : > { %20339 = vst [vmem:[#allocation102_spill] sm:$0xff] %v18325_v31  ;;  %v9269_v31 = vcombine.high %v9245_v32, %v9260_v29  ;;  %v9311_v29 = vrot.slane %v18065_v24, %v17002_v25 }
 0x3a8   : > { %12666 = vxpose.xlu0.b32.start.end [1/1] (short) (narrow) %v9171_v17, 8  ;;  %v18333_v48 = vpop.trf.xlu0  ;;  %v9235_v17 = vcombine.high %v9217_v55, %v20328_v16 }
 0x3a9   : > { %v9283_v46 = vrot.slane %v9269_v31, %v17006_v30  ;;  %v9237_v31 = vcombine.high %v9233_v19, %v20328_v16 }
 0x3aa   : > { %12890 = vxpose.xlu1.b32.start.end [1/1] (short) (narrow) %v9233_v19, 8  ;;  %v18337_v12 = vpop.trf.xlu1  ;;  %v9318_v19 = vrot.slane %v9304_v35, %v17002_v25 }
 0x3ab   : > { %20340 = vst [vmem:[#allocation103_spill] sm:$0xff] %v18337_v12  ;;  %v9284_v12 = vcombine.low %v9252_v34, %v9267_v14 }
 0x3ac   : > { %12730 = vxpose.xlu0.b32.start.end [1/1] (short) (narrow) %v9234_v37, 8  ;;  %v18341_v62 = vpop.trf.xlu0  ;;  %v9285_v37 = vcombine.high %v9252_v34, %v9267_v14  ;;  %v9300_v14 = vcombine.high %v9276_v26, %v20328_v16 }
 0x3ad   : > { %v9292_v57 = vrot.slane %v9284_v12, %v17006_v30 }
 0x3ae   : > { %12954 = vxpose.xlu1.b32.start.end [1/1] (short) (narrow) %v9276_v26, 8  ;;  %v18345_v28 = vpop.trf.xlu1 }
 0x3af   : > { %20341 = vst [vmem:[#allocation104_spill] sm:$0xff] %v18345_v28  ;;  %v9319_v28 = vcombine.high %v18068_v4, %v20328_v16 }
 0x3b0   : > { %12794 = vxpose.xlu0.b32.start.end [1/1] (short) (narrow) %v9235_v17, 8  ;;  %v18347_v20 = vpop.trf.xlu0 }
 0x3b1   : > { %v9333_v12 = vrot.slane %v9319_v28, %v17002_v25  ;;  %v9302_v28 = vcombine.high %v9292_v57, %v20328_v16 }
 0x3b2   : > { %13018 = vxpose.xlu1.b32.start.end [1/1] (short) (narrow) %v9283_v46, 8  ;;  %v18351_v32 = vpop.trf.xlu1 }
 0x3b3   : > { %20342 = vst [vmem:[#allocation105_spill] sm:$0xff] %v18351_v32  ;;  %v9334_v32 = vcombine.low %v9311_v29, %v9326_v3  ;;  %v9351_v35 = vcombine.high %v9318_v19, %v9333_v12 }
 0x3b4   : > { %12858 = vxpose.xlu0.b32.start.end [1/1] (short) (narrow) %v9236_v7, 8  ;;  %v18357_v55 = vpop.trf.xlu0  ;;  %v9299_v7 = vrot.slane %v9285_v37, %v17006_v30 }
 0x3b5   : > { %20343 = vst [vmem:[#allocation106_spill] sm:$0xff] %v18357_v55  ;;  %v9342_v4 = vrot.slane %v9334_v32, %v17006_v30 }
 0x3b6   : > { %13082 = vxpose.xlu1.b32.start.end [1/1] (short) (narrow) %v9292_v57, 8  ;;  %v18361_v17 = vpop.trf.xlu1 }
 0x3b7   : > { %20344 = vst [vmem:[#allocation107_spill] sm:$0xff] %v18361_v17  ;;  %v9335_v17 = vcombine.high %v9311_v29, %v9326_v3  ;;  %v9366_v57 = vcombine.high %v9342_v4, %v20328_v16 }
 0x3b8   : > { %12922 = vxpose.xlu0.b32.start.end [1/1] (short) (narrow) %v9237_v31, 8  ;;  %v18367_v41 = vpop.trf.xlu0  ;;  %v9301_v31 = vcombine.high %v9283_v46, %v20328_v16  ;;  %v9303_v46 = vcombine.high %v9299_v7, %v20328_v16 }
 0x3b9   : > { %v9349_v26 = vrot.slane %v9335_v17, %v17006_v30  ;;  %v9365_v17 = vrot.slane %v9351_v35, %v17006_v30 }
 0x3ba   : > { %13146 = vxpose.xlu1.b32.start.end [1/1] (short) (narrow) %v9299_v7, 8  ;;  %v18371_v34 = vpop.trf.xlu1 }
 0x3bb   : > { %20345 = vst [vmem:[#allocation108_spill] sm:$0xff] %v18371_v34  ;;  %v9350_v34 = vcombine.low %v9318_v19, %v9333_v12 }
 0x3bc   : > { %12986 = vxpose.xlu0.b32.start.end [1/1] (short) (narrow) %v9300_v14, 8  ;;  %v18375_v24 = vpop.trf.xlu0 }
 0x3bd   : > { %v9358_v32 = vrot.slane %v9350_v34, %v17006_v30  ;;  %v9367_v34 = vcombine.high %v9349_v26, %v20328_v16 }
 0x3be   : > { %13210 = vxpose.xlu1.b32.start.end [1/1] (short) (narrow) %v9342_v4, 8  ;;  %v18379_v55 = vpop.trf.xlu1  ;;  %v9369_v4 = vcombine.high %v9365_v17, %v20328_v16 }
 0x3bf   : > { %20346 = vst [vmem:[#allocation109_spill] sm:$0xff] %v18379_v55  ;;  %v9368_v12 = vcombine.high %v9358_v32, %v20328_v16 }
 0x3c0   : > { %13050 = vxpose.xlu0.b32.start.end [1/1] (short) (narrow) %v9301_v31, 8  ;;  %v18381_v37 = vpop.trf.xlu0 }
 0x3c2   : > { %13274 = vxpose.xlu1.b32.start.end [1/1] (short) (narrow) %v9349_v26, 8  ;;  %v18385_v29 = vpop.trf.xlu1 }
 0x3c4   : > { %13114 = vxpose.xlu0.b32.start.end [1/1] (short) (narrow) %v9302_v28, 8  ;;  %v18387_v3 = vpop.trf.xlu0 }
 0x3c6   : > { %13338 = vxpose.xlu1.b32.start.end [1/1] (short) (narrow) %v9358_v32, 8  ;;  %v18391_v14 = vpop.trf.xlu1  ;;  %v20358_v32 = vcombine.low %v17363_v33, %v17366_v38 }
 0x3c7   : > { %20347 = vst [vmem:[#allocation110_spill] sm:$0xff] %v18391_v14 }
 0x3c8   : > { %13178 = vxpose.xlu0.b32.start.end [1/1] (short) (narrow) %v9303_v46, 8  ;;  %v18393_v31 = vpop.trf.xlu0 }
 0x3ca   : > { %13402 = vxpose.xlu1.b32.start.end [1/1] (short) (narrow) %v9365_v17, 8  ;;  %v18397_v55 = vpop.trf.xlu1 }
 0x3cb   : > { %20348 = vst [vmem:[#allocation111_spill] sm:$0xff] %v18397_v55 }
 0x3cc   : > { %13242 = vxpose.xlu0.b32.start.end [1/1] (short) (narrow) %v9366_v57, 8  ;;  %v18399_v28 = vpop.trf.xlu0 }
 0x3ce   : > { %v18402_v19 = vpop.trf.xlu1 }
 0x3cf   : > { %20349 = vst [vmem:[#allocation112_spill] sm:$0xff] %v18402_v19 }
 0x3d0   : > { %13306 = vxpose.xlu0.b32.start.end [1/1] (short) (narrow) %v9367_v34, 8  ;;  %v18404_v7 = vpop.trf.xlu0 }
 0x3d2   : > { %v18407_v46 = vpop.trf.xlu1 }
 0x3d3   : > { %20350 = vst [vmem:[#allocation113_spill] sm:$0xff] %v18407_v46 }
 0x3d4   : > { %13370 = vxpose.xlu0.b32.start.end [1/1] (short) (narrow) %v9368_v12, 8  ;;  %v18409_v35 = vpop.trf.xlu0  ;;  %v18428_v12 = vrot.slane %v20358_v32, %v17006_v30 }
 0x3d5   : > { %20351 = vst [vmem:[#allocation114_spill] sm:$0xff] %v18409_v35 }
 0x3d6   : > { %v18412_v14 = vpop.trf.xlu1 }
 0x3d7   : > { %20352 = vst [vmem:[#allocation115_spill] sm:$0xff] %v18412_v14 }
 0x3d8   : > { %13434 = vxpose.xlu0.b32.start.end [1/1] (short) (narrow) %v9369_v4, 8  ;;  %v18414_v57 = vpop.trf.xlu0  ;;  %v6527_v4 = vcombine.high %v18428_v12, %v20328_v16 }
 0x3d9   : > { %20353 = vst [vmem:[#allocation116_spill] sm:$0xff] %v18414_v57 }
 0x3da   : > { %v18416_v26 = vpop.trf.xlu1 }
 0x3db   : > { %20354 = vst [vmem:[#allocation117_spill] sm:$0xff] %v18416_v26  ;;  %v20361_v26 = vcombine.high %v17363_v33, %v17366_v38  ;;  %v20367_v33 = vld [vmem:[#allocation20_spill] sm:$0xff] }
 0x3dc   : > { %v18418_v19 = vpop.trf.xlu0 }
 0x3dd   : > { %20355 = vst [vmem:[#allocation118_spill] sm:$0xff] %v18418_v19 }
 0x3de   : > { %v18420_v34 = vpop.trf.xlu1 }
 0x3df   : > { %20356 = vst [vmem:[#allocation119_spill] sm:$0xff] %v18420_v34  ;;  %v6510_v34 = vrot.slane %v20361_v26, %v17006_v30 }
 0x3e0   : > { %v18422_v55 = vpop.trf.xlu0 }
 0x3e1   : > { %20357 = vst [vmem:[#allocation120_spill] sm:$0xff] %v18422_v55  ;;  %v6528_v32 = vcombine.high %v6510_v34, %v20328_v16  ;;  %v20366_v55 = vld [vmem:[#allocation19_spill] sm:$0xff] }
 0x3e2   : > { %v18430_v17 = vpop.trf.xlu1  ;;  %v20368_v38 = vcombine.low %v20366_v55, %v20367_v33 }
 0x3e3   : > { %20359 = vst [vmem:[#allocation121_spill] sm:$0xff] %v18430_v17 }
 0x3e4   : > { %v18432_v14 = vpop.trf.xlu0  ;;  %v6519_v26 = vrot.slane %v20368_v38, %v17006_v30  ;;  %v20373_v38 = vcombine.high %v20366_v55, %v20367_v33 }
 0x3e5   : > { %20360 = vst [vmem:[#allocation122_spill] sm:$0xff] %v18432_v14 }
 0x3e6   : > { %v18440_v46 = vpop.trf.xlu1 }
 0x3e7   : > { %20362 = vst [vmem:[#allocation123_spill] sm:$0xff] %v18440_v46 }
 0x3e8   : > { %7552 = vrot.lane.b32.xlu1 %v6527_v4, %s20125_s18  ;;  %v18443_v19 = vpop.trf.xlu0 }
 0x3e9   : > { %20363 = vst [vmem:[#allocation124_spill] sm:$0xff] %v18443_v19  ;;  %v6529_v19 = vcombine.high %v6519_v26, %v20328_v16 }
 0x3ea   : > { %v18446_v17 = vpop.trf.xlu1 }
 0x3eb   : > { %20364 = vst [vmem:[#allocation125_spill] sm:$0xff] %v18446_v17 }
 0x3ec   : > { %7560 = vrot.lane.b32.xlu1 %v6528_v32, %s20127_s27  ;;  %v18449_v14 = vpop.trf.xlu0 }
 0x3ed   : > { %20365 = vst [vmem:[#allocation126_spill] sm:$0xff] %v18449_v14  ;;  %v6526_v14 = vrot.slane %v20373_v38, %v17006_v30 }
 0x3ee   : > { %v18455_v46 = vpop.trf.xlu1 }
 0x3ef   : > { %20369 = vst [vmem:[#allocation19_spill] sm:$0xff] %v18455_v46 }
 0x3f0   : > { %7564 = vrot.lane.b32.xlu1 %v6519_v26, %s20164_s29  ;;  %v18458_v4 = vpop.trf.xlu0  ;;  %v20375_v26 = vld [vmem:[#allocation21_spill] sm:$0xff] }
 0x3f1   : > { %20370 = vst [vmem:[#allocation20_spill] sm:$0xff] %v18458_v4 }
 0x3f2   : > { %v18461_v17 = vpop.trf.xlu1 }
 0x3f3   : > { %20371 = vst [vmem:[#allocation127_spill] sm:$0xff] %v18461_v17  ;;  %v20376_v17 = vld [vmem:[#allocation22_spill] sm:$0xff] }
 0x3f4   : > { %7568 = vrot.lane.b32.xlu1 %v6529_v19, %s20158_s30  ;;  %v18464_v32 = vpop.trf.xlu0  ;;  %v20377_v35 = vcombine.low %v20375_v26, %v20376_v17  ;;  %v20380_v55 = vcombine.high %v20375_v26, %v20376_v17  ;;  %v6530_v17 = vcombine.high %v6526_v14, %v20328_v16 }
 0x3f5   : > { %20372 = vst [vmem:[#allocation128_spill] sm:$0xff] %v18464_v32 }
 0x3f6   : > { %v18470_v46 = vpop.trf.xlu1  ;;  %v6571_v57 = vrot.slane %v20377_v35, %v17006_v30  ;;  %v6578_v33 = vrot.slane %v20380_v55, %v17006_v30  ;;  %v20382_v35 = vcombine.low %v17541_v45, %v17544_v9 }
 0x3f7   : > { %20374 = vst [vmem:[#allocation129_spill] sm:$0xff] %v18470_v46 }
 0x3f8   : > { %7572 = vrot.lane.b32.xlu1 %v6526_v14, %s20152_s2  ;;  %v18473_v4 = vpop.trf.xlu0 }
 0x3fa   : > { %v18479_v19 = vpop.trf.xlu1 }
 0x3fb   : > { %20378 = vst [vmem:[#allocation21_spill] sm:$0xff] %v18479_v19  ;;  %v6587_v19 = vrot.slane %v20382_v35, %v17006_v30  ;;  %v6595_v35 = vcombine.high %v6571_v57, %v20328_v16 }
 0x3fc   : > { %7580 = vrot.lane.b32.xlu1 %v6571_v57, %s20146_s12  ;;  %v18482_v32 = vpop.trf.xlu0  ;;  %v20391_v57 = vcombine.high %v17572_v23, %v17575_v51 }
 0x3fd   : > { %20379 = vst [vmem:[#allocation22_spill] sm:$0xff] %v18482_v32 }
 0x3fe   : > { %v18488_v38 = vpop.trf.xlu1 }
 0x3ff   : > { %20381 = vst [vmem:[#allocation130_spill] sm:$0xff] %v18488_v38 }
 0x400   : > { %7588 = vrot.lane.b32.xlu1 %v6578_v33, %s20140_s13  ;;  %v18491_v46 = vpop.trf.xlu0 }
 0x401   : > { %7556 = vrot.lane.b32.xlu0 %v6510_v34, %s20161_s15  ;;  %v20385_v34 = vcombine.high %v17541_v45, %v17544_v9  ;;  %v6596_v45 = vcombine.high %v6578_v33, %v20328_v16 }
 0x402   : > { %v18498_v32 = vpop.trf.xlu1 }
 0x403   : > { %20383 = vst [vmem:[#allocation131_spill] sm:$0xff] %v18498_v32  ;;  %v6594_v55 = vrot.slane %v20385_v34, %v17006_v30  ;;  %v6646_v34 = vrot.slane %v20391_v57, %v17006_v30 }
 0x404   : > { %7596 = vrot.lane.b32.xlu1 %v6587_v19, %s20065_s16  ;;  %v18502_v26 = vpop.trf.xlu0  ;;  %s20073_s16 = smov 58  }
 0x405   : > { %20384 = vst [vmem:[#allocation132_spill] sm:$0xff] %v18502_v26  ;;  %7576 = vrot.lane.b32.xlu0 %v6530_v17, %s20155_s17  ;;  %v20388_v17 = vcombine.low %v17572_v23, %v17575_v51  ;;  %v6598_v23 = vcombine.high %v6594_v55, %v20328_v16 }
 0x406   : > { %v18509_v38 = vpop.trf.xlu1 }
 0x407   : > { %20386 = vst [vmem:[#allocation133_spill] sm:$0xff] %v18509_v38  ;;  %v6639_v32 = vrot.slane %v20388_v17, %v17006_v30  ;;  %v6597_v17 = vcombine.high %v6587_v19, %v20328_v16  ;;  %v20397_v19 = vcombine.high %v17590_v60, %v17593_v36 }
 0x408   : > { %7604 = vrot.lane.b32.xlu1 %v6594_v55, %s20047_s22  ;;  %v18513_v14 = vpop.trf.xlu0  ;;  %s20053_s22 = smov 52  }
 0x409   : > { %20387 = vst [vmem:[#allocation134_spill] sm:$0xff] %v18513_v14  ;;  %7584 = vrot.lane.b32.xlu0 %v6595_v35, %s20149_s23  ;;  %v6662_v57 = vrot.slane %v20397_v19, %v17006_v30 }
 0x40a   : > { %v18520_v26 = vpop.trf.xlu1 }
 0x40b   : > { %20389 = vst [vmem:[#allocation135_spill] sm:$0xff] %v18520_v26 }
 0x40c   : > { %7612 = vrot.lane.b32.xlu1 %v6639_v32, %s20043_s24  ;;  %v18524_v9 = vpop.trf.xlu0  ;;  %s20049_s24 = smov 48  }
 0x40d   : > { %20390 = vst [vmem:[#allocation136_spill] sm:$0xff] %v18524_v9  ;;  %7592 = vrot.lane.b32.xlu0 %v6596_v45, %s20143_s25  ;;  %v20394_v45 = vcombine.low %v17590_v60, %v17593_v36  ;;  %v6664_v60 = vcombine.high %v6646_v34, %v20328_v16  ;;  %v20477_v9 = vld [vmem:[#allocation56_spill] sm:$0xff] }
 0x40e   : > { %v18531_v35 = vpop.trf.xlu1 }
 0x40f   : > { %20392 = vst [vmem:[#allocation137_spill] sm:$0xff] %v18531_v35  ;;  %v6655_v38 = vrot.slane %v20394_v45, %v17006_v30  ;;  %v6663_v45 = vcombine.high %v6639_v32, %v20328_v16  ;;  %v20403_v32 = vcombine.high %v17608_v10, %v17611_v58 }
 0x410   : > { %7620 = vrot.lane.b32.xlu1 %v6646_v34, %s20039_s26  ;;  %v18535_v33 = vpop.trf.xlu0  ;;  %s20045_s26 = smov 44  }
 0x411   : > { %20393 = vst [vmem:[#allocation138_spill] sm:$0xff] %v18535_v33  ;;  %7600 = vrot.lane.b32.xlu0 %v6597_v17, %s20137_s4  ;;  %v6714_v19 = vrot.slane %v20403_v32, %v17006_v30 }
 0x412   : > { %v18542_v26 = vpop.trf.xlu1 }
 0x413   : > { %20395 = vst [vmem:[#allocation139_spill] sm:$0xff] %v18542_v26 }
 0x414   : > { %7628 = vrot.lane.b32.xlu1 %v6655_v38, %s20041_s5  ;;  %v18546_v51 = vpop.trf.xlu0  ;;  %s20134_s5 = smov 34  }
 0x415   : > { %20396 = vst [vmem:[#allocation140_spill] sm:$0xff] %v18546_v51  ;;  %7608 = vrot.lane.b32.xlu0 %v6598_v23, %s20131_s3  ;;  %v20400_v23 = vcombine.low %v17608_v10, %v17611_v58  ;;  %v6666_v10 = vcombine.high %v6662_v57, %v20328_v16  ;;  %v20468_v51 = vld [vmem:[#allocation54_spill] sm:$0xff] }
 0x416   : > { %v18553_v17 = vpop.trf.xlu1 }
 0x417   : > { %20398 = vst [vmem:[#allocation141_spill] sm:$0xff] %v18553_v17  ;;  %v6707_v35 = vrot.slane %v20400_v23, %v17006_v30  ;;  %v6665_v23 = vcombine.high %v6655_v38, %v20328_v16  ;;  %v20409_v38 = vcombine.high %v17632_v61, %v17635_v40 }
 0x418   : > { %7636 = vrot.lane.b32.xlu1 %v6662_v57, %s20045_s26  ;;  %v18557_v55 = vpop.trf.xlu0  ;;  %s20051_s26 = smov 38  }
 0x419   : > { %20399 = vst [vmem:[#allocation142_spill] sm:$0xff] %v18557_v55  ;;  %7616 = vrot.lane.b32.xlu0 %v6663_v45, %s20134_s5  ;;  %v6730_v32 = vrot.slane %v20409_v38, %v17006_v30  ;;  %v20469_v55 = vld [vmem:[#allocation53_spill] sm:$0xff] }
 0x41a   : > { %v18564_v26 = vpop.trf.xlu1 }
 0x41b   : > { %20401 = vst [vmem:[#allocation143_spill] sm:$0xff] %v18564_v26 }
 0x41c   : > { %7644 = vrot.lane.b32.xlu1 %v6707_v35, %s20049_s24  ;;  %v18568_v36 = vpop.trf.xlu0  ;;  %s20055_s24 = smov 42  }
 0x41d   : > { %20402 = vst [vmem:[#allocation144_spill] sm:$0xff] %v18568_v36  ;;  %7624 = vrot.lane.b32.xlu0 %v6664_v60, %s20051_s26  ;;  %v20406_v60 = vcombine.low %v17632_v61, %v17635_v40  ;;  %s20057_s26 = smov 56   ;;  %v6732_v61 = vcombine.high %v6714_v19, %v20328_v16 }
 0x41e   : > { %v18575_v45 = vpop.trf.xlu1 }
 0x41f   : > { %20404 = vst [vmem:[#allocation145_spill] sm:$0xff] %v18575_v45  ;;  %v6723_v17 = vrot.slane %v20406_v60, %v17006_v30  ;;  %v6731_v60 = vcombine.high %v6707_v35, %v20328_v16  ;;  %v20415_v35 = vcombine.high %v17653_v21, %v17656_v43 }
 0x420   : > { %7652 = vrot.lane.b32.xlu1 %v6714_v19, %s20053_s22  ;;  %v18579_v34 = vpop.trf.xlu0  ;;  %s20059_s22 = smov 46   ;;  %v20417_v19 = vcombine.low %v17676_v50, %v17679_v59 }
 0x421   : > { %20405 = vst [vmem:[#allocation146_spill] sm:$0xff] %v18579_v34  ;;  %7632 = vrot.lane.b32.xlu0 %v6665_v23, %s20055_s24  ;;  %s20061_s24 = smov 60   ;;  %v6782_v38 = vrot.slane %v20415_v35, %v17006_v30  ;;  %v20466_v34 = vld [vmem:[#allocation29_spill] sm:$0xff] }
 0x422   : > { %v18586_v26 = vpop.trf.xlu1 }
 0x423   : > { %20407 = vst [vmem:[#allocation147_spill] sm:$0xff] %v18586_v26 }
 0x424   : > { %7660 = vrot.lane.b32.xlu1 %v6723_v17, %s20057_s26  ;;  %v18590_v58 = vpop.trf.xlu0  ;;  %s20063_s26 = smov 50  }
 0x425   : > { %20408 = vst [vmem:[#allocation148_spill] sm:$0xff] %v18590_v58  ;;  %7640 = vrot.lane.b32.xlu0 %v6666_v10, %s20059_s22  ;;  %v20412_v10 = vcombine.low %v17653_v21, %v17656_v43  ;;  %s20067_s22 = smov 64   ;;  %v6734_v21 = vcombine.high %v6730_v32, %v20328_v16  ;;  %v20420_v43 = vcombine.high %v17676_v50, %v17679_v59 }
 0x426   : > { %v18597_v23 = vpop.trf.xlu1  ;;  %v6800_v50 = vcombine.high %v6782_v38, %v20328_v16  ;;  %v20424_v59 = vcombine.high %v17697_v11, %v17700_v44 }
 0x427   : > { %20410 = vst [vmem:[#allocation149_spill] sm:$0xff] %v18597_v23  ;;  %v6775_v45 = vrot.slane %v20412_v10, %v17006_v30  ;;  %v6733_v10 = vcombine.high %v6723_v17, %v20328_v16  ;;  %v6798_v17 = vrot.slane %v20420_v43, %v17006_v30 }
 0x428   : > { %7668 = vrot.lane.b32.xlu1 %v6730_v32, %s20061_s24  ;;  %v18601_v57 = vpop.trf.xlu0  ;;  %s20069_s24 = smov 54   ;;  %v20423_v32 = vcombine.low %v17697_v11, %v17700_v44 }
 0x429   : > { %20411 = vst [vmem:[#allocation150_spill] sm:$0xff] %v18601_v57  ;;  %7648 = vrot.lane.b32.xlu0 %v6731_v60, %s20063_s26  ;;  %s20071_s26 = smov 68   ;;  %v6799_v35 = vcombine.high %v6775_v45, %v20328_v16  ;;  %v6802_v11 = vcombine.high %v6798_v17, %v20328_v16 }
 0x42a   : > { %v18608_v26 = vpop.trf.xlu1 }
 0x42b   : > { %20413 = vst [vmem:[#allocation151_spill] sm:$0xff] %v18608_v26 }
 0x42c   : > { %7676 = vrot.lane.b32.xlu1 %v6775_v45, %s20067_s22  ;;  %v18612_v40 = vpop.trf.xlu0  ;;  %s20075_s22 = smov 72   ;;  %v6850_v45 = vrot.slane %v20424_v59, %v17006_v30 }
 0x42d   : > { %20414 = vst [vmem:[#allocation152_spill] sm:$0xff] %v18612_v40  ;;  %7656 = vrot.lane.b32.xlu0 %v6732_v61, %s20069_s24  ;;  %v6791_v61 = vrot.slane %v20417_v19, %v17006_v30  ;;  %s20077_s24 = smov 62   ;;  %v20456_v40 = vld [vmem:[#allocation27_spill] sm:$0xff] }
 0x42e   : > { %v18619_v60 = vpop.trf.xlu1 }
 0x42f   : > { %20416 = vst [vmem:[#allocation153_spill] sm:$0xff] %v18619_v60 }
 0x430   : > { %7684 = vrot.lane.b32.xlu1 %v6782_v38, %s20071_s26  ;;  %v18630_v26 = vpop.trf.xlu0  ;;  %s20079_s26 = smov 76   ;;  %v20427_v38 = vcombine.low %v17718_v2, %v17721_v39 }
 0x431   : > { %7664 = vrot.lane.b32.xlu0 %v6733_v10, %s20073_s16  ;;  %20419 = vst [vmem:[#allocation155_spill] sm:$0xff] %v18630_v26  ;;  %s20081_s16 = smov 66  }
 0x432   : > { %v18628_v23 = vpop.trf.xlu1 }
 0x433   : > { %20418 = vst [vmem:[#allocation154_spill] sm:$0xff] %v18628_v23  ;;  %v20441_v23 = vld [vmem:[#allocation43_spill] sm:$0xff] }
 0x434   : > { %7692 = vrot.lane.b32.xlu1 %v6791_v61, %s20075_s22  ;;  %v18643_v19 = vpop.trf.xlu0  ;;  %s20083_s22 = smov 80  }
 0x435   : > { %7672 = vrot.lane.b32.xlu0 %v6734_v21, %s20077_s24  ;;  %20422 = vst [vmem:[#allocation157_spill] sm:$0xff] %v18643_v19  ;;  %v6843_v21 = vrot.slane %v20423_v32, %v17006_v30  ;;  %s20085_s24 = smov 70   ;;  %v6859_v32 = vrot.slane %v20427_v38, %v17006_v30 }
 0x436   : > { %v18641_v10 = vpop.trf.xlu1 }
 0x437   : > { %20421 = vst [vmem:[#allocation156_spill] sm:$0xff] %v18641_v10  ;;  %v6801_v10 = vcombine.high %v6791_v61, %v20328_v16  ;;  %v20430_v61 = vcombine.high %v17718_v2, %v17721_v39  ;;  %v6867_v59 = vcombine.high %v6843_v21, %v20328_v16  ;;  %v6868_v39 = vcombine.high %v6850_v45, %v20328_v16 }
 0x438   : > { %7700 = vrot.lane.b32.xlu1 %v6798_v17, %s20079_s26  ;;  %s20087_s26 = smov 84   ;;  %v5919_v17 = vcombine.low %v17794_v22, %v17804_v49 }
 0x439   : > { %7680 = vrot.lane.b32.xlu0 %v6799_v35, %s20081_s16  ;;  %v18659_v35 = vpop.trf.xlu0  ;;  %s20089_s16 = smov 74  }
 0x43a   : > { %v18657_v43 = vpop.trf.xlu1  ;;  %20426 = vst [vmem:[#allocation159_spill] sm:$0xff] %v18659_v35  ;;  %v5926_v22 = vrot.slane %v5919_v17, %v17002_v25 }
 0x43b   : > { %20425 = vst [vmem:[#allocation158_spill] sm:$0xff] %v18657_v43 }
 0x43c   : > { %7708 = vrot.lane.b32.xlu1 %v6843_v21, %s20083_s22  ;;  %s20093_s22 = smov 88   ;;  %v20435_v21 = vld [vmem:[#allocation24_spill] sm:$0xff] }
 0x43d   : > { %7688 = vrot.lane.b32.xlu0 %v6800_v50, %s20085_s24  ;;  %v18672_v50 = vpop.trf.xlu0  ;;  %s20182_s24 = smov 78  }
 0x43e   : > { %v18670_v44 = vpop.trf.xlu1  ;;  %20429 = vst [vmem:[#allocation161_spill] sm:$0xff] %v18672_v50  ;;  %v20445_v50 = vld [vmem:[#allocation26_spill] sm:$0xff] }
 0x43f   : > { %20428 = vst [vmem:[#allocation160_spill] sm:$0xff] %v18670_v44 }
 0x440   : > { %7716 = vrot.lane.b32.xlu1 %v6850_v45, %s20087_s26  ;;  %s20091_s26 = smov 92  }
 0x441   : > { %7696 = vrot.lane.b32.xlu0 %v6801_v10, %s20089_s16  ;;  %v6866_v10 = vrot.slane %v20430_v61, %v17006_v30  ;;  %s20095_s16 = smov 82   ;;  %v18690_v2 = vpop.trf.xlu0  ;;  %v20436_v61 = vld [vmem:[#allocation23_spill] sm:$0xff] }
 0x442   : > { %v18684_v38 = vpop.trf.xlu1  ;;  %v5927_v60 = vcombine.low %v20436_v61, %v20435_v21  ;;  %v20440_v61 = vld [vmem:[#allocation44_spill] sm:$0xff] }
 0x443   : > { %20431 = vst [vmem:[#allocation162_spill] sm:$0xff] %v18684_v38 }
 0x444   : > { %7724 = vrot.lane.b32.xlu1 %v6859_v32, %s20093_s22  ;;  %s20101_s22 = smov 86   ;;  %v5934_v45 = vrot.slane %v5927_v60, %v17002_v25 }
 0x445   : > { %7704 = vrot.lane.b32.xlu0 %v6802_v11, %s20182_s24  ;;  %v20432_v11 = vld [vmem:[#allocation32_spill] sm:$0xff]  ;;  %v18707_v21 = vpop.trf.xlu0  ;;  %s20523_s24 = smov 70  }
 0x446   : > { %v20433_v44 = vcombine.low %v17741_v63, %v20432_v11  ;;  %20434 = vst [vmem:[#allocation32_spill] sm:$0xff] %v18690_v2  ;;  %v20437_v49 = vcombine.high %v17741_v63, %v20432_v11  ;;  %v18704_v38 = vpop.trf.xlu1  ;;  %20439 = vst [vmem:[#allocation23_spill] sm:$0xff] %v18707_v21  ;;  %v5951_v17 = vcombine.low %v5926_v22, %v5934_v45  ;;  %v20442_v11 = vld [vmem:[#allocation34_spill] sm:$0xff]  ;;  %v20446_v2 = vld [vmem:[#allocation25_spill] sm:$0xff] }
 0x447   : > { %20438 = vst [vmem:[#allocation24_spill] sm:$0xff] %v18704_v38  ;;  %v5935_v63 = vcombine.low %v20441_v23, %v20440_v61  ;;  %v6870_v38 = vcombine.high %v6866_v10, %v20328_v16  ;;  %v5943_v19 = vcombine.low %v20446_v2, %v20445_v50 }
 0x448   : > { %7732 = vrot.lane.b32.xlu1 %v6866_v10, %s20091_s26  ;;  %v6911_v43 = vrot.slane %v20433_v44, %v17006_v30  ;;  %s20097_s26 = smov 96   ;;  %v6918_v44 = vrot.slane %v20437_v49, %v17006_v30 }
 0x449   : > { %7712 = vrot.lane.b32.xlu0 %v6867_v59, %s20095_s16  ;;  %v6869_v59 = vcombine.high %v6859_v32, %v20328_v16  ;;  %s20099_s16 = smov 100   ;;  %v20443_v32 = vld [vmem:[#allocation35_spill] sm:$0xff]  ;;  %v18730_v50 = vpop.trf.xlu0 }
 0x44a   : > { %v20444_v49 = vcombine.low %v20442_v11, %v20443_v32  ;;  %v20448_v10 = vcombine.high %v20442_v11, %v20443_v32  ;;  %20449 = vst [vmem:[#allocation43_spill] sm:$0xff] %v18730_v50  ;;  %v6935_v2 = vcombine.high %v6911_v43, %v20328_v16  ;;  %v6936_v58 = vcombine.high %v6918_v44, %v20328_v16 }
 0x44c   : > { %7740 = vrot.lane.b32.xlu1 %v6911_v43, %s20097_s26  ;;  %s20179_s26 = smov 90   ;;  %v6927_v60 = vrot.slane %v20444_v49, %v17006_v30  ;;  %v6934_v61 = vrot.slane %v20448_v10, %v17006_v30  ;;  %v5950_v49 = vrot.slane %v5943_v19, %v17002_v25  ;;  %v20455_v19 = vld [vmem:[#allocation28_spill] sm:$0xff] }
 0x44d   : > { %7720 = vrot.lane.b32.xlu0 %v6868_v39, %s20101_s22  ;;  %v5952_v39 = vcombine.high %v5926_v22, %v5934_v45  ;;  %s20105_s22 = smov 94   ;;  %v5959_v22 = vrot.slane %v5951_v17, %v17006_v30  ;;  %v18724_v45 = vpop.trf.xlu1  ;;  %v20451_v17 = vld [vmem:[#allocation46_spill] sm:$0xff]  ;;  %v5995_v26 = vcombine.low %v20456_v40, %v20455_v19 }
 0x44e   : > { %20447 = vst [vmem:[#allocation44_spill] sm:$0xff] %v18724_v45  ;;  %v20453_v45 = vld [vmem:[#allocation38_spill] sm:$0xff] }
 0x44f   : > { %v5966_v23 = vrot.slane %v5952_v39, %v17006_v30 }
 0x450   : > { %7748 = vrot.lane.b32.xlu1 %v6918_v44, %s20099_s16  ;;  %s20103_s16 = smov 104  }
 0x451   : > { %7728 = vrot.lane.b32.xlu0 %v6869_v59, %s20179_s26  ;;  %v5942_v59 = vrot.slane %v5935_v63, %v17002_v25  ;;  %v20452_v63 = vld [vmem:[#allocation37_spill] sm:$0xff]  ;;  %v16421_v10 = vcombine.low %v5959_v22, %v5966_v23  ;;  %v16423_v21 = vcombine.high %v5959_v22, %v5966_v23  ;;  %s20522_s26 = smov 56  }
 0x452   : > { %v20454_v11 = vcombine.low %v20452_v63, %v20453_v45  ;;  %v20458_v22 = vcombine.high %v20452_v63, %v20453_v45  ;;  %v20460_v63 = vld [vmem:[#allocation42_spill] sm:$0xff] }
 0x453   : > { %v5967_v50 = vcombine.low %v5942_v59, %v5950_v49  ;;  %v5968_v43 = vcombine.high %v5942_v59, %v5950_v49  ;;  %v7015_v59 = vrot.slane %v16421_v10, %v17002_v25  ;;  %v7031_v40 = vrot.slane %v16423_v21, %v17002_v25  ;;  %v20459_v21 = vld [vmem:[#allocation41_spill] sm:$0xff] }
 0x454   : > { %7756 = vrot.lane.b32.xlu1 %v6927_v60, %s20103_s16  ;;  %s20107_s16 = smov 108   ;;  %v6979_v32 = vrot.slane %v20454_v11, %v17006_v30  ;;  %v6986_v23 = vrot.slane %v20458_v22, %v17006_v30  ;;  %v6937_v11 = vcombine.high %v6927_v60, %v20328_v16  ;;  %v20462_v22 = vld [vmem:[#allocation51_spill] sm:$0xff] }
 0x455   : > { %7736 = vrot.lane.b32.xlu0 %v6870_v38, %s20105_s22  ;;  %v20450_v38 = vld [vmem:[#allocation48_spill] sm:$0xff]  ;;  %s20109_s22 = smov 98   ;;  %v5975_v44 = vrot.slane %v5967_v50, %v17006_v30  ;;  %v5982_v49 = vrot.slane %v5968_v43, %v17006_v30  ;;  %v20461_v50 = vcombine.low %v20459_v21, %v20460_v63  ;;  %v7039_v60 = vcombine.low %v7015_v59, %v7031_v40 }
 0x456   : > { %v5987_v39 = vcombine.low %v20451_v17, %v20450_v38  ;;  %v18749_v38 = vpop.trf.xlu0 }
 0x457   : > { %20457 = vst [vmem:[#allocation34_spill] sm:$0xff] %v18749_v38  ;;  %v6995_v10 = vrot.slane %v20461_v50, %v17006_v30  ;;  %v16422_v43 = vcombine.low %v5975_v44, %v5982_v49  ;;  %v16424_v19 = vcombine.high %v5975_v44, %v5982_v49  ;;  %v20463_v38 = vld [vmem:[#allocation49_spill] sm:$0xff] }
 0x458   : > { %7764 = vrot.lane.b32.xlu1 %v6934_v61, %s20107_s16  ;;  %s20111_s16 = smov 112  }
 0x459   : > { %7744 = vrot.lane.b32.xlu0 %v6935_v2, %s20109_s22  ;;  %v5994_v2 = vrot.slane %v5987_v39, %v17002_v25  ;;  %s20113_s22 = smov 102   ;;  %v6002_v39 = vrot.slane %v5995_v26, %v17002_v25  ;;  %v6003_v26 = vcombine.low %v20463_v38, %v20462_v22  ;;  %v20467_v38 = vcombine.high %v20459_v21, %v20460_v63  ;;  %v20470_v63 = vld [vmem:[#allocation33_spill] sm:$0xff] }
 0x45a   : > { %v18742_v35 = vpop.permute.xlu1 %7552  ;;  %v18774_v36 = vpop.trf.xlu0  ;;  %v7040_v22 = vcombine.high %v7015_v59, %v7031_v40  ;;  %v6055_v21 = vcombine.low %v20469_v55, %v20468_v51 }
 0x45b   : > { %v6020_v45 = vcombine.high %v5994_v2, %v6002_v39  ;;  %20464 = vst [vmem:[#allocation35_spill] sm:$0xff] %v18774_v36  ;;  %v7002_v49 = vrot.slane %v20467_v38, %v17006_v30 }
 0x45c   : > { %7772 = vrot.lane.b32.xlu1 %v6979_v32, %s20111_s16  ;;  %s20115_s16 = smov 116  }
 0x45d   : > { %7752 = vrot.lane.b32.xlu0 %v6936_v58, %s20113_s22  ;;  %v6019_v58 = vcombine.low %v5994_v2, %v6002_v39  ;;  %s20117_s22 = smov 106   ;;  %v6938_v2 = vcombine.high %v6934_v61, %v20328_v16  ;;  %v20465_v39 = vld [vmem:[#allocation30_spill] sm:$0xff]  ;;  %v6034_v44 = vrot.slane %v6020_v45, %v17006_v30  ;;  %v7022_v61 = vrot.slane %v16422_v43, %v17002_v25  ;;  %v20471_v43 = vld [vmem:[#allocation31_spill] sm:$0xff] }
 0x45e   : > { %v18760_v17 = vpop.permute.xlu1 %7560  ;;  %v7003_v45 = vcombine.high %v6979_v32, %v20328_v16  ;;  %v18806_v32 = vrot.slane %v7040_v22, %v17006_v30 }
 0x45f   : > { %v6027_v50 = vrot.slane %v6019_v58, %v17006_v30  ;;  %v18793_v58 = vrot.slane %v7039_v60, %v17006_v30 }
 0x460   : > { %7780 = vrot.lane.b32.xlu1 %v6986_v23, %s20115_s16  ;;  %s20119_s16 = smov 120  }
 0x461   : > { %7760 = vrot.lane.b32.xlu0 %v6937_v11, %s20117_s22  ;;  %v6011_v11 = vcombine.low %v20466_v34, %v20465_v39  ;;  %s20121_s22 = smov 110   ;;  %v7038_v34 = vrot.slane %v16424_v19, %v17002_v25  ;;  %v6010_v39 = vrot.slane %v6003_v26, %v17002_v25  ;;  %v16425_v59 = vcombine.low %v6027_v50, %v6034_v44  ;;  %v18802_v26 = vpop.trf.xlu0 }
 0x462   : > { %v18772_v57 = vpop.permute.xlu1 %7564  ;;  %v16427_v40 = vcombine.high %v6027_v50, %v6034_v44  ;;  %v6063_v19 = vcombine.low %v20471_v43, %v20470_v63  ;;  %20472 = vst [vmem:[#allocation26_spill] sm:$0xff] %v18802_v26  ;;  %v7071_v51 = vcombine.high %v18793_v58, %v20328_v16  ;;  %v7004_v50 = vcombine.high %v6986_v23, %v20328_v16 }
 0x463   : > { %v7055_v55 = vcombine.low %v7022_v61, %v7038_v34  ;;  %v7056_v44 = vcombine.high %v7022_v61, %v7038_v34  ;;  %v6062_v63 = vrot.slane %v6055_v21, %v17002_v25  ;;  %v7072_v23 = vcombine.high %v18806_v32, %v20328_v16 }
 0x464   : > { %7788 = vrot.lane.b32.xlu1 %v6995_v10, %s20119_s16  ;;  %s20123_s16 = smov 124   ;;  %v7099_v22 = vrot.slane %v16427_v40, %v17002_v25  ;;  %v6070_v43 = vrot.slane %v6063_v19, %v17002_v25  ;;  %v7005_v21 = vcombine.high %v6995_v10, %v20328_v16  ;;  %v7006_v10 = vcombine.high %v7002_v49, %v20328_v16 }
 0x465   : > { %7768 = vrot.lane.b32.xlu0 %v6938_v2, %s20121_s22  ;;  %v6018_v2 = vrot.slane %v6011_v11, %v17002_v25  ;;  %s20176_s22 = smov 114   ;;  %v18824_v61 = vrot.slane %v7055_v55, %v17006_v30  ;;  %v18826_v34 = vpop.trf.xlu0 }
 0x466   : > { %v18790_v36 = vpop.permute.xlu1 %7568  ;;  %20473 = vst [vmem:[#allocation25_spill] sm:$0xff] %v18826_v34  ;;  %v6087_v40 = vcombine.low %v6062_v63, %v6070_v43  ;;  %v6088_v19 = vcombine.high %v6062_v63, %v6070_v43  ;;  %v8056_v43 = vsel %vm8055_vm0, %v18428_v12, %v18742_v35 }
 0x467   : > { %v6035_v60 = vcombine.low %v6010_v39, %v6018_v2  ;;  %v6036_v11 = vcombine.high %v6010_v39, %v6018_v2  ;;  %v7073_v63 = vcombine.high %v18824_v61, %v20328_v16 }
 0x468   : > { %7796 = vrot.lane.b32.xlu1 %v7002_v49, %s20123_s16  ;;  %s20173_s16 = smov 118   ;;  %v6095_v49 = vrot.slane %v6087_v40, %v17006_v30 }
 0x469   : > { %7776 = vrot.lane.b32.xlu0 %v7003_v45, %s20176_s22  ;;  %v7083_v45 = vrot.slane %v16425_v59, %v17002_v25  ;;  %v6043_v39 = vrot.slane %v6035_v60, %v17006_v30  ;;  %v6050_v2 = vrot.slane %v6036_v11, %v17006_v30  ;;  %v18830_v59 = vrot.slane %v7056_v44, %v17006_v30  ;;  %v20475_v60 = vld [vmem:[#allocation36_spill] sm:$0xff]  ;;  %v20476_v11 = vld [vmem:[#allocation58_spill] sm:$0xff]  ;;  %s20521_s22 = smov 66  }
 0x46a   : > { %v18808_v38 = vpop.permute.xlu1 %7572  ;;  %v6071_v33 = vcombine.low %v20477_v9, %v20476_v11 }
 0x46b   : > { %v7107_v55 = vcombine.low %v7083_v45, %v7099_v22  ;;  %v16426_v44 = vcombine.low %v6043_v39, %v6050_v2  ;;  %v16428_v34 = vcombine.high %v6043_v39, %v6050_v2 }
 0x46c   : > { %7804 = vrot.lane.b32.xlu1 %v7071_v51, %s20125_s18  ;;  %v20474_v51 = vld [vmem:[#allocation39_spill] sm:$0xff]  ;;  %s20170_s18 = smov 122   ;;  %v6078_v2 = vrot.slane %v6071_v33, %v17002_v25 }
 0x46d   : > { %7784 = vrot.lane.b32.xlu0 %v7004_v50, %s20173_s16  ;;  %v6079_v50 = vcombine.low %v20475_v60, %v20474_v51  ;;  %v6102_v51 = vrot.slane %v6088_v19, %v17006_v30  ;;  %v18855_v35 = vrot.slane %v7107_v55, %v17006_v30  ;;  %s20520_s16 = smov 52  }
 0x46e   : > { %v7581_v26 = vpop.permute.xlu1 %7580 }
 0x46f   : > { %v6086_v33 = vrot.slane %v6079_v50, %v17002_v25  ;;  %v16429_v11 = vcombine.low %v6095_v49, %v6102_v51  ;;  %v20479_v50 = vld [vmem:[#allocation59_spill] sm:$0xff] }
 0x470   : > { %7812 = vrot.lane.b32.xlu1 %v7072_v23, %s20127_s27  ;;  %v7074_v23 = vcombine.high %v18830_v59, %v20328_v16  ;;  %s20167_s27 = smov 126  }
 0x471   : > { %7792 = vrot.lane.b32.xlu0 %v7005_v21, %s20170_s18  ;;  %v7108_v21 = vcombine.high %v7083_v45, %v7099_v22  ;;  %v7090_v45 = vrot.slane %v16426_v44, %v17002_v25  ;;  %v7106_v22 = vrot.slane %v16428_v34, %v17002_v25  ;;  %v6104_v44 = vcombine.high %v6078_v2, %v6086_v33  ;;  %s20519_s18 = smov 62  }
 0x472   : > { %v7589_v14 = vpop.permute.xlu1 %7588 }
 0x473   : > { %v7557_v9 = vpop.permute.xlu0 %7556  ;;  %v18868_v34 = vrot.slane %v7108_v21, %v17006_v30  ;;  %v20480_v21 = vld [vmem:[#allocation45_spill] sm:$0xff] }
 0x474   : > { %v8058_v39 = vsel %vm8057_vm1, %v8056_v43, %v7557_v9  ;;  %7820 = vrot.lane.b32.xlu1 %v7073_v63, %s20158_s30  ;;  %s20507_s30 = smov 54  }
 0x475   : > { %v8060_v12 = vsel %vm8059_vm2, %v8058_v39, %v18760_v17  ;;  %7800 = vrot.lane.b32.xlu0 %v7006_v10, %s20167_s27  ;;  %v16431_v10 = vcombine.high %v6095_v49, %v6102_v51  ;;  %v20481_v51 = vld [vmem:[#allocation40_spill] sm:$0xff]  ;;  %s20514_s27 = smov 48  }
 0x476   : > { %v8062_v40 = vsel %vm8061_vm3, %v8060_v12, %v18772_v57  ;;  %v7597_v19 = vpop.permute.xlu1 %7596  ;;  %v6103_v57 = vcombine.low %v6078_v2, %v6086_v33  ;;  %v6131_v39 = vcombine.low %v20481_v51, %v20480_v21  ;;  %v7151_v12 = vrot.slane %v16429_v11, %v17002_v25 }
 0x477   : > { %v8064_v17 = vsel %vm8063_vm4, %v8062_v40, %v18790_v36  ;;  %v7577_v60 = vpop.permute.xlu0 %7576  ;;  %v20478_v36 = vld [vmem:[#allocation61_spill] sm:$0xff]  ;;  %v7167_v33 = vrot.slane %v16431_v10, %v17002_v25  ;;  %v7140_v11 = vcombine.high %v18868_v34, %v20328_v16 }
 0x478   : > { %v8066_v55 = vsel %vm8065_vm5, %v8064_v17, %v18808_v38  ;;  %7828 = vrot.lane.b32.xlu1 %v7074_v23, %s20155_s17  ;;  %v6123_v43 = vcombine.low %v20479_v50, %v20478_v36  ;;  %v7139_v38 = vcombine.high %v18855_v35, %v20328_v16  ;;  %v7123_v23 = vcombine.low %v7090_v45, %v7106_v22  ;;  %s20506_s17 = smov 40  }
 0x479   : > { %v8068_v63 = vsel %vm8067_vm6, %v8066_v55, %v7577_v60  ;;  %7808 = vrot.lane.b32.xlu0 %v18806_v32, %s20161_s15  ;;  %v7124_v32 = vcombine.high %v7090_v45, %v7106_v22  ;;  %v6118_v17 = vrot.slane %v6104_v44, %v17006_v30  ;;  %v6138_v10 = vrot.slane %v6131_v39, %v17002_v25  ;;  %v20484_v39 = vld [vmem:[#allocation50_spill] sm:$0xff]  ;;  %s20508_s15 = smov 44  }
 0x47a   : > { %v7605_v9 = vpop.permute.xlu1 %7604  ;;  %v8070_v49 = vsel %vm8069_vm7, %v8068_v63, %v7581_v26  ;;  %v6111_v26 = vrot.slane %v6103_v57, %v17006_v30  ;;  %v6130_v60 = vrot.slane %v6123_v43, %v17002_v25  ;;  %v7131_v63 = vrot.slane %v7123_v23, %v17006_v30 }
 0x47b   : > { %v7585_v2 = vpop.permute.xlu0 %7584  ;;  %v7175_v50 = vcombine.low %v7151_v12, %v7167_v33 }
 0x47c   : > { %v8072_v40 = vsel %vm8071_vm8, %v8070_v49, %v7585_v2  ;;  %7836 = vrot.lane.b32.xlu1 %v7139_v38, %s20149_s23  ;;  %v16430_v44 = vcombine.low %v6111_v26, %v6118_v17  ;;  %v16432_v36 = vcombine.high %v6111_v26, %v6118_v17  ;;  %v6155_v43 = vcombine.low %v6130_v60, %v6138_v10  ;;  %v20482_v49 = vld [vmem:[#allocation64_spill] sm:$0xff]  ;;  %v20483_v38 = vld [vmem:[#allocation63_spill] sm:$0xff]  ;;  %s20500_s23 = smov 36  }
 0x47d   : > { %7816 = vrot.lane.b32.xlu0 %v18824_v61, %s20164_s29  ;;  %v8074_v45 = vsel %vm20224_vm9, %v8072_v40, %v7589_v14  ;;  %v18897_v61 = vrot.slane %v7124_v32, %v17006_v30  ;;  %v6156_v14 = vcombine.high %v6130_v60, %v6138_v10  ;;  %v6139_v23 = vcombine.low %v20483_v38, %v20482_v49  ;;  %v20485_v2 = vld [vmem:[#allocation47_spill] sm:$0xff]  ;;  %v20487_v49 = vld [vmem:[#allocation52_spill] sm:$0xff]  ;;  %s20513_s29 = smov 58  }
 0x47e   : > { %v7613_v55 = vpop.permute.xlu1 %7612  ;;  %v7141_v51 = vcombine.high %v7131_v63, %v20328_v16  ;;  %v6147_v40 = vcombine.low %v20485_v2, %v20484_v39  ;;  %v7158_v17 = vrot.slane %v16430_v44, %v17002_v25  ;;  %v7174_v60 = vrot.slane %v16432_v36, %v17002_v25 }
 0x47f   : > { %v7593_v22 = vpop.permute.xlu0 %7592  ;;  %v6146_v10 = vrot.slane %v6139_v23, %v17002_v25 }
 0x480   : > { %v8076_v57 = vsel %vm20225_vm10, %v8074_v45, %v7593_v22  ;;  %7844 = vrot.lane.b32.xlu1 %v7140_v11, %s20143_s25  ;;  %v18914_v45 = vrot.slane %v7175_v50, %v17006_v30  ;;  %v6170_v22 = vrot.slane %v6156_v14, %v17006_v30  ;;  %v20488_v50 = vld [vmem:[#allocation68_spill] sm:$0xff]  ;;  %v7191_v23 = vcombine.low %v7158_v17, %v7174_v60  ;;  %s20498_s25 = smov 32  }
 0x481   : > { %7824 = vrot.lane.b32.xlu0 %v18830_v59, %s20152_s2  ;;  %v8078_v32 = vsel %vm20226_vm11, %v8076_v57, %v7597_v19  ;;  %v7176_v59 = vcombine.high %v7151_v12, %v7167_v33  ;;  %v6163_v19 = vrot.slane %v6155_v43, %v17006_v30  ;;  %v7142_v12 = vcombine.high %v18897_v61, %v20328_v16  ;;  %s20505_s2 = smov 50  }
 0x482   : > { %v7621_v21 = vpop.permute.xlu1 %7620  ;;  %v6154_v33 = vrot.slane %v6147_v40, %v17002_v25  ;;  %v7207_v14 = vcombine.high %v18914_v45, %v20328_v16 }
 0x483   : > { %v7601_v11 = vpop.permute.xlu0 %7600  ;;  %v16433_v2 = vcombine.low %v6163_v19, %v6170_v22  ;;  %v16435_v40 = vcombine.high %v6163_v19, %v6170_v22  ;;  %v18945_v19 = vrot.slane %v7191_v23, %v17006_v30 }
 0x484   : > { %v8080_v26 = vsel %vm20129_vm12, %v8078_v32, %v7601_v11  ;;  %7852 = vrot.lane.b32.xlu1 %v7141_v51, %s20137_s4  ;;  %v20489_v51 = vld [vmem:[#allocation66_spill] sm:$0xff]  ;;  %vm20136_vm12 = vcmask 277504   ;;  %v6171_v32 = vcombine.low %v6146_v10, %v6154_v33  ;;  %v6172_v11 = vcombine.high %v6146_v10, %v6154_v33  ;;  %s20494_s4 = smov 28  }
 0x485   : > { %7832 = vrot.lane.b32.xlu0 %v18855_v35, %s20146_s12  ;;  %v8082_v44 = vsel %vm20133_vm13, %v8080_v26, %v7605_v9  ;;  %v20486_v35 = vld [vmem:[#allocation55_spill] sm:$0xff]  ;;  %v6191_v39 = vcombine.low %v20489_v51, %v20488_v50  ;;  %v18934_v9 = vrot.slane %v7176_v59, %v17006_v30  ;;  %vm20142_vm13 = vcmask 310272   ;;  %s20499_s12 = smov 46  }
 0x486   : > { %v7629_v57 = vpop.permute.xlu1 %7628  ;;  %v6199_v38 = vcombine.low %v20487_v49, %v20486_v35  ;;  %v7219_v22 = vrot.slane %v16433_v2, %v17002_v25  ;;  %v7235_v10 = vrot.slane %v16435_v40, %v17002_v25  ;;  %v6179_v33 = vrot.slane %v6171_v32, %v17006_v30 }
 0x487   : > { %v7609_v36 = vpop.permute.xlu0 %7608  ;;  %v7208_v59 = vcombine.high %v18934_v9, %v20328_v16  ;;  %v6186_v49 = vrot.slane %v6172_v11, %v17006_v30  ;;  %v7209_v32 = vcombine.high %v18945_v19, %v20328_v16 }
 0x488   : > { %v8084_v43 = vsel %vm20130_vm14, %v8082_v44, %v7609_v36  ;;  %7860 = vrot.lane.b32.xlu1 %v7142_v12, %s20131_s3  ;;  %v6206_v36 = vrot.slane %v6199_v38, %v17002_v25  ;;  %vm20145_vm14 = vcmask 293888   ;;  %s20490_s3 = smov 24   ;;  %v7243_v11 = vcombine.low %v7219_v22, %v7235_v10 }
 0x489   : > { %7840 = vrot.lane.b32.xlu0 %v18868_v34, %s20140_s13  ;;  %v8086_v44 = vsel %vm20139_vm15, %v8084_v43, %v7613_v55  ;;  %v6198_v34 = vrot.slane %v6191_v39, %v17002_v25  ;;  %v7192_v55 = vcombine.high %v7158_v17, %v7174_v60  ;;  %v20492_v17 = vld [vmem:[#allocation71_spill] sm:$0xff]  ;;  %v20493_v60 = vld [vmem:[#allocation69_spill] sm:$0xff]  ;;  %vm20148_vm15 = vcmask 343040   ;;  %s20497_s13 = smov 42  }
 0x48a   : > { %v7637_v26 = vpop.permute.xlu1 %7636  ;;  %v16434_v2 = vcombine.low %v6179_v33, %v6186_v49 }
 0x48b   : > { %v7617_v12 = vpop.permute.xlu0 %7616  ;;  %v6223_v51 = vcombine.low %v6198_v34, %v6206_v36  ;;  %v6224_v39 = vcombine.high %v6198_v34, %v6206_v36  ;;  %v18959_v23 = vrot.slane %v7192_v55, %v17006_v30 }
 0x48c   : > { %v8088_v35 = vsel %vm20136_vm12, %v8086_v44, %v7617_v12  ;;  %7868 = vrot.lane.b32.xlu1 %v7207_v14, %s20134_s5  ;;  %s20491_s5 = smov 38   ;;  %vm20151_vm12 = vcmask 326656   ;;  %v6207_v14 = vcombine.low %v20493_v60, %v20492_v17  ;;  %v20495_v44 = vld [vmem:[#allocation60_spill] sm:$0xff]  ;;  %v20496_v12 = vld [vmem:[#allocation57_spill] sm:$0xff] }
 0x48d   : > { %7848 = vrot.lane.b32.xlu0 %v7131_v63, %s20490_s3  ;;  %v8090_v50 = vsel %vm20145_vm14, %v8088_v35, %v7621_v21  ;;  %v16436_v21 = vcombine.high %v6179_v33, %v6186_v49  ;;  %v6215_v36 = vcombine.low %v20496_v12, %v20495_v44  ;;  %vm20154_vm14 = vcmask 375808  }
 0x48e   : > { %v7645_v38 = vpop.permute.xlu1 %7644  ;;  %v6214_v33 = vrot.slane %v6207_v14, %v17002_v25  ;;  %v7210_v49 = vcombine.high %v18959_v23, %v20328_v16 }
 0x48f   : > { %v7625_v63 = vpop.permute.xlu0 %7624 }
 0x490   : > { %v8092_v43 = vsel %vm20142_vm13, %v8090_v50, %v7625_v63  ;;  %7876 = vrot.lane.b32.xlu1 %v7208_v59, %s20491_s5  ;;  %v6231_v59 = vrot.slane %v6223_v51, %v17006_v30  ;;  %vm20157_vm13 = vcmask 359424   ;;  %v7242_v50 = vrot.slane %v16436_v21, %v17002_v25  ;;  %v20501_v21 = vld [vmem:[#allocation74_spill] sm:$0xff] }
 0x491   : > { %7856 = vrot.lane.b32.xlu0 %v18897_v61, %s20494_s4  ;;  %v8094_v34 = vsel %vm20151_vm12, %v8092_v43, %v7629_v57  ;;  %v6238_v61 = vrot.slane %v6224_v39, %v17006_v30  ;;  %v7226_v57 = vrot.slane %v16434_v2, %v17002_v25  ;;  %v7251_v51 = vrot.slane %v7243_v11, %v17006_v30 }
 0x492   : > { %v7653_v40 = vpop.permute.xlu1 %7652  ;;  %v7244_v39 = vcombine.high %v7219_v22, %v7235_v10  ;;  %v6222_v43 = vrot.slane %v6215_v36, %v17002_v25  ;;  %vm20160_vm12 = vcmask 408576   ;;  %v20502_v22 = vld [vmem:[#allocation73_spill] sm:$0xff] }
 0x493   : > { %v7633_v35 = vpop.permute.xlu0 %7632  ;;  %v16437_v14 = vcombine.low %v6231_v59, %v6238_v61  ;;  %v6259_v10 = vcombine.low %v20502_v22, %v20501_v21  ;;  %v7259_v36 = vcombine.low %v7226_v57, %v7242_v50 }
 0x494   : > { %v8096_v55 = vsel %vm20148_vm15, %v8094_v34, %v7633_v35  ;;  %7884 = vrot.lane.b32.xlu1 %v7209_v32, %s20497_s13  ;;  %vm20163_vm15 = vcmask 392192   ;;  %v16439_v32 = vcombine.high %v6231_v59, %v6238_v61  ;;  %v6239_v44 = vcombine.low %v6214_v33, %v6222_v43  ;;  %v20503_v34 = vld [vmem:[#allocation65_spill] sm:$0xff]  ;;  %v20504_v35 = vld [vmem:[#allocation62_spill] sm:$0xff] }
 0x495   : > { %7864 = vrot.lane.b32.xlu0 %v18914_v45, %s20498_s25  ;;  %v8098_v17 = vsel %vm20157_vm13, %v8096_v55, %v7637_v26  ;;  %v6240_v2 = vcombine.high %v6214_v33, %v6222_v43  ;;  %v7275_v26 = vcombine.high %v7251_v51, %v20328_v16  ;;  %v7258_v12 = vrot.slane %v7244_v39, %v17006_v30 }
 0x496   : > { %v7661_v63 = vpop.permute.xlu1 %7660  ;;  %v6267_v55 = vcombine.low %v20504_v35, %v20503_v34  ;;  %v7287_v33 = vrot.slane %v16437_v14, %v17002_v25  ;;  %v7303_v43 = vrot.slane %v16439_v32, %v17002_v25  ;;  %vm20166_vm13 = vcmask 441344  }
 0x497   : > { %v7641_v60 = vpop.permute.xlu0 %7640  ;;  %v6254_v39 = vrot.slane %v6240_v2, %v17006_v30  ;;  %v7276_v14 = vcombine.high %v7258_v12, %v20328_v16 }
 0x498   : > { %v8100_v45 = vsel %vm20154_vm14, %v8098_v17, %v7641_v60  ;;  %7892 = vrot.lane.b32.xlu1 %v7210_v49, %s20499_s12  ;;  %vm20169_vm14 = vcmask 424960   ;;  %v7260_v49 = vcombine.high %v7226_v57, %v7242_v50  ;;  %v6247_v17 = vrot.slane %v6239_v44, %v17006_v30 }
 0x499   : > { %7872 = vrot.lane.b32.xlu0 %v18934_v9, %s20500_s23  ;;  %v8102_v59 = vsel %vm20163_vm15, %v8100_v45, %v7645_v38  ;;  %v6266_v38 = vrot.slane %v6259_v10, %v17002_v25  ;;  %v7267_v45 = vrot.slane %v7259_v36, %v17006_v30  ;;  %v6274_v50 = vrot.slane %v6267_v55, %v17002_v25  ;;  %v20510_v36 = vld [vmem:[#allocation76_spill] sm:$0xff] }
 0x49a   : > { %v7669_v11 = vpop.permute.xlu1 %7668  ;;  %v16438_v44 = vcombine.low %v6247_v17, %v6254_v39  ;;  %v16440_v2 = vcombine.high %v6247_v17, %v6254_v39  ;;  %vm20172_vm15 = vcmask 474112   ;;  %v7311_v22 = vcombine.low %v7287_v33, %v7303_v43 }
 0x49b   : > { %v7649_v61 = vpop.permute.xlu0 %7648  ;;  %v6291_v10 = vcombine.low %v6266_v38, %v6274_v50  ;;  %v7277_v55 = vcombine.high %v7267_v45, %v20328_v16 }
 0x49c   : > { %v8104_v9 = vsel %vm20160_vm12, %v8102_v59, %v7649_v61  ;;  %7900 = vrot.lane.b32.xlu1 %v7275_v26, %s20505_s2  ;;  %vm20175_vm12 = vcmask 457728   ;;  %v20509_v26 = vld [vmem:[#allocation78_spill] sm:$0xff]  ;;  %v20512_v61 = vld [vmem:[#allocation67_spill] sm:$0xff]  ;;  %v7294_v39 = vrot.slane %v16438_v44, %v17002_v25 }
 0x49d   : > { %7880 = vrot.lane.b32.xlu0 %v18945_v19, %s20506_s17  ;;  %v8106_v21 = vsel %vm20169_vm14, %v8104_v9, %v7653_v40  ;;  %v19007_v19 = vrot.slane %v7260_v49, %v17006_v30  ;;  %v6292_v40 = vcombine.high %v6266_v38, %v6274_v50  ;;  %v6275_v34 = vcombine.low %v20510_v36, %v20509_v26  ;;  %v20511_v59 = vld [vmem:[#allocation70_spill] sm:$0xff]  ;;  %v20516_v26 = vld [vmem:[#allocation72_spill] sm:$0xff] }
 0x49e   : > { %v7677_v60 = vpop.permute.xlu1 %7676  ;;  %v6283_v9 = vcombine.low %v20512_v61, %v20511_v59  ;;  %v7310_v38 = vrot.slane %v16440_v2, %v17002_v25  ;;  %vm20178_vm14 = vcmask 506880  }
 0x49f   : > { %v7657_v57 = vpop.permute.xlu0 %7656  ;;  %v6282_v50 = vrot.slane %v6275_v34, %v17002_v25 }
 0x4a0   : > { %v8108_v32 = vsel %vm20166_vm13, %v8106_v21, %v7657_v57  ;;  %7908 = vrot.lane.b32.xlu1 %v7276_v14, %s20507_s30  ;;  %vm20181_vm13 = vcmask 490496   ;;  %v19023_v21 = vrot.slane %v7311_v22, %v17006_v30  ;;  %v6299_v57 = vrot.slane %v6291_v10, %v17006_v30  ;;  %v20517_v22 = vld [vmem:[#allocation81_spill] sm:$0xff] }
 0x4a1   : > { %7888 = vrot.lane.b32.xlu0 %v18959_v23, %s20508_s15  ;;  %v8110_v49 = vsel %vm20175_vm12, %v8108_v32, %v7661_v63  ;;  %v7312_v23 = vcombine.high %v7287_v33, %v7303_v43  ;;  %v6306_v63 = vrot.slane %v6292_v40, %v17006_v30  ;;  %v7278_v33 = vcombine.high %v19007_v19, %v20328_v16 }
 0x4a2   : > { %v7685_v35 = vpop.permute.xlu1 %7684  ;;  %v6290_v43 = vrot.slane %v6283_v9, %v17002_v25  ;;  %vm20184_vm12 = vcmask 539648   ;;  %v7343_v40 = vcombine.high %v19023_v21, %v20328_v16  ;;  %v7327_v34 = vcombine.low %v7294_v39, %v7310_v38 }
 0x4a3   : > { %v7665_v14 = vpop.permute.xlu0 %7664  ;;  %v16441_v61 = vcombine.low %v6299_v57, %v6306_v63  ;;  %v16443_v9 = vcombine.high %v6299_v57, %v6306_v63 }
 0x4a4   : > { %v8112_v17 = vsel %vm20172_vm15, %v8110_v49, %v7665_v14  ;;  %7916 = vrot.lane.b32.xlu1 %v7277_v55, %s20513_s29  ;;  %v20518_v55 = vld [vmem:[#allocation79_spill] sm:$0xff]  ;;  %vm20185_vm15 = vcmask 523264   ;;  %v6307_v49 = vcombine.low %v6282_v50, %v6290_v43  ;;  %v6308_v14 = vcombine.high %v6282_v50, %v6290_v43 }
 0x4a5   : > { %7896 = vrot.lane.b32.xlu0 %v7251_v51, %s20514_s27  ;;  %v8114_v44 = vsel %vm20181_vm13, %v8112_v17, %v7669_v11  ;;  %v20515_v51 = vld [vmem:[#allocation75_spill] sm:$0xff]  ;;  %v6327_v59 = vcombine.low %v20518_v55, %v20517_v22  ;;  %v19042_v11 = vrot.slane %v7312_v23, %v17006_v30  ;;  %vm20187_vm13 = vcmask 572416  }
 0x4a6   : > { %v7693_v32 = vpop.permute.xlu1 %7692  ;;  %v6335_v36 = vcombine.low %v20516_v26, %v20515_v51  ;;  %v19053_v57 = vrot.slane %v7327_v34, %v17006_v30  ;;  %v7355_v63 = vrot.slane %v16441_v61, %v17002_v25  ;;  %v7371_v50 = vrot.slane %v16443_v9, %v17002_v25 }
 0x4a7   : > { %v7673_v2 = vpop.permute.xlu0 %7672  ;;  %v7344_v23 = vcombine.high %v19042_v11, %v20328_v16  ;;  %v6315_v43 = vrot.slane %v6307_v49, %v17006_v30  ;;  %v6322_v26 = vrot.slane %v6308_v14, %v17006_v30 }
 0x4a8   : > { %v8116_v10 = vsel %vm20178_vm14, %v8114_v44, %v7673_v2  ;;  %7924 = vrot.lane.b32.xlu1 %v7278_v33, %s20519_s18  ;;  %v6342_v33 = vrot.slane %v6335_v36, %v17002_v25  ;;  %vm20189_vm14 = vcmask 556032   ;;  %v7345_v49 = vcombine.high %v19053_v57, %v20328_v16 }
 0x4a9   : > { %7904 = vrot.lane.b32.xlu0 %v7258_v12, %s20520_s16  ;;  %v8118_v44 = vsel %vm20185_vm15, %v8116_v10, %v7677_v60  ;;  %v6334_v12 = vrot.slane %v6327_v59, %v17002_v25  ;;  %v7328_v60 = vcombine.high %v7294_v39, %v7310_v38  ;;  %v20524_v39 = vld [vmem:[#allocation84_spill] sm:$0xff]  ;;  %v20525_v38 = vld [vmem:[#allocation83_spill] sm:$0xff]  ;;  %vm20190_vm15 = vcmask 605184  }
 0x4aa   : > { %v7701_v17 = vpop.permute.xlu1 %7700  ;;  %v16442_v61 = vcombine.low %v6315_v43, %v6322_v26  ;;  %v7379_v14 = vcombine.low %v7355_v63, %v7371_v50 }
 0x4ab   : > { %v7681_v2 = vpop.permute.xlu0 %7680  ;;  %v6359_v55 = vcombine.low %v6334_v12, %v6342_v33  ;;  %v6360_v59 = vcombine.high %v6334_v12, %v6342_v33  ;;  %v19067_v34 = vrot.slane %v7328_v60, %v17006_v30 }
 0x4ac   : > { %v8120_v51 = vsel %vm20184_vm12, %v8118_v44, %v7681_v2  ;;  %7932 = vrot.lane.b32.xlu1 %v7343_v40, %s20521_s22  ;;  %vm20192_vm12 = vcmask 588800   ;;  %v6343_v40 = vcombine.low %v20525_v38, %v20524_v39  ;;  %v20527_v44 = vld [vmem:[#allocation80_spill] sm:$0xff]  ;;  %v20528_v2 = vld [vmem:[#allocation77_spill] sm:$0xff] }
 0x4ad   : > { %7912 = vrot.lane.b32.xlu0 %v7267_v45, %s20522_s26  ;;  %v8122_v22 = vsel %vm20189_vm14, %v8120_v51, %v7685_v35  ;;  %v16444_v35 = vcombine.high %v6315_v43, %v6322_v26  ;;  %v6351_v33 = vcombine.low %v20528_v2, %v20527_v44  ;;  %vm20194_vm14 = vcmask 637952  }
 0x4ae   : > { %v7709_v36 = vpop.permute.xlu1 %7708  ;;  %v6350_v43 = vrot.slane %v6343_v40, %v17002_v25  ;;  %v7346_v26 = vcombine.high %v19067_v34, %v20328_v16 }
 0x4af   : > { %v7689_v45 = vpop.permute.xlu0 %7688 }
 0x4b0   : > { %v8124_v10 = vsel %vm20187_vm13, %v8122_v22, %v7689_v45  ;;  %7940 = vrot.lane.b32.xlu1 %v7344_v23, %s20523_s24  ;;  %v6367_v23 = vrot.slane %v6359_v55, %v17006_v30  ;;  %vm20197_vm13 = vcmask 621568   ;;  %v7378_v22 = vrot.slane %v16444_v35, %v17002_v25  ;;  %v20533_v35 = vld [vmem:[#allocation88_spill] sm:$0xff] }
 0x4b1   : > { %7920 = vrot.lane.b32.xlu0 %v19007_v19, %s20526_s0  ;;  %v8126_v12 = vsel %vm20192_vm12, %v8124_v10, %v7693_v32  ;;  %v6374_v19 = vrot.slane %v6360_v59, %v17006_v30  ;;  %v7362_v32 = vrot.slane %v16442_v61, %v17002_v25  ;;  %v7387_v55 = vrot.slane %v7379_v14, %v17006_v30 }
 0x4b2   : > { %v7717_v9 = vpop.permute.xlu1 %7716  ;;  %v7380_v59 = vcombine.high %v7355_v63, %v7371_v50  ;;  %v6358_v10 = vrot.slane %v6351_v33, %v17002_v25  ;;  %vm20199_vm12 = vcmask 670720   ;;  %v20534_v63 = vld [vmem:[#allocation86_spill] sm:$0xff] }
 0x4b3   : > { %v7697_v51 = vpop.permute.xlu0 %7696  ;;  %v16445_v40 = vcombine.low %v6367_v23, %v6374_v19  ;;  %v6395_v50 = vcombine.low %v20534_v63, %v20533_v35  ;;  %v7395_v33 = vcombine.low %v7362_v32, %v7378_v22 }
 0x4b4   : > { %v8128_v60 = vsel %vm20190_vm15, %v8126_v12, %v7697_v51  ;;  %7948 = vrot.lane.b32.xlu1 %v7345_v49, %s20529_s14  ;;  %vm20201_vm15 = vcmask 654336   ;;  %v16447_v49 = vcombine.high %v6367_v23, %v6374_v19  ;;  %v6375_v44 = vcombine.low %v6350_v43, %v6358_v10  ;;  %v20535_v12 = vld [vmem:[#allocation85_spill] sm:$0xff]  ;;  %v20536_v51 = vld [vmem:[#allocation82_spill] sm:$0xff] }
 0x4b5   : > { %7928 = vrot.lane.b32.xlu0 %v19023_v21, %s20530_s10  ;;  %v8130_v39 = vsel %vm20197_vm13, %v8128_v60, %v7701_v17  ;;  %v6376_v61 = vcombine.high %v6350_v43, %v6358_v10  ;;  %v7411_v17 = vcombine.high %v7387_v55, %v20328_v16  ;;  %v7394_v2 = vrot.slane %v7380_v59, %v17006_v30 }
 0x4b6   : > { %v7725_v45 = vpop.permute.xlu1 %7724  ;;  %v6403_v60 = vcombine.low %v20536_v51, %v20535_v12  ;;  %v7423_v43 = vrot.slane %v16445_v40, %v17002_v25  ;;  %v7439_v10 = vrot.slane %v16447_v49, %v17002_v25  ;;  %vm20203_vm13 = vcmask 703488  }
 0x4b7   : > { %v7705_v38 = vpop.permute.xlu0 %7704  ;;  %v6390_v59 = vrot.slane %v6376_v61, %v17006_v30  ;;  %v7412_v40 = vcombine.high %v7394_v2, %v20328_v16 }
 0x4b8   : > { %v8132_v21 = vsel %vm20194_vm14, %v8130_v39, %v7705_v38  ;;  %7956 = vrot.lane.b32.xlu1 %v7346_v26, %s20531_s20  ;;  %vm20206_vm14 = vcmask 687104   ;;  %v7396_v26 = vcombine.high %v7362_v32, %v7378_v22  ;;  %v6383_v39 = vrot.slane %v6375_v44, %v17006_v30 }
 0x4b9   : > { %7936 = vrot.lane.b32.xlu0 %v19042_v11, %s20532_s8  ;;  %v8134_v23 = vsel %vm20201_vm15, %v8132_v21, %v7709_v36  ;;  %v6402_v36 = vrot.slane %v6395_v50, %v17002_v25  ;;  %v7403_v21 = vrot.slane %v7395_v33, %v17006_v30  ;;  %v6410_v22 = vrot.slane %v6403_v60, %v17002_v25  ;;  %v20542_v33 = vld [vmem:[#allocation89_spill] sm:$0xff] }
 0x4ba   : > { %v7733_v14 = vpop.permute.xlu1 %7732  ;;  %v16446_v44 = vcombine.low %v6383_v39, %v6390_v59  ;;  %v16448_v61 = vcombine.high %v6383_v39, %v6390_v59  ;;  %vm20207_vm15 = vcmask 736256   ;;  %v7447_v63 = vcombine.low %v7423_v43, %v7439_v10 }
 0x4bb   : > { %v7713_v19 = vpop.permute.xlu0 %7712  ;;  %v6427_v50 = vcombine.low %v6402_v36, %v6410_v22  ;;  %v7413_v60 = vcombine.high %v7403_v21, %v20328_v16 }
 0x4bc   : > { %v8136_v11 = vsel %vm20199_vm12, %v8134_v23, %v7713_v19  ;;  %7964 = vrot.lane.b32.xlu1 %v7411_v17, %s20537_s7  ;;  %vm20208_vm12 = vcmask 719872   ;;  %v20541_v17 = vld [vmem:[#allocation91_spill] sm:$0xff]  ;;  %v7430_v59 = vrot.slane %v16446_v44, %v17002_v25 }
 0x4bd   : > { %7944 = vrot.lane.b32.xlu0 %v19053_v57, %s20538_s11  ;;  %v8138_v35 = vsel %vm20206_vm14, %v8136_v11, %v7717_v9  ;;  %v19115_v57 = vrot.slane %v7396_v26, %v17006_v30  ;;  %v6428_v9 = vcombine.high %v6402_v36, %v6410_v22  ;;  %v6411_v12 = vcombine.low %v20542_v33, %v20541_v17  ;;  %v20543_v11 = vld [vmem:[#allocation90_spill] sm:$0xff]  ;;  %v20544_v26 = vld [vmem:[#allocation87_spill] sm:$0xff] }
 0x4be   : > { %v7741_v38 = vpop.permute.xlu1 %7740  ;;  %v7446_v36 = vrot.slane %v16448_v61, %v17002_v25  ;;  %vm20209_vm14 = vcmask 769024  }
 0x4bf   : > { %v7721_v32 = vpop.permute.xlu0 %7720  ;;  %v6418_v22 = vrot.slane %v6411_v12, %v17002_v25  ;;  %v7414_v17 = vcombine.high %v19115_v57, %v20328_v16 }
 0x4c0   : > { %v8140_v49 = vsel %vm20203_vm13, %v8138_v35, %v7721_v32  ;;  %7972 = vrot.lane.b32.xlu1 %v7412_v40, %s20539_s21  ;;  %v6419_v40 = vcombine.low %v20544_v26, %v20543_v11  ;;  %vm20210_vm13 = vcmask 752640   ;;  %v7455_v35 = vrot.slane %v7447_v63, %v17006_v30  ;;  %s20553_s21 = smov 106  }
 0x4c1   : > { %7952 = vrot.lane.b32.xlu0 %v19067_v34, %s20540_s6  ;;  %v8142_v23 = vsel %vm20208_vm12, %v8140_v49, %v7725_v45  ;;  %v7448_v34 = vcombine.high %v7423_v43, %v7439_v10  ;;  %v6435_v45 = vrot.slane %v6427_v50, %v17006_v30  ;;  %v6442_v32 = vrot.slane %v6428_v9, %v17006_v30 }
 0x4c2   : > { %v7749_v51 = vpop.permute.xlu1 %7748  ;;  %v6426_v44 = vrot.slane %v6419_v40, %v17002_v25  ;;  %vm20211_vm12 = vcmask 801792   ;;  %v7479_v61 = vcombine.high %v7455_v35, %v20328_v16  ;;  %v7463_v50 = vcombine.low %v7430_v59, %v7446_v36 }
 0x4c3   : > { %v7729_v19 = vpop.permute.xlu0 %7728  ;;  %v7462_v63 = vrot.slane %v7448_v34, %v17006_v30  ;;  %v16449_v9 = vcombine.low %v6435_v45, %v6442_v32  ;;  %v16451_v33 = vcombine.high %v6435_v45, %v6442_v32  ;;  %v7464_v40 = vcombine.high %v7430_v59, %v7446_v36 }
 0x4c4   : > { %v8144_v39 = vsel %vm20207_vm15, %v8142_v23, %v7729_v19  ;;  %7980 = vrot.lane.b32.xlu1 %v7413_v60, %s20545_s1  ;;  %vm20212_vm15 = vcmask 785408   ;;  %s20548_s1 = smov 84   ;;  %v6443_v12 = vcombine.low %v6418_v22, %v6426_v44  ;;  %v7471_v26 = vrot.slane %v7463_v50, %v17006_v30 }
 0x4c5   : > { %7960 = vrot.lane.b32.xlu0 %v7387_v55, %s20546_s19  ;;  %v8146_v43 = vsel %vm20210_vm13, %v8144_v39, %v7733_v14  ;;  %v6444_v14 = vcombine.high %v6418_v22, %v6426_v44  ;;  %vm20213_vm13 = vcmask 834560   ;;  %v7491_v39 = vrot.slane %v16449_v9, %v17002_v25  ;;  %s20558_s19 = smov 104  }
 0x4c6   : > { %v7757_v49 = vpop.permute.xlu1 %7756  ;;  %v7507_v34 = vrot.slane %v16451_v33, %v17002_v25  ;;  %v7478_v59 = vrot.slane %v7464_v40, %v17006_v30  ;;  %v7481_v44 = vcombine.high %v7471_v26, %v20328_v16 }
 0x4c7   : > { %v7737_v10 = vpop.permute.xlu0 %7736  ;;  %v6458_v45 = vrot.slane %v6444_v14, %v17006_v30 }
 0x4c8   : > { %v8148_v55 = vsel %vm20209_vm14, %v8146_v43, %v7737_v10  ;;  %7988 = vrot.lane.b32.xlu1 %v7414_v17, %s20547_s9  ;;  %s20549_s9 = smov 98   ;;  %vm20214_vm14 = vcmask 818176  }
 0x4c9   : > { %7968 = vrot.lane.b32.xlu0 %v7394_v2, %s20548_s1  ;;  %v8150_v23 = vsel %vm20212_vm15, %v8148_v55, %v7741_v38  ;;  %s20550_s1 = smov 88   ;;  %v7480_v2 = vcombine.high %v7462_v63, %v20328_v16  ;;  %v6451_v38 = vrot.slane %v6443_v12, %v17006_v30  ;;  %vm20215_vm15 = vcmask 867328  }
 0x4ca   : > { %v7765_v60 = vpop.permute.xlu1 %7764  ;;  %v7515_v55 = vcombine.low %v7491_v39, %v7507_v34 }
 0x4cb   : > { %v7745_v19 = vpop.permute.xlu0 %7744  ;;  %v16450_v36 = vcombine.low %v6451_v38, %v6458_v45  ;;  %v16452_v43 = vcombine.high %v6451_v38, %v6458_v45 }
 0x4cc   : > { %v8152_v11 = vsel %vm20211_vm12, %v8150_v23, %v7745_v19  ;;  %7996 = vrot.lane.b32.xlu1 %v7479_v61, %s20549_s9  ;;  %s20551_s9 = smov 102   ;;  %vm20216_vm12 = vcmask 850944   ;;  %v7523_v14 = vrot.slane %v7515_v55, %v17006_v30  ;;  %v7516_v23 = vcombine.high %v7491_v39, %v7507_v34 }
 0x4cd   : > { %7976 = vrot.lane.b32.xlu0 %v7403_v21, %s20550_s1  ;;  %v8154_v22 = vsel %vm20214_vm14, %v8152_v11, %v7749_v51  ;;  %s20552_s1 = smov 92   ;;  %vm20217_vm14 = vcmask 900096   ;;  %v7498_v9 = vrot.slane %v16450_v36, %v17002_v25  ;;  %v7514_v33 = vrot.slane %v16452_v43, %v17002_v25 }
 0x4ce   : > { %v7773_v32 = vpop.permute.xlu1 %7772  ;;  %v7530_v40 = vrot.slane %v7516_v23, %v17006_v30 }
 0x4cf   : > { %v7753_v17 = vpop.permute.xlu0 %7752  ;;  %v7531_v38 = vcombine.low %v7498_v9, %v7514_v33 }
 0x4d0   : > { %v8156_v21 = vsel %vm20213_vm13, %v8154_v22, %v7753_v17  ;;  %8004 = vrot.lane.b32.xlu1 %v7480_v2, %s20551_s9  ;;  %vm20218_vm13 = vcmask 883712   ;;  %s20554_s9 = smov 96   ;;  %v7547_v2 = vcombine.high %v7523_v14, %v20328_v16  ;;  %v7532_v17 = vcombine.high %v7498_v9, %v7514_v33 }
 0x4d1   : > { %7984 = vrot.lane.b32.xlu0 %v19115_v57, %s20552_s1  ;;  %v8158_v51 = vsel %vm20216_vm12, %v8156_v21, %v7757_v49  ;;  %v7482_v57 = vcombine.high %v7478_v59, %v20328_v16  ;;  %vm20219_vm12 = vcmask 932864   ;;  %s20557_s1 = smov 114   ;;  %v7539_v22 = vrot.slane %v7531_v38, %v17006_v30 }
 0x4d2   : > { %v7781_v10 = vpop.permute.xlu1 %7780 }
 0x4d3   : > { %v7761_v61 = vpop.permute.xlu0 %7760 }
 0x4d4   : > { %v8160_v50 = vsel %vm20215_vm15, %v8158_v51, %v7761_v61  ;;  %8012 = vrot.lane.b32.xlu1 %v7481_v44, %s20553_s21  ;;  %s20555_s21 = smov 110   ;;  %vm20220_vm15 = vcmask 916480   ;;  %v7546_v44 = vrot.slane %v7532_v17, %v17006_v30 }
 0x4d5   : > { %7992 = vrot.lane.b32.xlu0 %v7455_v35, %s20554_s9  ;;  %v8162_v49 = vsel %vm20218_vm13, %v8160_v50, %v7765_v60  ;;  %s20556_s9 = smov 100   ;;  %vm20221_vm13 = vcmask 965632   ;;  %v20563_v50 = vld [vmem:[#allocation92_spill] sm:$0xff] }
 0x4d6   : > { %v7789_v12 = vpop.permute.xlu1 %7788 }
 0x4d7   : > { %v7769_v19 = vpop.permute.xlu0 %7768 }
 0x4d8   : > { %v8164_v11 = vsel %vm20217_vm14, %v8162_v49, %v7769_v19  ;;  %8020 = vrot.lane.b32.xlu1 %v7482_v57, %s20555_s21  ;;  %vm20222_vm14 = vcmask 949248   ;;  %s20559_s21 = smov 118   ;;  %v20564_v57 = vld [vmem:[#allocation93_spill] sm:$0xff] }
 0x4d9   : > { %8000 = vrot.lane.b32.xlu0 %v7462_v63, %s20556_s9  ;;  %v8166_v45 = vsel %vm20220_vm15, %v8164_v11, %v7773_v32  ;;  %v7548_v63 = vcombine.high %v7530_v40, %v20328_v16  ;;  %s20560_s9 = smov 108   ;;  %vm8175_vm15 = vcmask 998400   ;;  %v20565_v9 = vcombine.low %v20563_v50, %v20564_v57 }
 0x4da   : > { %v7797_v35 = vpop.permute.xlu1 %7796  ;;  %v20569_v11 = vcombine.high %v20563_v50, %v20564_v57  ;;  %v20579_v50 = vcombine.low %v18166_v47, %v18169_v52 }
 0x4db   : > { %v7777_v39 = vpop.permute.xlu0 %7776  ;;  %v19195_v33 = vrot.slane %v20565_v9, %v17006_v30 }
 0x4dc   : > { %v8168_v60 = vsel %vm20219_vm12, %v8166_v45, %v7777_v39  ;;  %8028 = vrot.lane.b32.xlu1 %v7547_v2, %s20557_s1  ;;  %vm8173_vm12 = vcmask 982016   ;;  %s20561_s1 = smov 122  }
 0x4dd   : > { %8008 = vrot.lane.b32.xlu0 %v7471_v26, %s20558_s19  ;;  %v8170_v21 = vsel %vm20222_vm14, %v8168_v60, %v7781_v10  ;;  %v7549_v26 = vcombine.high %v7539_v22, %v20328_v16  ;;  %s20562_s19 = smov 112   ;;  %vm8179_vm14 = vcmask 1031168   ;;  %v14618_v19 = vcombine.high %v19195_v33, %v20328_v16 }
 0x4de   : > { %v7805_v34 = vpop.permute.xlu1 %7804 }
 0x4df   : > { %v7785_v36 = vpop.permute.xlu0 %7784  ;;  %v8181_v2 = vsel %vm8055_vm0, %v18793_v58, %v7805_v34  ;;  %v20574_v34 = vld [vmem:[#allocation94_spill] sm:$0xff] }
 0x4e0   : > { %v8172_v32 = vsel %vm20221_vm13, %v8170_v21, %v7785_v36  ;;  %8036 = vrot.lane.b32.xlu1 %v7548_v63, %s20559_s21  ;;  %vm8177_vm13 = vcmask 1014784   ;;  %s20566_s21 = smov 126   ;;  %v20575_v21 = vcombine.low %v18137_v54, %v20574_v34 }
 0x4e1   : > { %8016 = vrot.lane.b32.xlu0 %v7478_v59, %s20560_s9  ;;  %v8174_v55 = vsel %vm8173_vm12, %v8172_v32, %v7789_v12  ;;  %v7550_v59 = vcombine.high %v7546_v44, %v20328_v16 }
 0x4e2   : > { %v7813_v43 = vpop.permute.xlu1 %7812  ;;  %v14610_v36 = vrot.slane %v20575_v21, %v17006_v30 }
 0x4e3   : > { %v7793_v51 = vpop.permute.xlu0 %7792 }
 0x4e4   : > { %v8176_v10 = vsel %vm8175_vm15, %v8174_v55, %v7793_v51  ;;  %8044 = vrot.lane.b32.xlu1 %v7549_v26, %s20561_s1  ;;  %s20567_s1 = sshll.u32 %s16961_s28, 4  ;;  %s20571_s28 = smov 120   ;;  %v14620_v51 = vcombine.high %v14610_v36, %v20328_v16 }
 0x4e5   : > { %8024 = vrot.lane.b32.xlu0 %v7523_v14, %s20562_s19  ;;  %v8178_v12 = vsel %vm8177_vm13, %v8176_v10, %v7797_v35  ;;  %s19202_s9 = scalar_lea.vmem [#allocation5], %s20567_s1  ;;  %s20568_s19 = smov 116   ;;  %v14601_v35 = vrot.slane %v20569_v11, %v17006_v30 }
 0x4e6   : > { %v7821_v61 = vpop.permute.xlu1 %7820  ;;  %s20570_s1 = smov 2  }
 0x4e7   : > { %v7801_v23 = vpop.permute.xlu0 %7800  ;;  %v14619_v39 = vcombine.high %v14601_v35, %v20328_v16 }
 0x4e8   : > { %v8180_v49 = vsel %vm8179_vm14, %v8178_v12, %v7801_v23  ;;  %8052 = vrot.lane.b32.xlu1 %v7550_v59, %s20566_s21  ;;  %s20572_s21 = smov 6  }
 0x4e9   : > { %8244 = vst [vmem:[%s19202_s9] sm:$0xf] %v8180_v49  ;;  %8032 = vrot.lane.b32.xlu0 %v7530_v40, %s20568_s19  ;;  %s20573_s19 = smov 124  }
 0x4ea   : > { %v7829_v14 = vpop.permute.xlu1 %7828 }
 0x4eb   : > { %v7809_v38 = vpop.permute.xlu0 %7808 }
 0x4ec   : > { %v8182_v45 = vsel %vm8057_vm1, %v8181_v2, %v7809_v38  ;;  %15643 = vrot.lane.b32.xlu1 %v14618_v19, %s20570_s1  ;;  %s20577_s1 = smov 8  }
 0x4ed   : > { %8040 = vrot.lane.b32.xlu0 %v7539_v22, %s20571_s28  ;;  %v8183_v60 = vsel %vm8059_vm2, %v8182_v45, %v7813_v43  ;;  %v20576_v43 = vcombine.high %v18137_v54, %v20574_v34  ;;  %v14662_v54 = vrot.slane %v20579_v50, %v17006_v30  ;;  %s20584_s28 = smov 18  }
 0x4ee   : > { %v7837_v40 = vpop.permute.xlu1 %7836 }
 0x4ef   : > { %v7817_v63 = vpop.permute.xlu0 %7816  ;;  %v14617_v26 = vrot.slane %v20576_v43, %v17006_v30  ;;  %v14686_v49 = vcombine.high %v14662_v54, %v20328_v16 }
 0x4f0   : > { %v8184_v17 = vsel %vm8061_vm3, %v8183_v60, %v7817_v63  ;;  %15651 = vrot.lane.b32.xlu1 %v14619_v39, %s20572_s21  ;;  %s20578_s21 = smov 4  }
 0x4f1   : > { %8048 = vrot.lane.b32.xlu0 %v7546_v44, %s20573_s19  ;;  %v8185_v22 = vsel %vm8063_vm4, %v8184_v17, %v7821_v61  ;;  %v14621_v61 = vcombine.high %v14617_v26, %v20328_v16  ;;  %s20580_s19 = smov 10  }
 0x4f2   : > { %v7845_v58 = vpop.permute.xlu1 %7844 }
 0x4f3   : > { %v7825_v32 = vpop.permute.xlu0 %7824 }
 0x4f4   : > { %v8186_v55 = vsel %vm8065_vm5, %v8185_v22, %v7825_v32  ;;  %15655 = vrot.lane.b32.xlu1 %v14610_v36, %s20577_s1  ;;  %s20581_s1 = smov 14  }
 0x4f5   : > { %15647 = vrot.lane.b32.xlu0 %v14601_v35, %s20578_s21  ;;  %v8187_v10 = vsel %vm8067_vm6, %v8186_v55, %v7829_v14  ;;  %v20582_v14 = vcombine.high %v18166_v47, %v18169_v52  ;;  %s20583_s21 = smov 12   ;;  %v20595_v55 = vcombine.low %v18224_v1, %v18227_v5 }
 0x4f6   : > { %v7853_v44 = vpop.permute.xlu1 %7852 }
 0x4f7   : > { %v7833_v59 = vpop.permute.xlu0 %7832  ;;  %v14669_v19 = vrot.slane %v20582_v14, %v17006_v30 }
 0x4f8   : > { %v8188_v57 = vsel %vm8069_vm7, %v8187_v10, %v7833_v59  ;;  %15659 = vrot.lane.b32.xlu1 %v14620_v51, %s20580_s19  ;;  %s20588_s19 = smov 22   ;;  %v13746_v51 = vcombine.low %v18291_v53, %v18303_v42  ;;  %v20598_v59 = vld [vmem:[#allocation96_spill] sm:$0xff] }
 0x4f9   : > { %15667 = vrot.lane.b32.xlu0 %v14621_v61, %s20581_s1  ;;  %v8189_v12 = vsel %vm8071_vm8, %v8188_v57, %v7837_v40  ;;  %v14687_v45 = vcombine.high %v14669_v19, %v20328_v16  ;;  %v20585_v40 = vld [vmem:[#allocation95_spill] sm:$0xff]  ;;  %s20587_s1 = smov 16   ;;  %v13738_v61 = vcombine.low %v20598_v59, %v18247_v56 }
 0x4fa   : > { %v7861_v9 = vpop.permute.xlu1 %7860  ;;  %v20586_v39 = vcombine.low %v18192_v0, %v20585_v40  ;;  %v20590_v34 = vcombine.high %v18192_v0, %v20585_v40  ;;  %v13753_v53 = vrot.slane %v13746_v51, %v17002_v25  ;;  %v13814_v51 = vcombine.low %v18341_v62, %v18347_v20 }
 0x4fb   : > { %v7841_v23 = vpop.permute.xlu0 %7840  ;;  %v13745_v56 = vrot.slane %v13738_v61, %v17002_v25 }
 0x4fc   : > { %v8190_v11 = vsel %vm20224_vm9, %v8189_v12, %v7841_v23  ;;  %15663 = vrot.lane.b32.xlu1 %v14617_v26, %s20583_s21  ;;  %v14678_v60 = vrot.slane %v20586_v39, %v17006_v30  ;;  %vm20589_vm9 = vcmask 211968   ;;  %v14685_v21 = vrot.slane %v20590_v34, %v17006_v30  ;;  %s20593_s21 = smov 26  }
 0x4fd   : > { %15675 = vrot.lane.b32.xlu0 %v14686_v49, %s20584_s28  ;;  %v8191_v2 = vsel %vm20225_vm10, %v8190_v11, %v7845_v58  ;;  %vm20591_vm10 = vcmask 228352   ;;  %s20592_s28 = smov 20  }
 0x4fe   : > { %v7869_v35 = vpop.permute.xlu1 %7868  ;;  %v14688_v58 = vcombine.high %v14678_v60, %v20328_v16  ;;  %v14689_v26 = vcombine.high %v14685_v21, %v20328_v16 }
 0x4ff   : > { %v7849_v38 = vpop.permute.xlu0 %7848 }
 0x500   : > { %v8192_v47 = vsel %vm20226_vm11, %v8191_v2, %v7849_v38  ;;  %15671 = vrot.lane.b32.xlu1 %v14662_v54, %s20587_s1  ;;  %vm20594_vm11 = vcmask 244736   ;;  %v13771_v2 = vcombine.high %v13745_v56, %v13753_v53  ;;  %v13762_v38 = vcombine.low %v18319_v13, %v18333_v48 }
 0x501   : > { %15683 = vrot.lane.b32.xlu0 %v14687_v45, %s20588_s19  ;;  %v8193_v63 = vsel %vm20589_vm9, %v8192_v47, %v7853_v44  ;;  %v14730_v44 = vrot.slane %v20595_v55, %v17006_v30  ;;  %vm20596_vm9 = vcmask 261120   ;;  %s20597_s19 = smov 30   ;;  %v20607_v47 = vcombine.high %v18250_v8, %v18253_v27 }
 0x502   : > { %v7877_v52 = vpop.permute.xlu1 %7876  ;;  %v13785_v48 = vrot.slane %v13771_v2, %v17006_v30  ;;  %v13769_v34 = vrot.slane %v13762_v38, %v17002_v25 }
 0x503   : > { %v7857_v17 = vpop.permute.xlu0 %7856  ;;  %v14754_v57 = vcombine.high %v14730_v44, %v20328_v16 }
 0x504   : > { %v8194_v36 = vsel %vm20591_vm10, %v8193_v63, %v7857_v17  ;;  %15679 = vrot.lane.b32.xlu1 %v14669_v19, %s20592_s28  ;;  %vm20599_vm10 = vcmask 277504   ;;  %v20608_v63 = vld [vmem:[#allocation97_spill] sm:$0xff] }
 0x505   : > { %15691 = vrot.lane.b32.xlu0 %v14688_v58, %s20593_s21  ;;  %v8195_v32 = vsel %vm20594_vm11, %v8194_v36, %v7861_v9  ;;  %v20600_v9 = vcombine.high %v18224_v1, %v18227_v5  ;;  %vm20601_vm11 = vcmask 293888   ;;  %v20604_v1 = vcombine.low %v18250_v8, %v18253_v27 }
 0x506   : > { %v7885_v22 = vpop.permute.xlu1 %7884  ;;  %v13754_v17 = vcombine.low %v20608_v63, %v18279_v18  ;;  %v20611_v18 = vcombine.low %v18282_v6, %v18285_v15  ;;  %v20623_v63 = vld [vmem:[#allocation106_spill] sm:$0xff] }
 0x507   : > { %v7865_v43 = vpop.permute.xlu0 %7864  ;;  %v14737_v12 = vrot.slane %v20600_v9, %v17006_v30  ;;  %v14746_v5 = vrot.slane %v20604_v1, %v17006_v30  ;;  %v20615_v9 = vld [vmem:[#allocation99_spill] sm:$0xff]  ;;  %v20619_v1 = vld [vmem:[#allocation100_spill] sm:$0xff] }
 0x508   : > { %v8196_v0 = vsel %vm20596_vm9, %v8195_v32, %v7865_v43  ;;  %15687 = vrot.lane.b32.xlu1 %v14678_v60, %s20490_s3  ;;  %vm20603_vm9 = vcmask 310272   ;;  %v13761_v32 = vrot.slane %v13754_v17, %v17002_v25  ;;  %v13830_v17 = vcombine.low %v20623_v63, %v18367_v41 }
 0x509   : > { %15699 = vrot.lane.b32.xlu0 %v14689_v26, %s20597_s19  ;;  %v8197_v50 = vsel %vm20599_vm10, %v8196_v0, %v7869_v35  ;;  %s20602_s19 = smov 34   ;;  %v14755_v19 = vcombine.high %v14737_v12, %v20328_v16  ;;  %vm20605_vm10 = vcmask 326656   ;;  %v13770_v35 = vcombine.low %v13745_v56, %v13753_v53 }
 0x50a   : > { %v7893_v10 = vpop.permute.xlu1 %7892  ;;  %v14756_v60 = vcombine.high %v14746_v5, %v20328_v16  ;;  %v13787_v0 = vcombine.high %v13761_v32, %v13769_v34 }
 0x50b   : > { %v7873_v54 = vpop.permute.xlu0 %7872  ;;  %v13778_v13 = vrot.slane %v13770_v35, %v17006_v30 }
 0x50c   : > { %v8198_v23 = vsel %vm20601_vm11, %v8197_v50, %v7873_v54  ;;  %15695 = vrot.lane.b32.xlu1 %v14685_v21, %s20494_s4  ;;  %vm20606_vm11 = vcmask 343040   ;;  %v20614_v54 = vcombine.high %v18282_v6, %v18285_v15  ;;  %v13801_v56 = vrot.slane %v13787_v0, %v17006_v30 }
 0x50d   : > { %15707 = vrot.lane.b32.xlu0 %v14754_v57, %s20602_s19  ;;  %v8199_v49 = vsel %vm20603_vm9, %v8198_v23, %v7877_v52  ;;  %v14753_v52 = vrot.slane %v20607_v47, %v17006_v30  ;;  %vm20609_vm9 = vcmask 359424   ;;  %v16469_v26 = vcombine.low %v13778_v13, %v13785_v48 }
 0x50e   : > { %v7901_v42 = vpop.permute.xlu1 %7900  ;;  %v16471_v55 = vcombine.high %v13778_v13, %v13785_v48  ;;  %v14805_v57 = vrot.slane %v20614_v54, %v17006_v30  ;;  %v13821_v6 = vrot.slane %v13814_v51, %v17002_v25  ;;  %v13837_v0 = vrot.slane %v13830_v17, %v17002_v25 }
 0x50f   : > { %v7881_v14 = vpop.permute.xlu0 %7880  ;;  %v14757_v27 = vcombine.high %v14753_v52, %v20328_v16  ;;  %v14834_v62 = vrot.slane %v16469_v26, %v17002_v25 }
 0x510   : > { %v8200_v11 = vsel %vm20605_vm10, %v8199_v49, %v7881_v14  ;;  %15703 = vrot.lane.b32.xlu1 %v14730_v44, %s20498_s25  ;;  %vm20610_vm10 = vcmask 375808   ;;  %v13786_v44 = vcombine.low %v13761_v32, %v13769_v34  ;;  %v14850_v20 = vrot.slane %v16471_v55, %v17002_v25 }
 0x511   : > { %15715 = vrot.lane.b32.xlu0 %v14755_v19, %s20491_s5  ;;  %v8201_v40 = vsel %vm20606_vm11, %v8200_v11, %v7885_v22  ;;  %v14798_v22 = vrot.slane %v20611_v18, %v17006_v30  ;;  %vm20612_vm11 = vcmask 392192   ;;  %v14823_v19 = vcombine.high %v14805_v57, %v20328_v16  ;;  %v20628_v18 = vld [vmem:[#allocation102_spill] sm:$0xff] }
 0x512   : > { %v7909_v45 = vpop.permute.xlu1 %7908 }
 0x513   : > { %v7889_v39 = vpop.permute.xlu0 %7888  ;;  %v14822_v50 = vcombine.high %v14798_v22, %v20328_v16 }
 0x514   : > { %v8202_v58 = vsel %vm20609_vm9, %v8201_v40, %v7889_v39  ;;  %15711 = vrot.lane.b32.xlu1 %v14737_v12, %s20500_s23  ;;  %vm20613_vm9 = vcmask 408576   ;;  %v20616_v12 = vld [vmem:[#allocation98_spill] sm:$0xff]  ;;  %v14858_v40 = vcombine.low %v14834_v62, %v14850_v20 }
 0x515   : > { %15723 = vrot.lane.b32.xlu0 %v14756_v60, %s20497_s13  ;;  %v8203_v36 = vsel %vm20610_vm10, %v8202_v58, %v7893_v10  ;;  %v13806_v23 = vcombine.low %v20616_v12, %v20615_v9  ;;  %vm20617_vm10 = vcmask 424960  }
 0x516   : > { %v7917_v21 = vpop.permute.xlu1 %7916  ;;  %v14866_v41 = vrot.slane %v14858_v40, %v17006_v30 }
 0x517   : > { %v7897_v8 = vpop.permute.xlu0 %7896  ;;  %v13813_v2 = vrot.slane %v13806_v23, %v17002_v25  ;;  %v20631_v23 = vld [vmem:[#allocation105_spill] sm:$0xff] }
 0x518   : > { %v8204_v43 = vsel %vm20612_vm11, %v8203_v36, %v7897_v8  ;;  %15719 = vrot.lane.b32.xlu1 %v14746_v5, %s20506_s17  ;;  %vm20618_vm11 = vcmask 441344   ;;  %v20620_v5 = vld [vmem:[#allocation101_spill] sm:$0xff] }
 0x519   : > { %15731 = vrot.lane.b32.xlu0 %v14757_v27, %s20499_s12  ;;  %v8205_v59 = vsel %vm20613_vm9, %v8204_v43, %v7901_v42  ;;  %v13794_v42 = vrot.slane %v13786_v44, %v17006_v30  ;;  %v20621_v11 = vcombine.low %v20619_v1, %v20620_v5  ;;  %vm20622_vm9 = vcmask 457728   ;;  %v20627_v27 = vld [vmem:[#allocation103_spill] sm:$0xff] }
 0x51a   : > { %v7925_v10 = vpop.permute.xlu1 %7924  ;;  %v13839_v47 = vcombine.high %v13813_v2, %v13821_v6  ;;  %v20625_v34 = vcombine.high %v20619_v1, %v20620_v5 }
 0x51b   : > { %v7905_v61 = vpop.permute.xlu0 %7904  ;;  %v14814_v35 = vrot.slane %v20621_v11, %v17006_v30  ;;  %v16470_v39 = vcombine.low %v13794_v42, %v13801_v56  ;;  %v16472_v60 = vcombine.high %v13794_v42, %v13801_v56 }
 0x51c   : > { %v8206_v53 = vsel %vm20617_vm10, %v8205_v59, %v7905_v61  ;;  %15727 = vrot.lane.b32.xlu1 %v14753_v52, %s20508_s15  ;;  %vm20624_vm10 = vcmask 474112   ;;  %v14821_v36 = vrot.slane %v20625_v34, %v17006_v30  ;;  %v13853_v55 = vrot.slane %v13839_v47, %v17006_v30 }
 0x51d   : > { %15739 = vrot.lane.b32.xlu0 %v14822_v50, %s20505_s2  ;;  %v8207_v49 = vsel %vm20618_vm11, %v8206_v53, %v7909_v45  ;;  %v13838_v45 = vcombine.low %v13813_v2, %v13821_v6  ;;  %v14824_v48 = vcombine.high %v14814_v35, %v20328_v16  ;;  %vm20626_vm11 = vcmask 490496   ;;  %v20632_v53 = vld [vmem:[#allocation104_spill] sm:$0xff] }
 0x51e   : > { %v7933_v15 = vpop.permute.xlu1 %7932  ;;  %v14841_v32 = vrot.slane %v16470_v39, %v17002_v25  ;;  %v14857_v43 = vrot.slane %v16472_v60, %v17002_v25  ;;  %v14825_v61 = vcombine.high %v14821_v36, %v20328_v16 }
 0x51f   : > { %v7913_v14 = vpop.permute.xlu0 %7912  ;;  %v13846_v26 = vrot.slane %v13838_v45, %v17006_v30 }
 0x520   : > { %v8208_v38 = vsel %vm20622_vm9, %v8207_v49, %v7913_v14  ;;  %15735 = vrot.lane.b32.xlu1 %v14798_v22, %s20514_s27  ;;  %v13822_v22 = vcombine.low %v20628_v18, %v20627_v27  ;;  %vm20629_vm9 = vcmask 506880   ;;  %v14874_v42 = vcombine.low %v14841_v32, %v14857_v43 }
 0x521   : > { %15747 = vrot.lane.b32.xlu0 %v14823_v19, %s20507_s30  ;;  %v8209_v58 = vsel %vm20624_vm10, %v8208_v38, %v7917_v21  ;;  %v14859_v21 = vcombine.high %v14834_v62, %v14850_v20  ;;  %vm20630_vm10 = vcmask 523264   ;;  %v16473_v12 = vcombine.low %v13846_v26, %v13853_v55 }
 0x522   : > { %v7941_v52 = vpop.permute.xlu1 %7940  ;;  %v13829_v54 = vrot.slane %v13822_v22, %v17002_v25  ;;  %v14890_v20 = vcombine.high %v14866_v41, %v20328_v16  ;;  %v16475_v56 = vcombine.high %v13846_v26, %v13853_v55  ;;  %v14882_v2 = vrot.slane %v14874_v42, %v17006_v30  ;;  %v20638_v22 = vld [vmem:[#allocation108_spill] sm:$0xff] }
 0x523   : > { %v7921_v13 = vpop.permute.xlu0 %7920  ;;  %v14873_v9 = vrot.slane %v14859_v21, %v17006_v30  ;;  %v14902_v5 = vrot.slane %v16473_v12, %v17002_v25  ;;  %v14875_v38 = vcombine.high %v14841_v32, %v14857_v43 }
 0x524   : > { %v8210_v8 = vsel %vm20626_vm11, %v8209_v58, %v7921_v13  ;;  %15743 = vrot.lane.b32.xlu1 %v14805_v57, %s20520_s16  ;;  %v13882_v57 = vcombine.low %v18375_v24, %v18381_v37  ;;  %v13854_v6 = vcombine.low %v13829_v54, %v13837_v0  ;;  %v13855_v49 = vcombine.high %v13829_v54, %v13837_v0 }
 0x525   : > { %15755 = vrot.lane.b32.xlu0 %v14824_v48, %s20513_s29  ;;  %v8211_v51 = vsel %vm20629_vm9, %v8210_v8, %v7925_v10  ;;  %v13874_v10 = vcombine.low %v20632_v53, %v20631_v23  ;;  %vm20633_vm11 = vcmask 539648   ;;  %vm20634_vm9 = vcmask 556032  }
 0x526   : > { %v7949_v44 = vpop.permute.xlu1 %7948  ;;  %v13889_v37 = vrot.slane %v13882_v57, %v17002_v25  ;;  %v14891_v1 = vcombine.high %v14873_v9, %v20328_v16  ;;  %v13862_v40 = vrot.slane %v13854_v6, %v17006_v30  ;;  %v13869_v39 = vrot.slane %v13855_v49, %v17006_v30 }
 0x527   : > { %v7929_v59 = vpop.permute.xlu0 %7928  ;;  %v13881_v11 = vrot.slane %v13874_v10, %v17002_v25  ;;  %v13898_v58 = vcombine.low %v18387_v3, %v18393_v31  ;;  %v14892_v48 = vcombine.high %v14882_v2, %v20328_v16  ;;  %v14889_v34 = vrot.slane %v14875_v38, %v17006_v30 }
 0x528   : > { %v8212_v50 = vsel %vm20630_vm10, %v8211_v51, %v7929_v59  ;;  %15751 = vrot.lane.b32.xlu1 %v14814_v35, %s20522_s26  ;;  %vm20635_vm10 = vcmask 572416   ;;  %v16476_v8 = vcombine.high %v13862_v40, %v13869_v39  ;;  %v13950_v10 = vcombine.low %v18399_v28, %v18404_v7 }
 0x529   : > { %15763 = vrot.lane.b32.xlu0 %v14825_v61, %s20519_s18  ;;  %v8213_v14 = vsel %vm20633_vm11, %v8212_v50, %v7933_v15  ;;  %v14918_v15 = vrot.slane %v16475_v56, %v17002_v25  ;;  %vm20636_vm11 = vcmask 588800   ;;  %v13906_v63 = vcombine.low %v13881_v11, %v13889_v37 }
 0x52a   : > { %v7957_v62 = vpop.permute.xlu1 %7956  ;;  %v13907_v17 = vcombine.high %v13881_v11, %v13889_v37  ;;  %v13905_v43 = vrot.slane %v13898_v58, %v17002_v25  ;;  %v14893_v55 = vcombine.high %v14889_v34, %v20328_v16  ;;  %v14925_v51 = vrot.slane %v16476_v8, %v17002_v25 }
 0x52b   : > { %v7937_v19 = vpop.permute.xlu0 %7936  ;;  %v14926_v18 = vcombine.low %v14902_v5, %v14918_v15  ;;  %v13914_v3 = vrot.slane %v13906_v63, %v17006_v30 }
 0x52c   : > { %v8214_v24 = vsel %vm20634_vm9, %v8213_v14, %v7937_v19  ;;  %15759 = vrot.lane.b32.xlu1 %v14821_v36, %s20526_s0  ;;  %v16474_v36 = vcombine.low %v13862_v40, %v13869_v39  ;;  %vm20637_vm9 = vcmask 605184   ;;  %v13921_v31 = vrot.slane %v13907_v17, %v17006_v30  ;;  %v20644_v14 = vld [vmem:[#allocation109_spill] sm:$0xff] }
 0x52d   : > { %15771 = vrot.lane.b32.xlu0 %v14890_v20, %s20521_s22  ;;  %v8215_v60 = vsel %vm20635_vm10, %v8214_v24, %v7941_v52  ;;  %vm20640_vm10 = vcmask 621568   ;;  %v14934_v50 = vrot.slane %v14926_v18, %v17006_v30  ;;  %v13942_v19 = vcombine.low %v20644_v14, %v18385_v29  ;;  %v20666_v14 = vld [vmem:[#allocation118_spill] sm:$0xff] }
 0x52e   : > { %v7965_v35 = vpop.permute.xlu1 %7964  ;;  %v14909_v0 = vrot.slane %v16474_v36, %v17002_v25  ;;  %v16479_v12 = vcombine.high %v13914_v3, %v13921_v31 }
 0x52f   : > { %v7945_v45 = vpop.permute.xlu0 %7944  ;;  %v14958_v56 = vcombine.high %v14934_v50, %v20328_v16  ;;  %v13949_v40 = vrot.slane %v13942_v19, %v17002_v25 }
 0x530   : > { %v8216_v47 = vsel %vm20636_vm11, %v8215_v60, %v7945_v45  ;;  %15767 = vrot.lane.b32.xlu1 %v14866_v41, %s20530_s10  ;;  %v20639_v41 = vld [vmem:[#allocation107_spill] sm:$0xff]  ;;  %vm20641_vm11 = vcmask 637952   ;;  %v14942_v49 = vcombine.low %v14909_v0, %v14925_v51  ;;  %v14986_v28 = vrot.slane %v16479_v12, %v17002_v25 }
 0x531   : > { %15779 = vrot.lane.b32.xlu0 %v14891_v1, %s20523_s24  ;;  %v8217_v52 = vsel %vm20637_vm9, %v8216_v47, %v7949_v44  ;;  %v13890_v21 = vcombine.low %v20639_v41, %v20638_v22  ;;  %v14927_v44 = vcombine.high %v14902_v5, %v14918_v15  ;;  %vm20642_vm9 = vcmask 654336   ;;  %v20655_v22 = vld [vmem:[#allocation111_spill] sm:$0xff]  ;;  %v20656_v41 = vld [vmem:[#allocation110_spill] sm:$0xff] }
 0x532   : > { %v7973_v13 = vpop.permute.xlu1 %7972  ;;  %v13957_v5 = vrot.slane %v13950_v10, %v17002_v25  ;;  %v14950_v38 = vrot.slane %v14942_v49, %v17006_v30  ;;  %v14943_v15 = vcombine.high %v14909_v0, %v14925_v51  ;;  %v20665_v49 = vld [vmem:[#allocation120_spill] sm:$0xff] }
 0x533   : > { %v7953_v27 = vpop.permute.xlu0 %7952  ;;  %v13897_v54 = vrot.slane %v13890_v21, %v17002_v25  ;;  %v14941_v6 = vrot.slane %v14927_v44, %v17006_v30  ;;  %v13958_v21 = vcombine.low %v20656_v41, %v20655_v22  ;;  %v14018_v19 = vcombine.low %v20666_v14, %v20665_v49  ;;  %v20678_v22 = vld [vmem:[#allocation115_spill] sm:$0xff] }
 0x534   : > { %v8218_v32 = vsel %vm20640_vm10, %v8217_v52, %v7953_v27  ;;  %15775 = vrot.lane.b32.xlu1 %v14873_v9, %s20532_s8  ;;  %v16477_v9 = vcombine.low %v13914_v3, %v13921_v31  ;;  %vm20643_vm10 = vcmask 670720   ;;  %v13974_v63 = vcombine.low %v13949_v40, %v13957_v5 }
 0x535   : > { %15787 = vrot.lane.b32.xlu0 %v14892_v48, %s20529_s14  ;;  %v8219_v59 = vsel %vm20641_vm11, %v8218_v32, %v7957_v62  ;;  %v13922_v23 = vcombine.low %v13897_v54, %v13905_v43  ;;  %v13923_v53 = vcombine.high %v13897_v54, %v13905_v43  ;;  %vm20645_vm11 = vcmask 687104   ;;  %v20651_v48 = vld [vmem:[#allocation114_spill] sm:$0xff] }
 0x536   : > { %v7981_v26 = vpop.permute.xlu1 %7980  ;;  %v14970_v37 = vrot.slane %v16477_v9, %v17002_v25  ;;  %v13975_v17 = vcombine.high %v13949_v40, %v13957_v5  ;;  %v14960_v52 = vcombine.high %v14950_v38, %v20328_v16  ;;  %v14957_v27 = vrot.slane %v14943_v15, %v17006_v30 }
 0x537   : > { %v7961_v61 = vpop.permute.xlu0 %7960  ;;  %v13930_v7 = vrot.slane %v13922_v23, %v17006_v30  ;;  %v13937_v1 = vrot.slane %v13923_v53, %v17006_v30  ;;  %v13965_v54 = vrot.slane %v13958_v21, %v17002_v25 }
 0x538   : > { %v8220_v57 = vsel %vm20642_vm9, %v8219_v59, %v7961_v61  ;;  %15783 = vrot.lane.b32.xlu1 %v14882_v2, %s20538_s11  ;;  %vm20646_vm9 = vcmask 703488   ;;  %v14959_v2 = vcombine.high %v14941_v6, %v20328_v16  ;;  %v14994_v60 = vcombine.low %v14970_v37, %v14986_v28 }
 0x539   : > { %15795 = vrot.lane.b32.xlu0 %v14893_v55, %s20531_s20  ;;  %v8221_v62 = vsel %vm20643_vm10, %v8220_v57, %v7965_v35  ;;  %vm20647_vm10 = vcmask 719872   ;;  %s20649_s20 = smov 86   ;;  %v16478_v45 = vcombine.low %v13930_v7, %v13937_v1  ;;  %v16480_v47 = vcombine.high %v13930_v7, %v13937_v1  ;;  %v20669_v7 = vld [vmem:[#allocation112_spill] sm:$0xff] }
 0x53a   : > { %v7989_v20 = vpop.permute.xlu1 %7988  ;;  %v15002_v32 = vrot.slane %v14994_v60, %v17006_v30  ;;  %v14995_v3 = vcombine.high %v14970_v37, %v14986_v28  ;;  %v13989_v55 = vrot.slane %v13975_v17, %v17006_v30  ;;  %v14961_v61 = vcombine.high %v14957_v27, %v20328_v16  ;;  %v20668_v28 = vld [vmem:[#allocation113_spill] sm:$0xff] }
 0x53b   : > { %v7969_v42 = vpop.permute.xlu0 %7968  ;;  %v14977_v31 = vrot.slane %v16478_v45, %v17002_v25  ;;  %v14993_v43 = vrot.slane %v16480_v47, %v17002_v25  ;;  %v14010_v1 = vcombine.low %v20669_v7, %v20668_v28  ;;  %v14025_v60 = vrot.slane %v14018_v19, %v17002_v25  ;;  %v20674_v47 = vld [vmem:[#allocation124_spill] sm:$0xff]  ;;  %v20689_v19 = vld [vmem:[#allocation121_spill] sm:$0xff] }
 0x53c   : > { %v8222_v24 = vsel %vm20645_vm11, %v8221_v62, %v7969_v42  ;;  %15791 = vrot.lane.b32.xlu1 %v14889_v34, %s20540_s6  ;;  %vm20652_vm11 = vcmask 736256   ;;  %v15009_v57 = vrot.slane %v14995_v3, %v17006_v30  ;;  %v15026_v23 = vcombine.high %v15002_v32, %v20328_v16 }
 0x53d   : > { %15803 = vrot.lane.b32.xlu0 %v14958_v56, %s20537_s7  ;;  %v8223_v35 = vsel %vm20646_vm9, %v8222_v24, %v7973_v13  ;;  %s20648_s7 = smov 80   ;;  %v20650_v13 = vld [vmem:[#allocation116_spill] sm:$0xff]  ;;  %vm20653_vm9 = vcmask 752640   ;;  %v15010_v53 = vcombine.low %v14977_v31, %v14993_v43  ;;  %v14017_v45 = vrot.slane %v14010_v1, %v17002_v25 }
 0x53e   : > { %v7997_v11 = vpop.permute.xlu1 %7996  ;;  %v13966_v34 = vcombine.low %v20651_v48, %v20650_v13  ;;  %v15027_v24 = vcombine.high %v15009_v57, %v20328_v16 }
 0x53f   : > { %v7977_v29 = vpop.permute.xlu0 %7976  ;;  %v14043_v3 = vcombine.high %v14017_v45, %v14025_v60 }
 0x540   : > { %v8224_v39 = vsel %vm20647_vm10, %v8223_v35, %v7977_v29  ;;  %15799 = vrot.lane.b32.xlu1 %v14934_v50, %s20648_s7  ;;  %s20654_s7 = smov 84   ;;  %v13973_v0 = vrot.slane %v13966_v34, %v17002_v25  ;;  %vm20658_vm10 = vcmask 769024   ;;  %v15011_v35 = vcombine.high %v14977_v31, %v14993_v43 }
 0x541   : > { %15811 = vrot.lane.b32.xlu0 %v14959_v2, %s20649_s20  ;;  %v8225_v36 = vsel %vm20652_vm11, %v8224_v39, %v7981_v26  ;;  %s20657_s20 = smov 90   ;;  %v13982_v26 = vrot.slane %v13974_v63, %v17006_v30  ;;  %vm20659_vm11 = vcmask 785408   ;;  %v20675_v63 = vld [vmem:[#allocation122_spill] sm:$0xff] }
 0x542   : > { %v8005_v58 = vpop.permute.xlu1 %8004  ;;  %v13991_v62 = vcombine.high %v13965_v54, %v13973_v0  ;;  %v14034_v17 = vcombine.low %v20675_v63, %v20674_v47  ;;  %v15025_v34 = vrot.slane %v15011_v35, %v17006_v30 }
 0x543   : > { %v7985_v8 = vpop.permute.xlu0 %7984  ;;  %v16481_v9 = vcombine.low %v13982_v26, %v13989_v55  ;;  %v16483_v10 = vcombine.high %v13982_v26, %v13989_v55 }
 0x544   : > { %v8226_v18 = vsel %vm20653_vm9, %v8225_v36, %v7985_v8  ;;  %15807 = vrot.lane.b32.xlu1 %v14941_v6, %s20654_s7  ;;  %s20661_s7 = smov 94   ;;  %vm20662_vm9 = vcmask 801792   ;;  %v14041_v31 = vrot.slane %v14034_v17, %v17002_v25  ;;  %v15029_v26 = vcombine.high %v15025_v34, %v20328_v16 }
 0x545   : > { %15819 = vrot.lane.b32.xlu0 %v14960_v52, %s20657_s20  ;;  %v8227_v51 = vsel %vm20658_vm10, %v8226_v18, %v7989_v20  ;;  %s20660_s20 = smov 88   ;;  %v13990_v20 = vcombine.low %v13965_v54, %v13973_v0  ;;  %vm20663_vm10 = vcmask 818176   ;;  %v15038_v37 = vrot.slane %v16481_v9, %v17002_v25  ;;  %v20677_v18 = vld [vmem:[#allocation117_spill] sm:$0xff] }
 0x546   : > { %v8013_v44 = vpop.permute.xlu1 %8012  ;;  %v15054_v29 = vrot.slane %v16483_v10, %v17002_v25  ;;  %v14026_v41 = vcombine.low %v20678_v22, %v20677_v18  ;;  %v14057_v9 = vrot.slane %v14043_v3, %v17006_v30  ;;  %v20686_v10 = vld [vmem:[#allocation20_spill] sm:$0xff] }
 0x547   : > { %v7993_v59 = vpop.permute.xlu0 %7992  ;;  %v13998_v2 = vrot.slane %v13990_v20, %v17006_v30  ;;  %v20687_v20 = vld [vmem:[#allocation126_spill] sm:$0xff] }
 0x548   : > { %v8228_v50 = vsel %vm20659_vm11, %v8227_v51, %v7993_v59  ;;  %15815 = vrot.lane.b32.xlu1 %v14950_v38, %s20660_s20  ;;  %s20664_s20 = smov 92   ;;  %v14005_v38 = vrot.slane %v13991_v62, %v17006_v30  ;;  %vm20670_vm11 = vcmask 834560   ;;  %v15063_v55 = vcombine.high %v15038_v37, %v15054_v29 }
 0x549   : > { %15827 = vrot.lane.b32.xlu0 %v14961_v61, %s20661_s7  ;;  %v8229_v42 = vsel %vm20662_vm9, %v8228_v50, %v7997_v11  ;;  %s20667_s7 = smov 98   ;;  %v15018_v11 = vrot.slane %v15010_v53, %v17006_v30  ;;  %vm20671_vm9 = vcmask 850944   ;;  %v14033_v50 = vrot.slane %v14026_v41, %v17002_v25  ;;  %v20698_v41 = vld [vmem:[#allocation125_spill] sm:$0xff] }
 0x54a   : > { %v8021_v12 = vpop.permute.xlu1 %8020  ;;  %v16484_v36 = vcombine.high %v13998_v2, %v14005_v38  ;;  %v15077_v49 = vrot.slane %v15063_v55, %v17006_v30 }
 0x54b   : > { %v8001_v56 = vpop.permute.xlu0 %8000  ;;  %v15028_v48 = vcombine.high %v15018_v11, %v20328_v16  ;;  %v14059_v53 = vcombine.high %v14033_v50, %v14041_v31 }
 0x54c   : > { %v8230_v6 = vsel %vm20663_vm10, %v8229_v42, %v8001_v56  ;;  %15823 = vrot.lane.b32.xlu1 %v14957_v27, %s20664_s20  ;;  %s20673_s20 = smov 102   ;;  %vm20676_vm10 = vcmask 867328   ;;  %v15062_v27 = vcombine.low %v15038_v37, %v15054_v29  ;;  %v15061_v0 = vrot.slane %v16484_v36, %v17002_v25  ;;  %v20697_v36 = vld [vmem:[#allocation128_spill] sm:$0xff] }
 0x54d   : > { %15835 = vrot.lane.b32.xlu0 %v15026_v23, %s20667_s7  ;;  %v8231_v15 = vsel %vm20670_vm11, %v8230_v6, %v8005_v58  ;;  %s20672_s7 = smov 96   ;;  %v16482_v58 = vcombine.low %v13998_v2, %v14005_v38  ;;  %vm20679_vm11 = vcmask 883712   ;;  %v14058_v23 = vcombine.low %v14033_v50, %v14041_v31 }
 0x54e   : > { %v8029_v5 = vpop.permute.xlu1 %8028  ;;  %v15070_v61 = vrot.slane %v15062_v27, %v17006_v30 }
 0x54f   : > { %v8009_v40 = vpop.permute.xlu0 %8008 }
 0x550   : > { %v8232_v39 = vsel %vm20671_vm9, %v8231_v15, %v8009_v40  ;;  %15831 = vrot.lane.b32.xlu1 %v15002_v32, %s20672_s7  ;;  %v14042_v32 = vcombine.low %v14017_v45, %v14025_v60  ;;  %s20681_s7 = smov 106   ;;  %vm20682_vm9 = vcmask 900096   ;;  %v15094_v6 = vcombine.high %v15070_v61, %v20328_v16 }
 0x551   : > { %15843 = vrot.lane.b32.xlu0 %v15027_v24, %s20673_s20  ;;  %v8233_v8 = vsel %vm20676_vm10, %v8232_v39, %v8013_v44  ;;  %s20680_s20 = smov 100   ;;  %v15045_v44 = vrot.slane %v16482_v58, %v17002_v25  ;;  %vm20683_vm10 = vcmask 916480   ;;  %v20690_v24 = vld [vmem:[#allocation119_spill] sm:$0xff]  ;;  %v15095_v15 = vcombine.high %v15077_v49, %v20328_v16 }
 0x552   : > { %v8037_v13 = vpop.permute.xlu1 %8036  ;;  %v14078_v37 = vcombine.low %v20690_v24, %v20689_v19 }
 0x553   : > { %v8017_v52 = vpop.permute.xlu0 %8016  ;;  %v15078_v14 = vcombine.low %v15045_v44, %v15061_v0  ;;  %v15079_v39 = vcombine.high %v15045_v44, %v15061_v0 }
 0x554   : > { %v8234_v21 = vsel %vm20679_vm11, %v8233_v8, %v8017_v52  ;;  %15839 = vrot.lane.b32.xlu1 %v15009_v57, %s20680_s20  ;;  %v14050_v57 = vrot.slane %v14042_v32, %v17006_v30  ;;  %s20685_s20 = smov 110   ;;  %vm20688_vm11 = vcmask 932864   ;;  %v14085_v60 = vrot.slane %v14078_v37, %v17002_v25 }
 0x555   : > { %15851 = vrot.lane.b32.xlu0 %v15028_v48, %s20681_s7  ;;  %v8235_v51 = vsel %vm20682_vm9, %v8234_v21, %v8021_v12  ;;  %s20684_s7 = smov 104   ;;  %v14086_v12 = vcombine.low %v20687_v20, %v20686_v10  ;;  %vm20691_vm9 = vcmask 949248   ;;  %v15086_v40 = vrot.slane %v15078_v14, %v17006_v30  ;;  %v20699_v21 = vld [vmem:[#allocation123_spill] sm:$0xff]  ;;  %v20705_v20 = vld [vmem:[#allocation22_spill] sm:$0xff] }
 0x556   : > { %v8045_v43 = vpop.permute.xlu1 %8044  ;;  %v16485_v7 = vcombine.low %v14050_v57, %v14057_v9  ;;  %v16487_v1 = vcombine.high %v14050_v57, %v14057_v9  ;;  %v14102_v8 = vcombine.low %v20697_v36, %v18473_v4  ;;  %v15093_v22 = vrot.slane %v15079_v39, %v17006_v30 }
 0x557   : > { %v8025_v59 = vpop.permute.xlu0 %8024  ;;  %v14093_v35 = vrot.slane %v14086_v12, %v17002_v25  ;;  %v15096_v18 = vcombine.high %v15086_v40, %v20328_v16  ;;  %v14094_v32 = vcombine.low %v20699_v21, %v20698_v41  ;;  %v14154_v12 = vcombine.low %v20705_v20, %v18491_v46  ;;  %v20713_v41 = vld [vmem:[#allocation21_spill] sm:$0xff] }
 0x558   : > { %v8236_v54 = vsel %vm20683_vm10, %v8235_v51, %v8025_v59  ;;  %15847 = vrot.lane.b32.xlu1 %v15018_v11, %s20684_s7  ;;  %s20693_s7 = smov 114   ;;  %v14066_v11 = vrot.slane %v14058_v23, %v17006_v30  ;;  %vm20694_vm10 = vcmask 965632   ;;  %v15106_v47 = vrot.slane %v16485_v7, %v17002_v25  ;;  %v20703_v23 = vld [vmem:[#allocation127_spill] sm:$0xff]  ;;  %v20714_v21 = vld [vmem:[#allocation129_spill] sm:$0xff] }
 0x559   : > { %15859 = vrot.lane.b32.xlu0 %v15029_v26, %s20685_s20  ;;  %v8237_v42 = vsel %vm20688_vm11, %v8236_v54, %v8029_v5  ;;  %s20692_s20 = smov 108   ;;  %v14073_v5 = vrot.slane %v14059_v53, %v17006_v30  ;;  %v15122_v63 = vrot.slane %v16487_v1, %v17002_v25  ;;  %v14110_v48 = vcombine.low %v14085_v60, %v14093_v35  ;;  %v20704_v53 = vld [vmem:[#allocation19_spill] sm:$0xff] }
 0x55a   : > { %v8053_v62 = vpop.permute.xlu1 %8052  ;;  %v14109_v59 = vrot.slane %v14102_v8, %v17002_v25  ;;  %v15097_v54 = vcombine.high %v15093_v22, %v20328_v16  ;;  %v14101_v57 = vrot.slane %v14094_v32, %v17002_v25  ;;  %v14146_v10 = vcombine.low %v20704_v53, %v20703_v23 }
 0x55b   : > { %v8033_v56 = vpop.permute.xlu0 %8032  ;;  %v16486_v17 = vcombine.low %v14066_v11, %v14073_v5  ;;  %v15131_v26 = vcombine.high %v15106_v47, %v15122_v63  ;;  %v15130_v4 = vcombine.low %v15106_v47, %v15122_v63  ;;  %v14161_v7 = vrot.slane %v14154_v12, %v17002_v25  ;;  %v20711_v63 = vld [vmem:[#allocation134_spill] sm:$0xff] }
 0x55c   : > { %v8238_v28 = vsel %vm20691_vm9, %v8237_v42, %v8033_v56  ;;  %15855 = vrot.lane.b32.xlu1 %v15025_v34, %s20692_s20  ;;  %s20696_s20 = smov 118   ;;  %v14111_v34 = vcombine.high %v14085_v60, %v14093_v35  ;;  %v14126_v19 = vcombine.low %v14101_v57, %v14109_v59  ;;  %v14127_v24 = vcombine.high %v14101_v57, %v14109_v59 }
 0x55d   : > { %15867 = vrot.lane.b32.xlu0 %v15094_v6, %s20693_s7  ;;  %v8239_v2 = vsel %vm20694_vm10, %v8238_v28, %v8037_v13  ;;  %s20695_s7 = smov 112   ;;  %v16488_v13 = vcombine.high %v14066_v11, %v14073_v5  ;;  %v15113_v0 = vrot.slane %v16486_v17, %v17002_v25  ;;  %v15145_v6 = vrot.slane %v15131_v26, %v17006_v30  ;;  %v20712_v17 = vld [vmem:[#allocation132_spill] sm:$0xff] }
 0x55e   : > { %v15644_v29 = vpop.permute.xlu1 %15643  ;;  %v14125_v55 = vrot.slane %v14111_v34, %v17006_v30  ;;  %v14153_v46 = vrot.slane %v14146_v10, %v17002_v25  ;;  %v14162_v32 = vcombine.low %v20714_v21, %v20713_v41  ;;  %vm20717_vm11 = vcmask 162816  }
 0x55f   : > { %v8041_v38 = vpop.permute.xlu0 %8040  ;;  %v15129_v51 = vrot.slane %v16488_v13, %v17002_v25  ;;  %v14170_v13 = vcombine.low %v20712_v17, %v20711_v63  ;;  %vm20719_vm9 = vcmask 179200   ;;  %vm20722_vm10 = vcmask 195584   ;;  %v20731_v17 = vld [vmem:[#allocation142_spill] sm:$0xff] }
 0x560   : > { %v8240_v45 = vsel %vm8173_vm12, %v8239_v2, %v8041_v38  ;;  %15863 = vrot.lane.b32.xlu1 %v15070_v61, %s20695_s7  ;;  %s20701_s7 = smov 122   ;;  %v16146_v61 = vsel %vm8055_vm0, %v19195_v33, %v15644_v29  ;;  %v19567_v33 = vrot.slane %v15130_v4, %v17006_v30  ;;  %v14134_v38 = vrot.slane %v14126_v19, %v17006_v30 }
 0x561   : > { %15875 = vrot.lane.b32.xlu0 %v15095_v15, %s20696_s20  ;;  %v8241_v52 = vsel %vm8175_vm15, %v8240_v45, %v8045_v43  ;;  %s20700_s20 = smov 116   ;;  %v14118_v43 = vrot.slane %v14110_v48, %v17006_v30  ;;  %v15147_v29 = vcombine.high %v15113_v0, %v15129_v51  ;;  %v14141_v15 = vrot.slane %v14127_v24, %v17006_v30  ;;  %v20724_v24 = vld [vmem:[#allocation131_spill] sm:$0xff] }
 0x562   : > { %v15652_v58 = vpop.permute.xlu1 %15651  ;;  %v15162_v1 = vcombine.high %v19567_v33, %v20328_v16  ;;  %v14178_v45 = vcombine.low %v14153_v46, %v14161_v7  ;;  %v14179_v47 = vcombine.high %v14153_v46, %v14161_v7  ;;  %v14177_v26 = vrot.slane %v14170_v13, %v17002_v25  ;;  %v20732_v13 = vld [vmem:[#allocation140_spill] sm:$0xff] }
 0x563   : > { %v8049_v27 = vpop.permute.xlu0 %8048  ;;  %v16489_v42 = vcombine.low %v14118_v43, %v14125_v55  ;;  %v16491_v14 = vcombine.high %v14118_v43, %v14125_v55  ;;  %v15161_v36 = vrot.slane %v15147_v29, %v17006_v30  ;;  %v16490_v8 = vcombine.low %v14134_v38, %v14141_v15 }
 0x564   : > { %v8242_v3 = vsel %vm8177_vm13, %v8241_v52, %v8049_v27  ;;  %15871 = vrot.lane.b32.xlu1 %v15077_v49, %s20700_s20  ;;  %s20706_s20 = smov 126   ;;  %v15146_v49 = vcombine.low %v15113_v0, %v15129_v51  ;;  %v16492_v52 = vcombine.high %v14134_v38, %v14141_v15 }
 0x565   : > { %v8243_v31 = vsel %vm8179_vm14, %v8242_v3, %v8053_v62  ;;  %15883 = vrot.lane.b32.xlu0 %v15096_v18, %s20701_s7  ;;  %s20702_s7 = smov 120   ;;  %v15174_v2 = vrot.slane %v16489_v42, %v17002_v25  ;;  %v15190_v60 = vrot.slane %v16491_v14, %v17002_v25  ;;  %v14186_v3 = vrot.slane %v14178_v45, %v17006_v30  ;;  %v20721_v42 = vld [vmem:[#allocation136_spill] sm:$0xff]  ;;  %v20729_v45 = vld [vmem:[#allocation135_spill] sm:$0xff] }
 0x566   : > { %8245 = vst [vmem:[%s19202_s9 + $0x8] sm:$0xf] %v8243_v31  ;;  %v15656_v44 = vpop.permute.xlu1 %15655  ;;  %v15154_v35 = vrot.slane %v15146_v49, %v17006_v30  ;;  %v14193_v31 = vrot.slane %v14179_v47, %v17006_v30  ;;  %v20730_v47 = vld [vmem:[#allocation133_spill] sm:$0xff] }
 0x567   : > { %v15648_v50 = vpop.permute.xlu0 %15647  ;;  %v14230_v63 = vcombine.low %v20730_v47, %v20729_v45 }
 0x568   : > { %v16147_v9 = vsel %vm8057_vm1, %v16146_v61, %v15648_v50  ;;  %15879 = vrot.lane.b32.xlu1 %v15086_v40, %s20702_s7  ;;  %s20707_s7 = smov 124   ;;  %v15164_v55 = vcombine.high %v15154_v35, %v20328_v16  ;;  %v15181_v61 = vrot.slane %v16490_v8, %v17002_v25  ;;  %v15197_v50 = vrot.slane %v16492_v52, %v17002_v25 }
 0x569   : > { %v16148_v62 = vsel %vm8059_vm2, %v16147_v9, %v15652_v58  ;;  %15891 = vrot.lane.b32.xlu0 %v15097_v54, %s20706_s20  ;;  %s20708_s20 = smov 4   ;;  %v15163_v58 = vcombine.high %v15145_v6, %v20328_v16  ;;  %v14169_v54 = vrot.slane %v14162_v32, %v17002_v25  ;;  %v16493_v57 = vcombine.low %v14186_v3, %v14193_v31 }
 0x56a   : > { %v15660_v56 = vpop.permute.xlu1 %15659  ;;  %v16149_v37 = vsel %vm8061_vm3, %v16148_v62, %v15656_v44  ;;  %v15199_v44 = vcombine.high %v15174_v2, %v15190_v60  ;;  %v15165_v9 = vcombine.high %v15161_v36, %v20328_v16  ;;  %v16495_v23 = vcombine.high %v14186_v3, %v14193_v31  ;;  %v20720_v62 = vld [vmem:[#allocation138_spill] sm:$0xff] }
 0x56b   : > { %v15668_v28 = vpop.permute.xlu0 %15667  ;;  %v16150_v11 = vsel %vm8063_vm4, %v16149_v37, %v15660_v56  ;;  %v14194_v53 = vcombine.low %v14169_v54, %v14177_v26  ;;  %v14195_v10 = vcombine.high %v14169_v54, %v14177_v26  ;;  %v14222_v56 = vcombine.low %v20721_v42, %v20720_v62  ;;  %v20725_v37 = vld [vmem:[#allocation130_spill] sm:$0xff] }
 0x56c   : > { %15887 = vrot.lane.b32.xlu1 %v15093_v22, %s20707_s7  ;;  %s20710_s7 = smov 8   ;;  %v15198_v22 = vcombine.low %v15174_v2, %v15190_v60  ;;  %v15213_v14 = vrot.slane %v15199_v44, %v17006_v30  ;;  %v15214_v19 = vcombine.low %v15181_v61, %v15197_v50  ;;  %v15215_v7 = vcombine.high %v15181_v61, %v15197_v50 }
 0x56d   : > { %15899 = vrot.lane.b32.xlu0 %v15145_v6, %s20708_s20  ;;  %s20709_s20 = smov 2   ;;  %v15258_v2 = vrot.slane %v16495_v23, %v17002_v25  ;;  %v14229_v38 = vrot.slane %v14222_v56, %v17002_v25  ;;  %v14237_v3 = vrot.slane %v14230_v63, %v17002_v25  ;;  %v20738_v23 = vld [vmem:[#allocation146_spill] sm:$0xff] }
 0x56e   : > { %v15664_v5 = vpop.permute.xlu1 %15663  ;;  %v15206_v59 = vrot.slane %v15198_v22, %v17006_v30  ;;  %v15229_v52 = vrot.slane %v15215_v7, %v17006_v30 }
 0x56f   : > { %v16151_v40 = vsel %vm8065_vm5, %v16150_v11, %v15664_v5  ;;  %v15676_v39 = vpop.permute.xlu0 %15675  ;;  %v14202_v11 = vrot.slane %v14194_v53, %v17006_v30  ;;  %v14209_v5 = vrot.slane %v14195_v10, %v17006_v30  ;;  %v20739_v53 = vld [vmem:[#allocation144_spill] sm:$0xff] }
 0x570   : > { %15895 = vrot.lane.b32.xlu1 %v15162_v1, %s20709_s20  ;;  %v16152_v34 = vsel %vm8067_vm6, %v16151_v40, %v15668_v28  ;;  %s20716_s20 = smov 12   ;;  %v14214_v28 = vcombine.low %v20725_v37, %v20724_v24  ;;  %v15230_v46 = vcombine.high %v15206_v59, %v20328_v16  ;;  %v15242_v1 = vrot.slane %v16493_v57, %v17002_v25  ;;  %v20742_v24 = vld [vmem:[#allocation139_spill] sm:$0xff]  ;;  %v20743_v37 = vld [vmem:[#allocation137_spill] sm:$0xff] }
 0x571   : > { %15907 = vrot.lane.b32.xlu0 %v15154_v35, %s20710_s7  ;;  %s20715_s7 = smov 6   ;;  %v14290_v10 = vcombine.low %v20739_v53, %v20738_v23  ;;  %v15233_v62 = vcombine.high %v15229_v52, %v20328_v16  ;;  %v20757_v53 = vld [vmem:[#allocation155_spill] sm:$0xff] }
 0x572   : > { %v15672_v48 = vpop.permute.xlu1 %15671  ;;  %v14221_v60 = vrot.slane %v14214_v28, %v17002_v25  ;;  %v15267_v44 = vcombine.high %v15242_v1, %v15258_v2  ;;  %v14282_v28 = vcombine.low %v20743_v37, %v20742_v24 }
 0x573   : > { %v16153_v27 = vsel %vm8069_vm7, %v16152_v34, %v15672_v48  ;;  %v15684_v18 = vpop.permute.xlu0 %15683  ;;  %v14238_v48 = vcombine.low %v20732_v13, %v20731_v17  ;;  %v15231_v34 = vcombine.high %v15213_v14, %v20328_v16 }
 0x574   : > { %15903 = vrot.lane.b32.xlu1 %v15163_v58, %s20715_s7  ;;  %v16154_v43 = vsel %vm8071_vm8, %v16153_v27, %v15676_v39  ;;  %s20718_s7 = smov 10   ;;  %v15222_v39 = vrot.slane %v15214_v19, %v17006_v30  ;;  %v16494_v58 = vcombine.low %v14202_v11, %v14209_v5  ;;  %v15266_v27 = vcombine.low %v15242_v1, %v15258_v2 }
 0x575   : > { %15915 = vrot.lane.b32.xlu0 %v15161_v36, %s20716_s20  ;;  %s20723_s20 = smov 14   ;;  %v14246_v22 = vcombine.low %v14221_v60, %v14229_v38  ;;  %v14247_v41 = vcombine.high %v14221_v60, %v14229_v38  ;;  %v14245_v31 = vrot.slane %v14238_v48, %v17002_v25  ;;  %v15281_v42 = vrot.slane %v15267_v44, %v17006_v30 }
 0x576   : > { %v15680_v4 = vpop.permute.xlu1 %15679  ;;  %v15232_v26 = vcombine.high %v15222_v39, %v20328_v16  ;;  %v14297_v1 = vrot.slane %v14290_v10, %v17002_v25  ;;  %v14289_v60 = vrot.slane %v14282_v28, %v17002_v25  ;;  %v20758_v10 = vld [vmem:[#allocation152_spill] sm:$0xff] }
 0x577   : > { %v16155_v0 = vsel %vm20717_vm11, %v16154_v43, %v15680_v4  ;;  %v15692_v51 = vpop.permute.xlu0 %15691  ;;  %vm20726_vm11 = vcmask 211968   ;;  %v14262_v57 = vcombine.low %v14237_v3, %v14245_v31  ;;  %v15299_v47 = vcombine.high %v15281_v42, %v20328_v16 }
 0x578   : > { %15911 = vrot.lane.b32.xlu1 %v15164_v55, %s20718_s7  ;;  %v16156_v12 = vsel %vm20719_vm9, %v16155_v0, %v15684_v18  ;;  %vm20727_vm9 = vcmask 228352   ;;  %v16496_v18 = vcombine.high %v14202_v11, %v14209_v5  ;;  %v15274_v55 = vrot.slane %v15266_v27, %v17006_v30  ;;  %s20881_s7 = sld [smem:[#allocation11_spill]] }
 0x579   : > { %15923 = vrot.lane.b32.xlu0 %v15206_v59, %s20587_s1  ;;  %s20735_s1 = smov 22   ;;  %v15249_v0 = vrot.slane %v16494_v58, %v17002_v25  ;;  %v14261_v59 = vrot.slane %v14247_v41, %v17006_v30  ;;  %v14314_v17 = vcombine.low %v14289_v60, %v14297_v1  ;;  %v14315_v13 = vcombine.high %v14289_v60, %v14297_v1  ;;  %v20748_v58 = vld [vmem:[#allocation150_spill] sm:$0xff]  ;;  %v20751_v41 = vld [vmem:[#allocation143_spill] sm:$0xff] }
 0x57a   : > { %v15688_v20 = vpop.permute.xlu1 %15687  ;;  %v15265_v54 = vrot.slane %v16496_v18, %v17002_v25 }
 0x57b   : > { %v16157_v6 = vsel %vm20722_vm10, %v16156_v12, %v15688_v20  ;;  %v15700_v49 = vpop.permute.xlu0 %15699  ;;  %vm20733_vm10 = vcmask 244736  }
 0x57c   : > { %15919 = vrot.lane.b32.xlu1 %v15165_v9, %s20723_s20  ;;  %v16158_v29 = vsel %vm20726_vm11, %v16157_v6, %v15692_v51  ;;  %vm20734_vm11 = vcmask 261120   ;;  %v14254_v51 = vrot.slane %v14246_v22, %v17006_v30  ;;  %v14263_v9 = vcombine.high %v14237_v3, %v14245_v31  ;;  %s20887_s20 = sld [smem:[#allocation18_spill]] }
 0x57d   : > { %15931 = vrot.lane.b32.xlu0 %v15213_v14, %s20592_s28  ;;  %s20728_s28 = smov 18   ;;  %v15282_v19 = vcombine.low %v15249_v0, %v15265_v54 }
 0x57e   : > { %v15696_v35 = vpop.permute.xlu1 %15695  ;;  %v16497_v56 = vcombine.low %v14254_v51, %v14261_v59  ;;  %v16499_v6 = vcombine.high %v14254_v51, %v14261_v59  ;;  %v14277_v7 = vrot.slane %v14263_v9, %v17006_v30  ;;  %v20756_v9 = vld [vmem:[#allocation145_spill] sm:$0xff] }
 0x57f   : > { %v16159_v15 = vsel %vm20727_vm9, %v16158_v29, %v15696_v35  ;;  %v15708_v40 = vpop.permute.xlu0 %15707  ;;  %vm20736_vm9 = vcmask 277504   ;;  %v15298_v35 = vcombine.high %v15274_v55, %v20328_v16  ;;  %v15283_v29 = vcombine.high %v15249_v0, %v15265_v54 }
 0x580   : > { %15927 = vrot.lane.b32.xlu1 %v15230_v46, %s20728_s28  ;;  %v16160_v8 = vsel %vm20733_vm10, %v16159_v15, %v15700_v49  ;;  %vm20737_vm10 = vcmask 293888   ;;  %v14270_v46 = vrot.slane %v14262_v57, %v17006_v30  ;;  %v15290_v15 = vrot.slane %v15282_v19, %v17006_v30  ;;  %v20755_v57 = vld [vmem:[#allocation147_spill] sm:$0xff]  ;;  %s20889_s28 = sld [smem:[#allocation15_spill]] }
 0x581   : > { %15939 = vrot.lane.b32.xlu0 %v15222_v39, %s20490_s3  ;;  %v15326_v39 = vrot.slane %v16499_v6, %v17002_v25  ;;  %v15297_v18 = vrot.slane %v15283_v29, %v17006_v30  ;;  %v14350_v23 = vcombine.low %v20756_v9, %v20755_v57  ;;  %s20810_s3 = smov 90  }
 0x582   : > { %v15704_v36 = vpop.permute.xlu1 %15703  ;;  %v16498_v45 = vcombine.low %v14270_v46, %v14277_v7  ;;  %v16500_v63 = vcombine.high %v14270_v46, %v14277_v7  ;;  %v15300_v3 = vcombine.high %v15290_v15, %v20328_v16 }
 0x583   : > { %v16161_v21 = vsel %vm20734_vm11, %v16160_v8, %v15704_v36  ;;  %v15716_v32 = vpop.permute.xlu0 %15715  ;;  %vm20740_vm11 = vcmask 310272   ;;  %v20749_v36 = vld [vmem:[#allocation148_spill] sm:$0xff]  ;;  %v14357_v46 = vrot.slane %v14350_v23, %v17002_v25 }
 0x584   : > { %15935 = vrot.lane.b32.xlu1 %v15231_v34, %s20735_s1  ;;  %v16162_v43 = vsel %vm20736_vm9, %v16161_v21, %v15708_v40  ;;  %vm20741_vm9 = vcmask 326656   ;;  %v15310_v40 = vrot.slane %v16497_v56, %v17002_v25  ;;  %v14306_v8 = vcombine.low %v20749_v36, %v20748_v58  ;;  %v20752_v21 = vld [vmem:[#allocation141_spill] sm:$0xff]  ;;  %s16522_s1 = sshll.u32 %s20881_s7, 8 }
 0x585   : > { %15947 = vrot.lane.b32.xlu0 %v15229_v52, %s20494_s4  ;;  %v15333_v0 = vrot.slane %v16500_v63, %v17002_v25  ;;  %v20763_v63 = vld [vmem:[#allocation159_spill] sm:$0xff]  ;;  %s20835_s4 = smov 122  }
 0x586   : > { %v15712_v4 = vpop.permute.xlu1 %15711  ;;  %v15334_v22 = vcombine.low %v15310_v40, %v15326_v39  ;;  %v15335_v31 = vcombine.high %v15310_v40, %v15326_v39  ;;  %v14313_v51 = vrot.slane %v14306_v8, %v17002_v25  ;;  %p20892_p9 = scmp.ne.s32.totalorder %s20889_s28, 0 }
 0x587   : > { %v16163_v61 = vsel %vm20737_vm10, %v16162_v43, %v15712_v4  ;;  %v15724_v50 = vpop.permute.xlu0 %15723  ;;  %vm20745_vm10 = vcmask 343040   ;;  %v14322_v4 = vrot.slane %v14314_v17, %v17006_v30  ;;  %v14329_v43 = vrot.slane %v14315_v13, %v17006_v30  ;;  %v20764_v17 = vld [vmem:[#allocation157_spill] sm:$0xff] }
 0x588   : > { %15943 = vrot.lane.b32.xlu1 %v15232_v26, %s20593_s21  ;;  %v16164_v12 = vsel %vm20740_vm11, %v16163_v61, %v15716_v32  ;;  %s20744_s21 = smov 30   ;;  %vm20746_vm11 = vcmask 359424   ;;  %v14298_v32 = vcombine.low %v20752_v21, %v20751_v41  ;;  %v15317_v26 = vrot.slane %v16498_v45, %v17002_v25  ;;  %v20767_v41 = vld [vmem:[#allocation151_spill] sm:$0xff]  ;;  %v20768_v21 = vld [vmem:[#allocation149_spill] sm:$0xff] }
 0x589   : > { %15955 = vrot.lane.b32.xlu0 %v15274_v55, %s20498_s25  ;;  %v15349_v6 = vrot.slane %v15335_v31, %v17006_v30  ;;  %v14374_v13 = vcombine.low %v20764_v17, %v20763_v63  ;;  %v20781_v17 = vld [vmem:[#allocation43_spill] sm:$0xff]  ;;  %s20833_s25 = smov 118  }
 0x58a   : > { %v15720_v20 = vpop.permute.xlu1 %15719  ;;  %v14305_v54 = vrot.slane %v14298_v32, %v17002_v25  ;;  %v15351_v29 = vcombine.high %v15317_v26, %v15333_v0  ;;  %v14366_v32 = vcombine.low %v20768_v21, %v20767_v41 }
 0x58b   : > { %v16165_v49 = vsel %vm20741_vm9, %v16164_v12, %v15720_v20  ;;  %v15732_v14 = vpop.permute.xlu0 %15731  ;;  %vm20747_vm9 = vcmask 375808   ;;  %v14358_v20 = vcombine.low %v20758_v10, %v20757_v53  ;;  %v15301_v12 = vcombine.high %v15297_v18, %v20328_v16 }
 0x58c   : > { %15951 = vrot.lane.b32.xlu1 %v15233_v62, %s20744_s21  ;;  %v16166_v5 = vsel %vm20745_vm10, %v16165_v49, %v15724_v50  ;;  %vm20750_vm10 = vcmask 392192   ;;  %v15342_v50 = vrot.slane %v15334_v22, %v17006_v30  ;;  %v16501_v62 = vcombine.low %v14322_v4, %v14329_v43  ;;  %s16297_s21 = sshll.u32 %s19202_s9, 4  ;;  %s19951_s21 = int_to_ptr.vmem [resolvable:$true] %s16297_s21 }
 0x58d   : > { %15963 = vrot.lane.b32.xlu0 %v15281_v42, %s20500_s23  ;;  %v15350_v49 = vcombine.low %v15317_v26, %v15333_v0  ;;  %v14330_v19 = vcombine.low %v14305_v54, %v14313_v51  ;;  %v14331_v24 = vcombine.high %v14305_v54, %v14313_v51  ;;  %v14365_v7 = vrot.slane %v14358_v20, %v17002_v25  ;;  %s20831_s23 = smov 114  }
 0x58e   : > { %v15728_v11 = vpop.permute.xlu1 %15727  ;;  %v15366_v1 = vcombine.high %v15342_v50, %v20328_v16  ;;  %v15367_v58 = vcombine.high %v15349_v6, %v20328_v16  ;;  %v15365_v36 = vrot.slane %v15351_v29, %v17006_v30  ;;  %v14381_v26 = vrot.slane %v14374_v13, %v17002_v25  ;;  %v20782_v13 = vld [vmem:[#allocation23_spill] sm:$0xff] }
 0x58f   : > { %v16167_v2 = vsel %vm20746_vm11, %v16166_v5, %v15728_v11  ;;  %v15740_v38 = vpop.permute.xlu0 %15739  ;;  %vm20753_vm11 = vcmask 408576   ;;  %v14382_v45 = vcombine.low %v14357_v46, %v14365_v7  ;;  %v14373_v54 = vrot.slane %v14366_v32, %v17002_v25 }
 0x590   : > { %15959 = vrot.lane.b32.xlu1 %v15298_v35, %s20602_s19  ;;  %v16168_v34 = vsel %vm20747_vm9, %v16167_v2, %v15732_v14  ;;  %vm20754_vm9 = vcmask 424960   ;;  %v16503_v14 = vcombine.high %v14322_v4, %v14329_v43  ;;  %v15358_v35 = vrot.slane %v15350_v49, %v17006_v30  ;;  %s20807_s19 = smov 92  }
 0x591   : > { %15971 = vrot.lane.b32.xlu0 %v15290_v15, %s20506_s17  ;;  %v15378_v2 = vrot.slane %v16501_v62, %v17002_v25  ;;  %v14345_v15 = vrot.slane %v14331_v24, %v17006_v30  ;;  %v15369_v9 = vcombine.high %v15365_v36, %v20328_v16  ;;  %v14398_v53 = vcombine.low %v14373_v54, %v14381_v26  ;;  %v20772_v62 = vld [vmem:[#allocation32_spill] sm:$0xff]  ;;  %v20775_v24 = vld [vmem:[#allocation154_spill] sm:$0xff]  ;;  %s20829_s17 = smov 110  }
 0x592   : > { %v15736_v48 = vpop.permute.xlu1 %15735  ;;  %v15394_v60 = vrot.slane %v16503_v14, %v17002_v25  ;;  %v14399_v10 = vcombine.high %v14373_v54, %v14381_v26 }
 0x593   : > { %v16169_v52 = vsel %vm20750_vm10, %v16168_v34, %v15736_v48  ;;  %v15748_v27 = vpop.permute.xlu0 %15747  ;;  %vm20759_vm10 = vcmask 441344  }
 0x594   : > { %15967 = vrot.lane.b32.xlu1 %v15299_v47, %s20491_s5  ;;  %v16170_v44 = vsel %vm20753_vm11, %v16169_v52, %v15740_v38  ;;  %vm20760_vm11 = vcmask 457728   ;;  %v14338_v38 = vrot.slane %v14330_v19, %v17006_v30  ;;  %v14383_v47 = vcombine.high %v14357_v46, %v14365_v7  ;;  %s20836_s5 = smov 126  }
 0x595   : > { %15979 = vrot.lane.b32.xlu0 %v15297_v18, %s20508_s15  ;;  %v15402_v22 = vcombine.low %v15378_v2, %v15394_v60  ;;  %s20826_s15 = smov 106  }
 0x596   : > { %v15744_v55 = vpop.permute.xlu1 %15743  ;;  %v16502_v8 = vcombine.low %v14338_v38, %v14345_v15  ;;  %v16504_v52 = vcombine.high %v14338_v38, %v14345_v15  ;;  %v14397_v31 = vrot.slane %v14383_v47, %v17006_v30  ;;  %v20780_v47 = vld [vmem:[#allocation156_spill] sm:$0xff] }
 0x597   : > { %v16171_v59 = vsel %vm20754_vm9, %v16170_v44, %v15744_v55  ;;  %v15756_v61 = vpop.permute.xlu0 %15755  ;;  %vm20761_vm9 = vcmask 474112   ;;  %v15368_v55 = vcombine.high %v15358_v35, %v20328_v16  ;;  %v15403_v44 = vcombine.high %v15378_v2, %v15394_v60 }
 0x598   : > { %15975 = vrot.lane.b32.xlu1 %v15300_v3, %s20497_s13  ;;  %v16172_v56 = vsel %vm20759_vm10, %v16171_v59, %v15748_v27  ;;  %vm20762_vm10 = vcmask 490496   ;;  %v14390_v3 = vrot.slane %v14382_v45, %v17006_v30  ;;  %v15410_v59 = vrot.slane %v15402_v22, %v17006_v30  ;;  %v20779_v45 = vld [vmem:[#allocation158_spill] sm:$0xff]  ;;  %s20823_s13 = smov 108  }
 0x599   : > { %15987 = vrot.lane.b32.xlu0 %v15342_v50, %s20514_s27  ;;  %v15401_v50 = vrot.slane %v16504_v52, %v17002_v25  ;;  %v15417_v14 = vrot.slane %v15403_v44, %v17006_v30  ;;  %v14434_v63 = vcombine.low %v20780_v47, %v20779_v45  ;;  %s20814_s27 = smov 94  }
 0x59a   : > { %v15752_v42 = vpop.permute.xlu1 %15751  ;;  %v16505_v57 = vcombine.low %v14390_v3, %v14397_v31  ;;  %v16507_v23 = vcombine.high %v14390_v3, %v14397_v31  ;;  %v15434_v46 = vcombine.high %v15410_v59, %v20328_v16 }
 0x59b   : > { %v16173_v37 = vsel %vm20760_vm11, %v16172_v56, %v15752_v42  ;;  %v15764_v28 = vpop.permute.xlu0 %15763  ;;  %vm20765_vm11 = vcmask 506880   ;;  %v20773_v42 = vld [vmem:[#allocation161_spill] sm:$0xff]  ;;  %v14441_v3 = vrot.slane %v14434_v63, %v17002_v25 }
 0x59c   : > { %15983 = vrot.lane.b32.xlu1 %v15301_v12, %s20499_s12  ;;  %v16174_v5 = vsel %vm20761_vm9, %v16173_v37, %v15756_v61  ;;  %vm20766_vm9 = vcmask 523264   ;;  %v15385_v61 = vrot.slane %v16502_v8, %v17002_v25  ;;  %v14426_v56 = vcombine.low %v20773_v42, %v20772_v62  ;;  %v20776_v37 = vld [vmem:[#allocation153_spill] sm:$0xff]  ;;  %s20822_s12 = smov 102  }
 0x59d   : > { %15995 = vrot.lane.b32.xlu0 %v15349_v6, %s20520_s16  ;;  %v15462_v2 = vrot.slane %v16507_v23, %v17002_v25  ;;  %v20788_v23 = vld [vmem:[#allocation35_spill] sm:$0xff]  ;;  %s20827_s16 = smov 112  }
 0x59e   : > { %v15760_v11 = vpop.permute.xlu1 %15759  ;;  %v15418_v19 = vcombine.low %v15385_v61, %v15401_v50  ;;  %v15419_v7 = vcombine.high %v15385_v61, %v15401_v50  ;;  %v14433_v38 = vrot.slane %v14426_v56, %v17002_v25 }
 0x59f   : > { %v16175_v40 = vsel %vm20762_vm10, %v16174_v5, %v15760_v11  ;;  %v15772_v39 = vpop.permute.xlu0 %15771  ;;  %vm20769_vm10 = vcmask 539648   ;;  %v14406_v11 = vrot.slane %v14398_v53, %v17006_v30  ;;  %v14413_v5 = vrot.slane %v14399_v10, %v17006_v30  ;;  %v20789_v53 = vld [vmem:[#allocation34_spill] sm:$0xff] }
 0x5a0   : > { %15991 = vrot.lane.b32.xlu1 %v15366_v1, %s20505_s2  ;;  %v16176_v34 = vsel %vm20765_vm11, %v16175_v40, %v15764_v28  ;;  %vm20770_vm11 = vcmask 556032   ;;  %v14418_v28 = vcombine.low %v20776_v37, %v20775_v24  ;;  %v15446_v1 = vrot.slane %v16505_v57, %v17002_v25  ;;  %v20792_v24 = vld [vmem:[#allocation162_spill] sm:$0xff]  ;;  %v20793_v37 = vld [vmem:[#allocation160_spill] sm:$0xff]  ;;  %s20819_s2 = smov 104  }
 0x5a1   : > { %16003 = vrot.lane.b32.xlu0 %v15358_v35, %s20522_s26  ;;  %v15433_v52 = vrot.slane %v15419_v7, %v17006_v30  ;;  %v14494_v10 = vcombine.low %v20789_v53, %v20788_v23  ;;  %s20834_s26 = smov 124  }
 0x5a2   : > { %v15768_v48 = vpop.permute.xlu1 %15767  ;;  %v14425_v60 = vrot.slane %v14418_v28, %v17002_v25  ;;  %v15471_v44 = vcombine.high %v15446_v1, %v15462_v2  ;;  %v14486_v28 = vcombine.low %v20793_v37, %v20792_v24 }
 0x5a3   : > { %v16177_v27 = vsel %vm20766_vm9, %v16176_v34, %v15768_v48  ;;  %v15780_v18 = vpop.permute.xlu0 %15779  ;;  %vm20771_vm9 = vcmask 572416   ;;  %v14442_v48 = vcombine.low %v20782_v13, %v20781_v17  ;;  %v15435_v34 = vcombine.high %v15417_v14, %v20328_v16 }
 0x5a4   : > { %15999 = vrot.lane.b32.xlu1 %v15367_v58, %s20507_s30  ;;  %v16178_v43 = vsel %vm20769_vm10, %v16177_v27, %v15772_v39  ;;  %vm20774_vm10 = vcmask 588800   ;;  %v15426_v39 = vrot.slane %v15418_v19, %v17006_v30  ;;  %v16506_v58 = vcombine.low %v14406_v11, %v14413_v5  ;;  %s20818_s30 = smov 98  }
 0x5a5   : > { %16011 = vrot.lane.b32.xlu0 %v15365_v36, %s20526_s0  ;;  %v15470_v27 = vcombine.low %v15446_v1, %v15462_v2  ;;  %v14450_v22 = vcombine.low %v14425_v60, %v14433_v38  ;;  %v14451_v41 = vcombine.high %v14425_v60, %v14433_v38  ;;  %v14449_v31 = vrot.slane %v14442_v48, %v17002_v25  ;;  %s20787_s0 = smov 80  }
 0x5a6   : > { %v15776_v4 = vpop.permute.xlu1 %15775  ;;  %v15436_v26 = vcombine.high %v15426_v39, %v20328_v16  ;;  %v15437_v62 = vcombine.high %v15433_v52, %v20328_v16  ;;  %v15485_v42 = vrot.slane %v15471_v44, %v17006_v30  ;;  %v14501_v1 = vrot.slane %v14494_v10, %v17002_v25 }
 0x5a7   : > { %v16179_v0 = vsel %vm20770_vm11, %v16178_v43, %v15776_v4  ;;  %v15788_v51 = vpop.permute.xlu0 %15787  ;;  %vm20777_vm11 = vcmask 605184   ;;  %v14466_v57 = vcombine.low %v14441_v3, %v14449_v31  ;;  %v14493_v60 = vrot.slane %v14486_v28, %v17002_v25 }
 0x5a8   : > { %16007 = vrot.lane.b32.xlu1 %v15368_v55, %s20513_s29  ;;  %v16180_v12 = vsel %vm20771_vm9, %v16179_v0, %v15780_v18  ;;  %vm20778_vm9 = vcmask 621568   ;;  %v16508_v18 = vcombine.high %v14406_v11, %v14413_v5  ;;  %v15478_v55 = vrot.slane %v15470_v27, %v17006_v30  ;;  %s20815_s29 = smov 100  }
 0x5a9   : > { %16019 = vrot.lane.b32.xlu0 %v15410_v59, %s20530_s10  ;;  %v15453_v0 = vrot.slane %v16506_v58, %v17002_v25  ;;  %v14465_v59 = vrot.slane %v14451_v41, %v17006_v30  ;;  %s20798_s10 = smov 82   ;;  %v15503_v47 = vcombine.high %v15485_v42, %v20328_v16  ;;  %v14518_v17 = vcombine.low %v14493_v60, %v14501_v1  ;;  %v20801_v58 = vld [vmem:[#allocation25_spill] sm:$0xff]  ;;  %v20805_v41 = vld [vmem:[#allocation44_spill] sm:$0xff] }
 0x5aa   : > { %v15784_v20 = vpop.permute.xlu1 %15783  ;;  %v15469_v54 = vrot.slane %v16508_v18, %v17002_v25  ;;  %v14519_v13 = vcombine.high %v14493_v60, %v14501_v1 }
 0x5ab   : > { %v16181_v6 = vsel %vm20774_vm10, %v16180_v12, %v15784_v20  ;;  %v15796_v49 = vpop.permute.xlu0 %15795  ;;  %vm20783_vm10 = vcmask 637952  }
 0x5ac   : > { %16015 = vrot.lane.b32.xlu1 %v15369_v9, %s20519_s18  ;;  %v16182_v29 = vsel %vm20777_vm11, %v16181_v6, %v15788_v51  ;;  %vm20784_vm11 = vcmask 654336   ;;  %v14458_v51 = vrot.slane %v14450_v22, %v17006_v30  ;;  %v14467_v9 = vcombine.high %v14441_v3, %v14449_v31  ;;  %s20811_s18 = smov 96  }
 0x5ad   : > { %16027 = vrot.lane.b32.xlu0 %v15417_v14, %s20532_s8  ;;  %v15486_v19 = vcombine.low %v15453_v0, %v15469_v54  ;;  %s20795_s8 = smov 84  }
 0x5ae   : > { %v15792_v35 = vpop.permute.xlu1 %15791  ;;  %v16509_v56 = vcombine.low %v14458_v51, %v14465_v59  ;;  %v16511_v6 = vcombine.high %v14458_v51, %v14465_v59  ;;  %v14481_v7 = vrot.slane %v14467_v9, %v17006_v30 }
 0x5af   : > { %v16183_v15 = vsel %vm20778_vm9, %v16182_v29, %v15792_v35  ;;  %v15804_v40 = vpop.permute.xlu0 %15803  ;;  %vm20785_vm9 = vcmask 670720   ;;  %v15502_v35 = vcombine.high %v15478_v55, %v20328_v16  ;;  %v15487_v29 = vcombine.high %v15453_v0, %v15469_v54 }
 0x5b0   : > { %16023 = vrot.lane.b32.xlu1 %v15434_v46, %s20521_s22  ;;  %v16184_v8 = vsel %vm20783_vm10, %v16183_v15, %v15796_v49  ;;  %vm20786_vm10 = vcmask 687104   ;;  %v14474_v46 = vrot.slane %v14466_v57, %v17006_v30  ;;  %v15494_v15 = vrot.slane %v15486_v19, %v17006_v30  ;;  %s20830_s22 = smov 116  }
 0x5b1   : > { %16035 = vrot.lane.b32.xlu0 %v15426_v39, %s20538_s11  ;;  %v15530_v39 = vrot.slane %v16511_v6, %v17002_v25  ;;  %s20799_s11 = smov 88   ;;  %v15501_v18 = vrot.slane %v15487_v29, %v17006_v30 }
 0x5b2   : > { %v15800_v36 = vpop.permute.xlu1 %15799  ;;  %v16510_v45 = vcombine.low %v14474_v46, %v14481_v7  ;;  %v16512_v63 = vcombine.high %v14474_v46, %v14481_v7  ;;  %v15504_v3 = vcombine.high %v15494_v15, %v20328_v16 }
 0x5b3   : > { %v16185_v21 = vsel %vm20784_vm11, %v16184_v8, %v15800_v36  ;;  %v15812_v32 = vpop.permute.xlu0 %15811  ;;  %vm20790_vm11 = vcmask 703488   ;;  %v20802_v36 = vld [vmem:[#allocation26_spill] sm:$0xff]  ;;  %v15505_v57 = vcombine.high %v15501_v18, %v20328_v16 }
 0x5b4   : > { %16031 = vrot.lane.b32.xlu1 %v15435_v34, %s20523_s24  ;;  %v16186_v43 = vsel %vm20785_vm9, %v16185_v21, %v15804_v40  ;;  %vm20791_vm9 = vcmask 719872   ;;  %v15514_v40 = vrot.slane %v16509_v56, %v17002_v25  ;;  %v14510_v8 = vcombine.low %v20802_v36, %v20801_v58  ;;  %v20806_v21 = vld [vmem:[#allocation24_spill] sm:$0xff]  ;;  %s20832_s24 = smov 120  }
 0x5b5   : > { %16043 = vrot.lane.b32.xlu0 %v15433_v52, %s20540_s6  ;;  %s20794_s6 = smov 78   ;;  %v15537_v0 = vrot.slane %v16512_v63, %v17002_v25 }
 0x5b6   : > { %v15808_v4 = vpop.permute.xlu1 %15807  ;;  %v15538_v22 = vcombine.low %v15514_v40, %v15530_v39  ;;  %v15539_v31 = vcombine.high %v15514_v40, %v15530_v39  ;;  %v14517_v51 = vrot.slane %v14510_v8, %v17002_v25 }
 0x5b7   : > { %v16187_v61 = vsel %vm20786_vm10, %v16186_v43, %v15808_v4  ;;  %v15820_v50 = vpop.permute.xlu0 %15819  ;;  %vm20796_vm10 = vcmask 736256   ;;  %v14526_v4 = vrot.slane %v14518_v17, %v17006_v30  ;;  %v14533_v43 = vrot.slane %v14519_v13, %v17006_v30 }
 0x5b8   : > { %16039 = vrot.lane.b32.xlu1 %v15436_v26, %s20529_s14  ;;  %v16188_v12 = vsel %vm20790_vm11, %v16187_v61, %v15812_v32  ;;  %vm20797_vm11 = vcmask 752640   ;;  %s20804_s14 = smov 86   ;;  %v14502_v32 = vcombine.low %v20806_v21, %v20805_v41  ;;  %v15521_v26 = vrot.slane %v16510_v45, %v17002_v25 }
 0x5b9   : > { %16051 = vrot.lane.b32.xlu0 %v15478_v55, %s20787_s0  ;;  %v16513_v9 = vcombine.low %v14526_v4, %v14533_v43  ;;  %v15553_v10 = vrot.slane %v15539_v31, %v17006_v30 }
 0x5ba   : > { %v15816_v20 = vpop.permute.xlu1 %15815  ;;  %v14509_v54 = vrot.slane %v14502_v32, %v17002_v25  ;;  %v15555_v37 = vcombine.high %v15521_v26, %v15537_v0 }
 0x5bb   : > { %v16189_v49 = vsel %vm20791_vm9, %v16188_v12, %v15816_v20  ;;  %v15828_v14 = vpop.permute.xlu0 %15827  ;;  %vm20800_vm9 = vcmask 769024   ;;  %v15554_v20 = vcombine.low %v15521_v26, %v15537_v0  ;;  %v16515_v12 = vcombine.high %v14526_v4, %v14533_v43 }
 0x5bc   : > { %16047 = vrot.lane.b32.xlu1 %v15437_v62, %s20794_s6  ;;  %v16190_v5 = vsel %vm20796_vm10, %v16189_v49, %v15820_v50  ;;  %vm20803_vm10 = vcmask 785408   ;;  %v15546_v50 = vrot.slane %v15538_v22, %v17006_v30  ;;  %v14534_v62 = vcombine.low %v14509_v54, %v14517_v51 }
 0x5bd   : > { %16059 = vrot.lane.b32.xlu0 %v15485_v42, %s20795_s8  ;;  %v14535_v42 = vcombine.high %v14509_v54, %v14517_v51  ;;  %v15562_v24 = vrot.slane %v15554_v20, %v17006_v30  ;;  %v15582_v28 = vrot.slane %v16513_v9, %v17002_v25  ;;  %s20890_s8 = sld [smem:[#allocation164_spill]] }
 0x5be   : > { %v15824_v11 = vpop.permute.xlu1 %15823  ;;  %v15570_v49 = vcombine.high %v15546_v50, %v20328_v16  ;;  %v14542_v46 = vrot.slane %v14534_v62, %v17006_v30 }
 0x5bf   : > { %v16191_v2 = vsel %vm20797_vm11, %v16190_v5, %v15824_v11  ;;  %v15836_v38 = vpop.permute.xlu0 %15835  ;;  %vm20808_vm11 = vcmask 801792   ;;  %v14549_v7 = vrot.slane %v14535_v42, %v17006_v30  ;;  %v15598_v5 = vrot.slane %v16515_v12, %v17002_v25 }
 0x5c0   : > { %16055 = vrot.lane.b32.xlu1 %v15502_v35, %s20798_s10  ;;  %v16192_v34 = vsel %vm20800_vm9, %v16191_v2, %v15828_v14  ;;  %vm20809_vm9 = vcmask 818176   ;;  %v15571_v2 = vcombine.high %v15553_v10, %v20328_v16  ;;  %v15572_v17 = vcombine.high %v15562_v24, %v20328_v16 }
 0x5c1   : > { %16067 = vrot.lane.b32.xlu0 %v15494_v15, %s20799_s11  ;;  %v16514_v15 = vcombine.low %v14542_v46, %v14549_v7  ;;  %v16516_v40 = vcombine.high %v14542_v46, %v14549_v7  ;;  %v15606_v45 = vcombine.low %v15582_v28, %v15598_v5  ;;  %v15607_v13 = vcombine.high %v15582_v28, %v15598_v5  ;;  %s16281_s11 = scalar_lea.sflag [#allocation4], %s20887_s20 }
 0x5c2   : > { %v15832_v48 = vpop.permute.xlu1 %15831 }
 0x5c3   : > { %v16193_v52 = vsel %vm20803_vm10, %v16192_v34, %v15832_v48  ;;  %v15844_v27 = vpop.permute.xlu0 %15843  ;;  %vm20812_vm10 = vcmask 834560   ;;  %v15614_v58 = vrot.slane %v15606_v45, %v17006_v30  ;;  %v15589_v36 = vrot.slane %v16514_v15, %v17002_v25  ;;  %s19949_s10 = scalar_lea.hbm %s20890_s8, %s16522_s1 }
 0x5c4   : > { %16063 = vrot.lane.b32.xlu1 %v15503_v47, %s20804_s14  ;;  %v16194_v44 = vsel %vm20808_vm11, %v16193_v52, %v15836_v38  ;;  %vm20813_vm11 = vcmask 850944   ;;  %v15569_v38 = vrot.slane %v15555_v37, %v17006_v30  ;;  %v15605_v8 = vrot.slane %v16516_v40, %v17002_v25  ;;  %s20891_s14 = smov %s20890_s8 }
 0x5c5   : > { %16075 = vrot.lane.b32.xlu0 %v15501_v18, %s20807_s19  ;;  %v15621_v21 = vrot.slane %v15607_v13, %v17006_v30  ;;  %v15638_v31 = vcombine.high %v15614_v58, %v20328_v16  ;;  %s16686_s19 = scalar_lea.vmem %s19951_s21, 256 }
 0x5c6   : > { %v15840_v55 = vpop.permute.xlu1 %15839  ;;  %v15573_v18 = vcombine.high %v15569_v38, %v20328_v16  ;;  %v15622_v32 = vcombine.low %v15589_v36, %v15605_v8  ;;  %p16687_p8 = scmp.ne.s32.totalorder %s19951_s21, %s16686_s19 }
 0x5c7   : > { %v16195_v59 = vsel %vm20809_vm9, %v16194_v44, %v15840_v55  ;;  %v15852_v61 = vpop.permute.xlu0 %15851  ;;  %vm20816_vm9 = vcmask 867328   ;;  %v15623_v55 = vcombine.high %v15589_v36, %v15605_v8 }
 0x5c8   : > { %16071 = vrot.lane.b32.xlu1 %v15504_v3, %s20810_s3  ;;  %v16196_v53 = vsel %vm20812_vm10, %v16195_v59, %v15844_v27  ;;  %vm20817_vm10 = vcmask 883712   ;;  %v15630_v43 = vrot.slane %v15622_v32, %v17006_v30  ;;  %v15639_v59 = vcombine.high %v15621_v21, %v20328_v16  ;;  %p16688_p11 = pnand %p16687_p8, %p20892_p9  ;;  %s16840_s3 = smov [#allocation5]  }
 0x5c9   : > { %16083 = vrot.lane.b32.xlu0 %v15546_v50, %s20811_s18  ;;  %v15637_v54 = vrot.slane %v15623_v55, %v17006_v30  ;;  %s16690_s18 = sshll.u32 %s16840_s3, 4  ;;  %s16691_s18 = int_to_ptr.vmem [resolvable:$false] %s16690_s18 }
 0x5ca   : > { %v15848_v23 = vpop.permute.xlu1 %15847  ;;  %p16689_p0 = pneg %p16688_p11  ;;  %p16693_p10 = scmp.lt.s32.totalorder %s19951_s21, %s16691_s18 }
 0x5cb   : > { %v16197_v56 = vsel %vm20813_vm11, %v16196_v53, %v15848_v23  ;;  %v15860_v6 = vpop.permute.xlu0 %15859  ;;  %vm20820_vm11 = vcmask 900096   ;;  %v15640_v23 = vcombine.high %v15630_v43, %v20328_v16  ;;  %v15641_v12 = vcombine.high %v15637_v54, %v20328_v16 }
 0x5cc   : > { %16079 = vrot.lane.b32.xlu1 %v15505_v57, %s20814_s27  ;;  %v16198_v19 = vsel %vm20816_vm9, %v16197_v56, %v15852_v61  ;;  %vm20821_vm9 = vcmask 916480   ;;  %s16692_s27 = scalar_lea.vmem %s16691_s18, 512 }
 0x5cd   : > { %16091 = vrot.lane.b32.xlu0 %v15553_v10, %s20815_s29  ;;  %p16694_p13 = scmp.lt.s32.totalorder %s16692_s27, %s16686_s19 }
 0x5ce   : > { %v15856_v14 = vpop.permute.xlu1 %15855 }
 0x5cf   : > { %v16199_v1 = vsel %vm20817_vm10, %v16198_v19, %v15856_v14  ;;  %v15868_v11 = vpop.permute.xlu0 %15867  ;;  %vm20824_vm10 = vcmask 932864   ;;  %p16695_p1 = por %p16694_p13, %p16693_p10 }
 0x5d0   : > { %16087 = vrot.lane.b32.xlu1 %v15570_v49, %s20818_s30  ;;  %v16200_v29 = vsel %vm20820_vm11, %v16199_v1, %v15860_v6  ;;  %vm20825_vm11 = vcmask 949248  }
 0x5d1   : > { %16099 = vrot.lane.b32.xlu0 %v15562_v24, %s20819_s2  ;;  %p16696_p3 = pnand %p16695_p1, %p16689_p0 }
 0x5d2   : > { %v15864_v35 = vpop.permute.xlu1 %15863 }
 0x5d3   : > { %v16201_v39 = vsel %vm20821_vm9, %v16200_v29, %v15864_v35  ;;  %v15876_v60 = vpop.permute.xlu0 %15875  ;;  %vm20828_vm9 = vcmask 965632  }
 0x5d4   : > { %16095 = vrot.lane.b32.xlu1 %v15571_v2, %s20822_s12  ;;  %v16202_v63 = vsel %vm20824_vm10, %v16201_v39, %v15868_v11  ;;  %vm20846_vm10 = vcmask 310272  }
 0x5d5   : > { %16107 = vrot.lane.b32.xlu0 %v15569_v38, %s20823_s13 }
 0x5d6   : > { %v15872_v47 = vpop.permute.xlu1 %15871 }
 0x5d7   : > { %v16203_v48 = vsel %vm20825_vm11, %v16202_v63, %v15872_v47  ;;  %v15884_v34 = vpop.permute.xlu0 %15883  ;;  %vm20847_vm11 = vcmask 326656  }
 0x5d8   : > { %16103 = vrot.lane.b32.xlu1 %v15572_v17, %s20826_s15  ;;  %v16204_v27 = vsel %vm20828_vm9, %v16203_v48, %v15876_v60  ;;  %vm20848_vm9 = vcmask 343040  }
 0x5d9   : > { %16115 = vrot.lane.b32.xlu0 %v15614_v58, %s20827_s16 }
 0x5da   : > { %v15880_v52 = vpop.permute.xlu1 %15879 }
 0x5db   : > { %v16205_v22 = vsel %vm8173_vm12, %v16204_v27, %v15880_v52  ;;  %v15892_v41 = vpop.permute.xlu0 %15891 }
 0x5dc   : > { %16111 = vrot.lane.b32.xlu1 %v15573_v18, %s20829_s17  ;;  %v16206_v3 = vsel %vm8175_vm15, %v16205_v22, %v15884_v34 }
 0x5dd   : > { %16123 = vrot.lane.b32.xlu0 %v15621_v21, %s20830_s22 }
 0x5de   : > { %v15888_v25 = vpop.permute.xlu1 %15887 }
 0x5df   : > { %v16207_v26 = vsel %vm8177_vm13, %v16206_v3, %v15888_v25  ;;  %v15900_v4 = vpop.permute.xlu0 %15899 }
 0x5e0   : > { %v16208_v44 = vsel %vm8179_vm14, %v16207_v26, %v15892_v41  ;;  %16119 = vrot.lane.b32.xlu1 %v15638_v31, %s20831_s23 }
 0x5e1   : > { %v16274_v0 = vrot.slane %v16208_v44, 4  ;;  %16131 = vrot.lane.b32.xlu0 %v15630_v43, %s20832_s24 }
 0x5e2   : > { %v15896_v51 = vpop.permute.xlu1 %15895 }
 0x5e3   : > { %16278 = vst [vmem:[%s19202_s9] sm:$0xf0] %v16274_v0  ;;  %v16209_v61 = vsel %vm8055_vm0, %v19567_v33, %v15896_v51  ;;  %v15908_v50 = vpop.permute.xlu0 %15907  ;;  %vm20837_vm0 = vcmask 162816  }
 0x5e4   : > { %16127 = vrot.lane.b32.xlu1 %v15639_v59, %s20833_s25  ;;  %v16210_v57 = vsel %vm8057_vm1, %v16209_v61, %v15900_v4  ;;  %vm20838_vm1 = vcmask 179200  }
 0x5e5   : > { %16139 = vrot.lane.b32.xlu0 %v15637_v54, %s20834_s26 }
 0x5e6   : > { %v15904_v9 = vpop.permute.xlu1 %15903 }
 0x5e7   : > { %v16211_v53 = vsel %vm8059_vm2, %v16210_v57, %v15904_v9  ;;  %v15916_v10 = vpop.permute.xlu0 %15915  ;;  %vm20839_vm2 = vcmask 195584  }
 0x5e8   : > { %16135 = vrot.lane.b32.xlu1 %v15640_v23, %s20835_s4  ;;  %v16212_v20 = vsel %vm8061_vm3, %v16211_v53, %v15908_v50  ;;  %vm20840_vm3 = vcmask 211968  }
 0x5ea   : > { %v15912_v33 = vpop.permute.xlu1 %15911 }
 0x5eb   : > { %v16213_v30 = vsel %vm8063_vm4, %v16212_v20, %v15912_v33  ;;  %v15924_v62 = vpop.permute.xlu0 %15923  ;;  %vm20841_vm4 = vcmask 228352  }
 0x5ec   : > { %16143 = vrot.lane.b32.xlu1 %v15641_v12, %s20836_s5  ;;  %v16214_v56 = vsel %vm8065_vm5, %v16213_v30, %v15916_v10  ;;  %vm20842_vm5 = vcmask 244736  }
 0x5ee   : > { %v15920_v42 = vpop.permute.xlu1 %15919 }
 0x5ef   : > { %v16215_v6 = vsel %vm8067_vm6, %v16214_v56, %v15920_v42  ;;  %v15932_v49 = vpop.permute.xlu0 %15931  ;;  %vm20843_vm6 = vcmask 261120  }
 0x5f0   : > { %v16216_v19 = vsel %vm8069_vm7, %v16215_v6, %v15924_v62  ;;  %vm20844_vm7 = vcmask 277504  }
 0x5f2   : > { %v15928_v14 = vpop.permute.xlu1 %15927 }
 0x5f3   : > { %v16217_v24 = vsel %vm8071_vm8, %v16216_v19, %v15928_v14  ;;  %v15940_v37 = vpop.permute.xlu0 %15939  ;;  %vm20845_vm8 = vcmask 293888  }
 0x5f4   : > { %v16218_v16 = vsel %vm20837_vm0, %v16217_v24, %v15932_v49  ;;  %vm20849_vm0 = vcmask 359424  }
 0x5f6   : > { %v15936_v28 = vpop.permute.xlu1 %15935 }
 0x5f7   : > { %v16219_v46 = vsel %vm20838_vm1, %v16218_v16, %v15936_v28  ;;  %v15948_v7 = vpop.permute.xlu0 %15947  ;;  %vm20850_vm1 = vcmask 375808  }
 0x5f8   : > { %v16220_v11 = vsel %vm20839_vm2, %v16219_v46, %v15940_v37  ;;  %vm20851_vm2 = vcmask 392192  }
 0x5fa   : > { %v15944_v1 = vpop.permute.xlu1 %15943 }
 0x5fb   : > { %v16221_v5 = vsel %vm20840_vm3, %v16220_v11, %v15944_v1  ;;  %v15956_v35 = vpop.permute.xlu0 %15955  ;;  %vm20852_vm3 = vcmask 408576  }
 0x5fc   : > { %v16222_v2 = vsel %vm20841_vm4, %v16221_v5, %v15948_v7  ;;  %vm20853_vm4 = vcmask 424960  }
 0x5fe   : > { %v15952_v29 = vpop.permute.xlu1 %15951 }
 0x5ff   : > { %v16223_v38 = vsel %vm20842_vm5, %v16222_v2, %v15952_v29  ;;  %v15964_v15 = vpop.permute.xlu0 %15963  ;;  %vm20854_vm5 = vcmask 441344  }
 0x600   : > { %v16224_v39 = vsel %vm20843_vm6, %v16223_v38, %v15956_v35  ;;  %vm20855_vm6 = vcmask 457728  }
 0x602   : > { %v15960_v40 = vpop.permute.xlu1 %15959 }
 0x603   : > { %v16225_v60 = vsel %vm20844_vm7, %v16224_v39, %v15960_v40  ;;  %v15972_v45 = vpop.permute.xlu0 %15971  ;;  %vm20856_vm7 = vcmask 474112  }
 0x604   : > { %v16226_v63 = vsel %vm20845_vm8, %v16225_v60, %v15964_v15  ;;  %vm20857_vm8 = vcmask 490496  }
 0x606   : > { %v15968_v47 = vpop.permute.xlu1 %15967 }
 0x607   : > { %v16227_v17 = vsel %vm20846_vm10, %v16226_v63, %v15968_v47  ;;  %v15980_v13 = vpop.permute.xlu0 %15979  ;;  %vm20858_vm10 = vcmask 506880  }
 0x608   : > { %v16228_v34 = vsel %vm20847_vm11, %v16227_v17, %v15972_v45  ;;  %vm20859_vm11 = vcmask 523264  }
 0x60a   : > { %v15976_v48 = vpop.permute.xlu1 %15975 }
 0x60b   : > { %v16229_v58 = vsel %vm20848_vm9, %v16228_v34, %v15976_v48  ;;  %v15988_v36 = vpop.permute.xlu0 %15987  ;;  %vm20860_vm9 = vcmask 539648  }
 0x60c   : > { %v16230_v52 = vsel %vm20849_vm0, %v16229_v58, %v15980_v13  ;;  %vm20861_vm0 = vcmask 556032  }
 0x60e   : > { %v15984_v8 = vpop.permute.xlu1 %15983 }
 0x60f   : > { %v16231_v27 = vsel %vm20850_vm1, %v16230_v52, %v15984_v8  ;;  %v15996_v18 = vpop.permute.xlu0 %15995  ;;  %vm20862_vm1 = vcmask 572416  }
 0x610   : > { %v16232_v41 = vsel %vm20851_vm2, %v16231_v27, %v15988_v36  ;;  %vm20863_vm2 = vcmask 588800  }
 0x612   : > { %v15992_v22 = vpop.permute.xlu1 %15991 }
 0x613   : > { %v16233_v21 = vsel %vm20852_vm3, %v16232_v41, %v15992_v22  ;;  %v16004_v32 = vpop.permute.xlu0 %16003  ;;  %vm20864_vm3 = vcmask 605184  }
 0x614   : > { %v16234_v3 = vsel %vm20853_vm4, %v16233_v21, %v15996_v18  ;;  %vm20865_vm4 = vcmask 621568  }
 0x616   : > { %v16000_v25 = vpop.permute.xlu1 %15999 }
 0x617   : > { %v16235_v31 = vsel %vm20854_vm5, %v16234_v3, %v16000_v25  ;;  %v16012_v26 = vpop.permute.xlu0 %16011  ;;  %vm20866_vm5 = vcmask 637952  }
 0x618   : > { %v16236_v43 = vsel %vm20855_vm6, %v16235_v31, %v16004_v32  ;;  %vm20867_vm6 = vcmask 654336  }
 0x61a   : > { %v16008_v4 = vpop.permute.xlu1 %16007 }
 0x61b   : > { %v16237_v55 = vsel %vm20856_vm7, %v16236_v43, %v16008_v4  ;;  %v16020_v44 = vpop.permute.xlu0 %16019  ;;  %vm20868_vm7 = vcmask 670720  }
 0x61c   : > { %v16238_v51 = vsel %vm20857_vm8, %v16237_v55, %v16012_v26  ;;  %vm20869_vm8 = vcmask 687104  }
 0x61e   : > { %v16016_v0 = vpop.permute.xlu1 %16015 }
 0x61f   : > { %v16239_v59 = vsel %vm20858_vm10, %v16238_v51, %v16016_v0  ;;  %v16028_v61 = vpop.permute.xlu0 %16027  ;;  %vm20870_vm10 = vcmask 703488  }
 0x620   : > { %v16240_v54 = vsel %vm20859_vm11, %v16239_v59, %v16020_v44  ;;  %vm20871_vm11 = vcmask 719872  }
 0x622   : > { %v16024_v50 = vpop.permute.xlu1 %16023 }
 0x623   : > { %v16241_v57 = vsel %vm20860_vm9, %v16240_v54, %v16024_v50  ;;  %v16036_v9 = vpop.permute.xlu0 %16035  ;;  %vm20872_vm9 = vcmask 736256  }
 0x624   : > { %v16242_v53 = vsel %vm20861_vm0, %v16241_v57, %v16028_v61  ;;  %vm20873_vm0 = vcmask 752640  }
 0x626   : > { %v16032_v23 = vpop.permute.xlu1 %16031 }
 0x627   : > { %v16243_v10 = vsel %vm20862_vm1, %v16242_v53, %v16032_v23  ;;  %v16044_v20 = vpop.permute.xlu0 %16043  ;;  %vm20874_vm1 = vcmask 769024  }
 0x628   : > { %v16244_v12 = vsel %vm20863_vm2, %v16243_v10, %v16036_v9  ;;  %vm20875_vm2 = vcmask 785408  }
 0x62a   : > { %v16040_v33 = vpop.permute.xlu1 %16039 }
 0x62b   : > { %v16245_v30 = vsel %vm20864_vm3, %v16244_v12, %v16040_v33  ;;  %v16052_v62 = vpop.permute.xlu0 %16051  ;;  %vm20876_vm3 = vcmask 801792  }
 0x62c   : > { %v16246_v56 = vsel %vm20865_vm4, %v16245_v30, %v16044_v20  ;;  %vm20877_vm4 = vcmask 818176  }
 0x62e   : > { %v16048_v42 = vpop.permute.xlu1 %16047 }
 0x62f   : > { %v16247_v6 = vsel %vm20866_vm5, %v16246_v56, %v16048_v42  ;;  %v16060_v49 = vpop.permute.xlu0 %16059  ;;  %vm20878_vm5 = vcmask 834560  }
 0x630   : > { %v16248_v19 = vsel %vm20867_vm6, %v16247_v6, %v16052_v62  ;;  %vm20879_vm6 = vcmask 850944  }
 0x632   : > { %v16056_v14 = vpop.permute.xlu1 %16055 }
 0x633   : > { %v16249_v24 = vsel %vm20868_vm7, %v16248_v19, %v16056_v14  ;;  %v16068_v37 = vpop.permute.xlu0 %16067  ;;  %vm20880_vm7 = vcmask 867328  }
 0x634   : > { %v16250_v16 = vsel %vm20869_vm8, %v16249_v24, %v16060_v49  ;;  %vm20882_vm8 = vcmask 883712  }
 0x636   : > { %v16064_v28 = vpop.permute.xlu1 %16063 }
 0x637   : > { %v16251_v46 = vsel %vm20870_vm10, %v16250_v16, %v16064_v28  ;;  %v16076_v7 = vpop.permute.xlu0 %16075  ;;  %vm20883_vm10 = vcmask 900096  }
 0x638   : > { %v16252_v11 = vsel %vm20871_vm11, %v16251_v46, %v16068_v37  ;;  %vm20884_vm11 = vcmask 916480  }
 0x63a   : > { %v16072_v1 = vpop.permute.xlu1 %16071 }
 0x63b   : > { %v16253_v5 = vsel %vm20872_vm9, %v16252_v11, %v16072_v1  ;;  %v16084_v35 = vpop.permute.xlu0 %16083  ;;  %vm20885_vm9 = vcmask 932864  }
 0x63c   : > { %v16254_v2 = vsel %vm20873_vm0, %v16253_v5, %v16076_v7  ;;  %vm20886_vm0 = vcmask 949248  }
 0x63e   : > { %v16080_v29 = vpop.permute.xlu1 %16079 }
 0x63f   : > { %v16255_v38 = vsel %vm20874_vm1, %v16254_v2, %v16080_v29  ;;  %v16092_v15 = vpop.permute.xlu0 %16091  ;;  %vm20888_vm1 = vcmask 965632  }
 0x640   : > { %v16256_v39 = vsel %vm20875_vm2, %v16255_v38, %v16084_v35 }
 0x642   : > { %v16088_v40 = vpop.permute.xlu1 %16087 }
 0x643   : > { %v16257_v60 = vsel %vm20876_vm3, %v16256_v39, %v16088_v40  ;;  %v16100_v45 = vpop.permute.xlu0 %16099 }
 0x644   : > { %v16258_v63 = vsel %vm20877_vm4, %v16257_v60, %v16092_v15 }
 0x646   : > { %v16096_v47 = vpop.permute.xlu1 %16095 }
 0x647   : > { %v16259_v17 = vsel %vm20878_vm5, %v16258_v63, %v16096_v47  ;;  %v16108_v13 = vpop.permute.xlu0 %16107 }
 0x648   : > { %v16260_v34 = vsel %vm20879_vm6, %v16259_v17, %v16100_v45 }
 0x64a   : > { %v16104_v48 = vpop.permute.xlu1 %16103 }
 0x64b   : > { %v16261_v58 = vsel %vm20880_vm7, %v16260_v34, %v16104_v48  ;;  %v16116_v36 = vpop.permute.xlu0 %16115 }
 0x64c   : > { %v16262_v52 = vsel %vm20882_vm8, %v16261_v58, %v16108_v13 }
 0x64e   : > { %v16112_v8 = vpop.permute.xlu1 %16111 }
 0x64f   : > { %v16263_v27 = vsel %vm20883_vm10, %v16262_v52, %v16112_v8  ;;  %v16124_v18 = vpop.permute.xlu0 %16123 }
 0x650   : > { %v16264_v41 = vsel %vm20884_vm11, %v16263_v27, %v16116_v36 }
 0x652   : > { %v16120_v22 = vpop.permute.xlu1 %16119 }
 0x653   : > { %v16265_v21 = vsel %vm20885_vm9, %v16264_v41, %v16120_v22  ;;  %v16132_v3 = vpop.permute.xlu0 %16131 }
 0x654   : > { %v16266_v25 = vsel %vm20886_vm0, %v16265_v21, %v16124_v18 }
 0x656   : > { %v16128_v32 = vpop.permute.xlu1 %16127 }
 0x657   : > { %v16267_v31 = vsel %vm20888_vm1, %v16266_v25, %v16128_v32  ;;  %v16140_v55 = vpop.permute.xlu0 %16139 }
 0x658   : > { %v16268_v4 = vsel %vm8173_vm12, %v16267_v31, %v16132_v3 }
 0x65a   : > { %v16136_v26 = vpop.permute.xlu1 %16135 }
 0x65b   : > { %v16269_v43 = vsel %vm8175_vm15, %v16268_v4, %v16136_v26 }
 0x65c   : > { %v16270_v0 = vsel %vm8177_vm13, %v16269_v43, %v16140_v55 }
 0x65e   : > { %v16144_v44 = vpop.permute.xlu1 %16143 }
 0x65f   : > { %v16271_v51 = vsel %vm8179_vm14, %v16270_v0, %v16144_v44 }
 0x660   : > { %v16275_v59 = vrot.slane %v16271_v51, 4 }
 0x662   : > { %16279 = vst [vmem:[%s19202_s9 + $0x8] sm:$0xf0] %v16275_v59 }
 0x663   : > { %16699 = shalt.err (!%p16696_p3)
}
 0x664   : > { %s16700_s9 = scalar_lea.hbm %s19949_s10, 256  ;;  %s16704_s2 = scalar_lea.hbm %s20891_s14, 512 }
 0x665   : > { %p16701_p4 = scmp.ne.s32.totalorder %s19949_s10, %s16700_s9  ;;  %p16705_p12 = scmp.lt.u32.totalorder %s19949_s10, %s20891_s14 }
 0x666   : > { %p16706_p2 = scmp.lt.u32.totalorder %s16704_s2, %s16700_s9  ;;  %p16708_p8 = scmp.lt.u32.totalorder %s16700_s9, %s19949_s10 }
 0x667   : > { %p16702_p6 = pnand %p16701_p4, %p20892_p9 }
 0x668   : > { %p16707_p5 = por %p16706_p2, %p16705_p12 }
 0x669   : > { %p16703_p7 = pneg %p16702_p6 }
 0x66a   : > { %p16709_p11 = por %p16708_p8, %p16707_p5 }
 0x66c   : > { %p16710_p0 = pnand %p16709_p11, %p16703_p7 }
 0x66e   : > { %16713 = shalt.err (!%p16710_p0)
}
 0x66f   : > { %16525 = dma.vmem_to_hbm [thread:$0]  (%p20892_p9), %s19951_s21, 256, %s19949_s10, %s16281_s11  }
 0x670 PF: > { %s20893_s15 = sld [smem:[#allocation8_spill]]  ;;  %s20894_s16 = sld [smem:[#allocation17_spill]] }
 0x671   : > { %s20895_s17 = sld [smem:[#allocation13_spill]] }
 0x676   : > { %s16309_s22 = sand.u32 1, %s20893_s15   ;;  %p20896_p10 = scmp.ne.s32.totalorder %s20894_s16, 0 }
 0x677   : > { %p20897_p13 = scmp.ge.s32.totalorder %s20895_s17, 2  ;;  %s16310_s23 = scalar_lea.sflag [#allocation4], %s16309_s22 }
 0x679   : > { %p16532_p1 = pnand %p20897_p13, %p20896_p10 }
 0x67b   : > { %16743 = dma.done.wait (!%p16532_p1), %s16310_s23, 256  }
 0x67c   : > { %16745 = vsyncadd (!%p16532_p1), %s16310_s23, 4294967040  ;;  %s17_s11 = sadd.s32 1, %s20895_s17   ;;  %s20898_s6 = sld [smem:[#allocation9_spill]] }
 0x67d   : > { %p14_p3 = scmp.ge.s32.totalorder %s17_s11, 4   ;;  %s20899_s7 = sld [smem:[#allocation10_spill]] }
 0x67e   : > { %s20900_s8 = sld [smem:[#allocation16_spill]]  ;;  %s20901_s9 = sld [smem:[#allocation12_spill]] }
 0x67f   : > { %s20902_s10 = sld [smem:[#allocation14_spill]]  ;;  %16 = sbr.rel (!%p14_p3) target bundleno = 9 (0x9), region = 69 }
 0x686   :  { %16315 = vsyncpa [#allocation3], 1 }
 0x687   :  { %16317 = vsyncpa [#allocation3 + $0x1], 1 }
 0x688   :  { %16318 = vsyncpa [#allocation4], 1 }
 0x689   :  { %16320 = vsyncpa [#allocation4 + $0x1], 1 }

</bundles_post_ra>
